<compile_context>
chip_gen: v7x
topology: tpu7x:2x2x1
jax: 0.10.0
libtpu: 0.0.40
codegen_flags: <defaults>
</compile_context>

<pallas_src>
import math
from functools import partial

import jax
import jax.numpy as jnp
from jax.experimental import pallas as pl
from jax.experimental.pallas import tpu as pltpu

_NEG_INF = -1e30


def _vmem_limit_bytes():
    # Leave headroom below physical VMEM (v7x = 64 MiB/TC); exploit 128 MiB on v5e/v6e.
    try:
        cap = int(pltpu.get_tpu_info().vmem_capacity_bytes)
        return min((cap * 3) // 4, 112 * 1024 * 1024)
    except Exception:
        return 48 * 1024 * 1024


_VMEM_LIMIT = _vmem_limit_bytes()


def _pick_tile(n, max_tile=256):
    t = max_tile
    while t >= 128:
        if n >= t and n % t == 0:
            return t
        t //= 2
    return n


# ----------------------------------------------------------------------------- kernels

def _head_proj_rope_kernel(x_ref, w_ref, b_ref, sin_ref, cos_ref, o_ref,
                           *, half, scale, n_rope, n_scale):
    # x: (1, ts, D) bf16 ; w: (1, D, dh) bf16 ; b: (1, 1, dh) f32 ; sin/cos: (ts, dh) f32
    # RoPE + 1/sqrt(dh) are fused here so the attention kernel gets pre-rotated bf16 Q/K.
    g = pl.program_id(0)
    y = jnp.dot(x_ref[0], w_ref[0], preferred_element_type=jnp.float32) + b_ref[0]
    # rotate_half == lane roll by dh/2 with the sign folded into a pre-signed sin table (XLU).
    y_rot = y * cos_ref[...] + pltpu.roll(y, half, axis=1) * sin_ref[...]
    rope_f = (g < n_rope).astype(jnp.float32)            # 1.0 for Q/K head groups, 0.0 for V
    scale_f = jnp.where(g < n_scale, jnp.float32(scale), jnp.float32(1.0))
    y = (y + rope_f * (y_rot - y)) * scale_f
    o_ref[0, 0] = y.astype(o_ref.dtype)


def _flash_attn_kernel(q_ref, k_ref, v_ref, pad_ref, o_ref, m_sc, l_sc, acc_sc,
                       *, causal, tq, tk):
    qi = pl.program_id(2)
    kv = pl.program_id(3)

    @pl.when(kv == 0)
    def _():
        m_sc[...] = jnp.full_like(m_sc, _NEG_INF)
        l_sc[...] = jnp.zeros_like(l_sc)
        acc_sc[...] = jnp.zeros_like(acc_sc)

    def compute():
        q = q_ref[0, 0]                                   # bf16, pre-rotated & pre-scaled
        k = k_ref[0, 0]
        s = jax.lax.dot_general(q, k, (((1,), (1,)), ((), ())),
                                preferred_element_type=jnp.float32)      # [tq, tk] f32
        valid = pad_ref[0] > 0.0                          # [1, tk] key-padding mask
        if causal:
            qpos = qi * tq + jax.lax.broadcasted_iota(jnp.int32, (tq, tk), 0)
            kpos = kv * tk + jax.lax.broadcasted_iota(jnp.int32, (tq, tk), 1)
            valid = jnp.logical_and(valid, kpos <= qpos)  # causal part built in-kernel
        s = jnp.where(valid, s, _NEG_INF)
        m_prev = m_sc[...]
        m_new = jnp.maximum(m_prev, jnp.max(s, axis=-1, keepdims=True))
        alpha = jnp.exp(m_prev - m_new)
        p = jnp.where(valid, jnp.exp(s - m_new), 0.0)     # masked positions contribute exactly 0
        l_sc[...] = alpha * l_sc[...] + jnp.sum(p, axis=-1, keepdims=True)
        acc_sc[...] = alpha * acc_sc[...] + jnp.dot(p.astype(jnp.bfloat16), v_ref[0, 0],
                                                    preferred_element_type=jnp.float32)
        m_sc[...] = m_new

    if causal:
        # Skip kv blocks that lie entirely above the diagonal for this query tile.
        pl.when(kv * tk <= qi * tq + (tq - 1))(compute)
    else:
        compute()

    @pl.when(kv == pl.num_programs(3) - 1)
    def _():
        l = l_sc[...]
        l_safe = jnp.where(l > 0.0, l, 1.0)               # fully-masked rows -> output 0
        o_ref[0] = (acc_sc[...] * pl.reciprocal(l_safe, approx=True)).astype(o_ref.dtype)


def _attn_out_res_ln_kernel(a_ref, wo_ref, bo_ref, res_ref, g_ref, beta_ref, o_ref):
    # full-K [tm, D] @ [D, D] matmul (all heads contracted at once) + residual + LayerNorm
    y = jnp.dot(a_ref[...], wo_ref[...], preferred_element_type=jnp.float32) + bo_ref[...]
    y = y + res_ref[...].astype(jnp.float32)
    mean = jnp.mean(y, axis=-1, keepdims=True)
    var = jnp.mean(jnp.square(y - mean), axis=-1, keepdims=True)
    yn = (y - mean) * jax.lax.rsqrt(var + 1e-5)
    o_ref[...] = (yn * g_ref[...] + beta_ref[...]).astype(o_ref.dtype)


def _ffn_res_ln_kernel(x_ref, w1_ref, b1_ref, w2_ref, b2_ref, g_ref, beta_ref, o_ref):
    x = x_ref[...]                                        # bf16 [tm, D]
    h = jnp.dot(x, w1_ref[...], preferred_element_type=jnp.float32) + b1_ref[...]
    h = jnp.maximum(h, 0.0).astype(jnp.bfloat16)
    y = jnp.dot(h, w2_ref[...], preferred_element_type=jnp.float32) + b2_ref[...]
    y = y + x.astype(jnp.float32)                         # residual
    mean = jnp.mean(y, axis=-1, keepdims=True)
    var = jnp.mean(jnp.square(y - mean), axis=-1, keepdims=True)
    yn = (y - mean) * jax.lax.rsqrt(var + 1e-5)
    o_ref[...] = (yn * g_ref[...] + beta_ref[...]).astype(o_ref.dtype)


def _logits_kernel(x_ref, e_ref, o_ref):
    # x @ E.T via contraction on D; embedding table is already bf16 (cast once outside).
    o_ref[...] = jax.lax.dot_general(x_ref[...], e_ref[...], (((1,), (1,)), ((), ())),
                                     preferred_element_type=jnp.float32)


# ----------------------------------------------------------------------------- wrappers

def head_proj_rope(x, w, b, sin, cos, *, n_rope, n_scale, scale):
    """x: [B,S,D] bf16 ; w: [G,D,dh] bf16 ; b: [G,1,dh] f32 ; sin/cos: [S,dh] f32
    -> [B,G,S,dh] bf16.  Head groups [0, n_rope) get RoPE, [0, n_scale) also get *scale."""
    B, S, D = x.shape
    G, _, dh = w.shape
    ts = _pick_tile(S)
    return pl.pallas_call(
        partial(_head_proj_rope_kernel, half=dh // 2, scale=scale,
                n_rope=n_rope, n_scale=n_scale),
        out_shape=jax.ShapeDtypeStruct((B, G, S, dh), jnp.bfloat16),
        grid=(G, B, S // ts),          # weight index constant over inner axes: fetched G times
        in_specs=[
            pl.BlockSpec((1, ts, D), lambda g, b_, si: (b_, si, 0)),
            pl.BlockSpec((1, D, dh), lambda g, b_, si: (g, 0, 0)),
            pl.BlockSpec((1, 1, dh), lambda g, b_, si: (g, 0, 0)),
            pl.BlockSpec((ts, dh), lambda g, b_, si: (si, 0)),
            pl.BlockSpec((ts, dh), lambda g, b_, si: (si, 0)),
        ],
        out_specs=pl.BlockSpec((1, 1, ts, dh), lambda g, b_, si: (b_, g, si, 0)),
        compiler_params=pltpu.CompilerParams(
            dimension_semantics=("parallel", "parallel", "parallel"),
            vmem_limit_bytes=_VMEM_LIMIT),
    )(x, w, b, sin, cos)


def flash_attention(q_arr, k_arr, v_arr, q_off, k_off, v_off, pad_mask, num_heads, causal):
    """q_arr: [B,Gq,Sq,dh]; k/v_arr: [B,Gkv,Sk,dh]; pad_mask: [B,1,Sk] key padding.
    Returns [B, Sq, H*dh] with each head written to a lane-contiguous column slab."""
    B, _, Sq, dh = q_arr.shape
    Sk = k_arr.shape[2]
    tq = _pick_tile(Sq)
    tk = _pick_tile(Sk)
    D = num_heads * dh
    return pl.pallas_call(
        partial(_flash_attn_kernel, causal=causal, tq=tq, tk=tk),
        out_shape=jax.ShapeDtypeStruct((B, Sq, D), jnp.bfloat16),
        grid=(B, num_heads, Sq // tq, Sk // tk),
        in_specs=[
            pl.BlockSpec((1, 1, tq, dh), lambda b, h, qi, kv: (b, q_off + h, qi, 0)),
            pl.BlockSpec((1, 1, tk, dh), lambda b, h, qi, kv: (b, k_off + h, kv, 0)),
            pl.BlockSpec((1, 1, tk, dh), lambda b, h, qi, kv: (b, v_off + h, kv, 0)),
            pl.BlockSpec((1, 1, tk), lambda b, h, qi, kv: (b, 0, kv)),
        ],
        out_specs=pl.BlockSpec((1, tq, dh), lambda b, h, qi, kv: (b, qi, h)),
        scratch_shapes=[
            pltpu.VMEM((tq, 1), jnp.float32),     # running max
            pltpu.VMEM((tq, 1), jnp.float32),     # running sum
            pltpu.VMEM((tq, dh), jnp.float32),    # output accumulator
        ],
        compiler_params=pltpu.CompilerParams(
            dimension_semantics=("parallel", "parallel", "parallel", "arbitrary"),
            vmem_limit_bytes=_VMEM_LIMIT),
    )(q_arr, k_arr, v_arr, pad_mask)


def attn_out_res_ln(a, wo, bo, residual, gamma, beta):
    """a: [B,S,D] bf16 (concatenated heads); wo: [D,D] bf16 -> LN(res + a@wo + bo)."""
    # TODO(synk): add a K-tile grid axis with an f32 accumulator for very large D.
    B, S, D = a.shape
    M = B * S
    tm = _pick_tile(M)
    out = pl.pallas_call(
        _attn_out_res_ln_kernel,
        out_shape=jax.ShapeDtypeStruct((M, D), jnp.bfloat16),
        grid=(M // tm,),
        in_specs=[
            pl.BlockSpec((tm, D), lambda i: (i, 0)),
            pl.BlockSpec((D, D), lambda i: (0, 0)),
            pl.BlockSpec((1, D), lambda i: (0, 0)),
            pl.BlockSpec((tm, D), lambda i: (i, 0)),
            pl.BlockSpec((1, D), lambda i: (0, 0)),
            pl.BlockSpec((1, D), lambda i: (0, 0)),
        ],
        out_specs=pl.BlockSpec((tm, D), lambda i: (i, 0)),
        compiler_params=pltpu.CompilerParams(
            dimension_semantics=("parallel",),
            vmem_limit_bytes=_VMEM_LIMIT),
    )(a.reshape(M, D), wo, bo, residual.reshape(M, D), gamma, beta)
    return out.reshape(B, S, D)


def ffn_res_ln(x, w1, b1, w2, b2, gamma, beta):
    B, S, D = x.shape
    M = B * S
    H4 = w1.shape[1]
    tm = _pick_tile(M)      # capped at 256: bounds the [tm,4D] f32 ReLU intermediate on v7x
    # TODO(synk): on v7x, pipeline_mode=pl.Buffered(1) on the constant-index weight specs would
    # halve their resident VMEM; omitted here for portability.
    out = pl.pallas_call(
        _ffn_res_ln_kernel,
        out_shape=jax.ShapeDtypeStruct((M, D), jnp.bfloat16),
        grid=(M // tm,),
        in_specs=[
            pl.BlockSpec((tm, D), lambda i: (i, 0)),
            pl.BlockSpec((D, H4), lambda i: (0, 0)),
            pl.BlockSpec((1, H4), lambda i: (0, 0)),
            pl.BlockSpec((H4, D), lambda i: (0, 0)),
            pl.BlockSpec((1, D), lambda i: (0, 0)),
            pl.BlockSpec((1, D), lambda i: (0, 0)),
            pl.BlockSpec((1, D), lambda i: (0, 0)),
        ],
        out_specs=pl.BlockSpec((tm, D), lambda i: (i, 0)),
        compiler_params=pltpu.CompilerParams(
            dimension_semantics=("parallel",),
            vmem_limit_bytes=_VMEM_LIMIT),
    )(x.reshape(M, D), w1, b1, w2, b2, gamma, beta)
    return out.reshape(B, S, D)


def logits_proj(y, emb_bf16):
    """y: [B,S,D] bf16; emb_bf16: [V,D] bf16 -> logits [B,S,V] f32."""
    B, S, D = y.shape
    V = emb_bf16.shape[0]
    M = B * S
    tm, tv = _pick_tile(M), _pick_tile(V)
    out = pl.pallas_call(
        _logits_kernel,
        out_shape=jax.ShapeDtypeStruct((M, V), jnp.float32),
        grid=(V // tv, M // tm),        # vocab outer: the big table is streamed exactly once
        in_specs=[
            pl.BlockSpec((tm, D), lambda j, i: (i, 0)),
            pl.BlockSpec((tv, D), lambda j, i: (j, 0)),
        ],
        out_specs=pl.BlockSpec((tm, tv), lambda j, i: (i, j)),
        compiler_params=pltpu.CompilerParams(
            dimension_semantics=("parallel", "parallel"),
            vmem_limit_bytes=_VMEM_LIMIT),
    )(y.reshape(M, D), emb_bf16)
    return out.reshape(B, S, V)


# ----------------------------------------------------------------------------- model glue

def rotary_tables(max_len, dh):
    """Returns (sin_signed, cos): sin is pre-signed so rotate_half == lane-roll by dh/2."""
    half = dh // 2
    inv_freq = 1.0 / (10000.0 ** (jnp.arange(0, half, dtype=jnp.float32) * 2.0 / dh))
    t = jnp.arange(max_len, dtype=jnp.float32)
    freqs = t[:, None] * inv_freq[None, :]                      # [S, dh/2]
    sin, cos = jnp.sin(freqs), jnp.cos(freqs)
    return jnp.concatenate([-sin, sin], -1), jnp.concatenate([cos, cos], -1)   # [S, dh]


def _init_head_stack(key, n_stack, d_model, dh):
    w = (jax.random.normal(key, (n_stack, d_model, dh), jnp.float32) * 0.02).astype(jnp.bfloat16)
    return w, jnp.zeros((n_stack, 1, dh), jnp.float32)


def _init_out_proj(key, d_model):
    w = (jax.random.normal(key, (d_model, d_model), jnp.float32) * 0.02).astype(jnp.bfloat16)
    return w, jnp.zeros((1, d_model), jnp.float32)


def _init_self_attn(key, dim, num_heads):
    dh = dim // num_heads
    k1, k2 = jax.random.split(key)
    wqkv, bqkv = _init_head_stack(k1, 3 * num_heads, dim, dh)
    wo, bo = _init_out_proj(k2, dim)
    return {"wqkv": wqkv, "bqkv": bqkv, "wo": wo, "bo": bo}


def _init_cross_attn(key, dim, num_heads):
    dh = dim // num_heads
    k1, k2, k3 = jax.random.split(key, 3)
    wq, bq = _init_head_stack(k1, num_heads, dim, dh)
    wkv, bkv = _init_head_stack(k2, 2 * num_heads, dim, dh)
    wo, bo = _init_out_proj(k3, dim)
    return {"wq": wq, "bq": bq, "wkv": wkv, "bkv": bkv, "wo": wo, "bo": bo}


def _init_ffn(key, dim, hidden):
    k1, k2 = jax.random.split(key)
    w1 = (jax.random.normal(k1, (dim, hidden), jnp.float32) * 0.02).astype(jnp.bfloat16)
    w2 = (jax.random.normal(k2, (hidden, dim), jnp.float32) * 0.02).astype(jnp.bfloat16)
    return w1, jnp.zeros((1, hidden), jnp.float32), w2, jnp.zeros((1, dim), jnp.float32)


def _ln_params(dim):
    return jnp.ones((1, dim), jnp.float32), jnp.zeros((1, dim), jnp.float32)


def init_params(key, vocab_size, dim, num_heads, num_layers):
    hidden = 4 * dim
    n_enc, n_dec = num_layers
    keys = jax.random.split(key, 1 + n_enc + n_dec)
    params = {"embedding": jax.random.normal(keys[0], (vocab_size, dim), jnp.float32) * 0.02}

    enc_layers = []
    for i in range(n_enc):
        k1, k2 = jax.random.split(keys[1 + i])
        p = {"self": _init_self_attn(k1, dim, num_heads)}
        p["w1"], p["b1"], p["w2"], p["b2"] = _init_ffn(k2, dim, hidden)
        p["ln1_g"], p["ln1_b"] = _ln_params(dim)
        p["ln2_g"], p["ln2_b"] = _ln_params(dim)
        enc_layers.append(p)
    params["encoder"] = enc_layers

    dec_layers = []
    for i in range(n_dec):
        k1, k2, k3 = jax.random.split(keys[1 + n_enc + i], 3)
        p = {"self": _init_self_attn(k1, dim, num_heads),
             "cross": _init_cross_attn(k2, dim, num_heads)}
        p["w1"], p["b1"], p["w2"], p["b2"] = _init_ffn(k3, dim, hidden)
        p["ln1_g"], p["ln1_b"] = _ln_params(dim)
        p["ln2_g"], p["ln2_b"] = _ln_params(dim)
        p["ln3_g"], p["ln3_b"] = _ln_params(dim)
        dec_layers.append(p)
    params["decoder"] = dec_layers
    return params


def self_attention_block(x, ap, pad_mask, sin, cos, ln_g, ln_b, num_heads, causal):
    dh = ap["wqkv"].shape[2]
    qkv = head_proj_rope(x, ap["wqkv"], ap["bqkv"], sin, cos,
                         n_rope=2 * num_heads, n_scale=num_heads,
                         scale=1.0 / math.sqrt(dh))                      # [B, 3H, S, dh]
    a = flash_attention(qkv, qkv, qkv, 0, num_heads, 2 * num_heads,
                        pad_mask, num_heads, causal)                     # [B, S, D]
    return attn_out_res_ln(a, ap["wo"], ap["bo"], x, ln_g, ln_b)


def cross_attention_block(y, enc, ap, pad_mask, sin_t, cos_t, sin_s, cos_s,
                          ln_g, ln_b, num_heads):
    dh = ap["wq"].shape[2]
    q = head_proj_rope(y, ap["wq"], ap["bq"], sin_t, cos_t,
                       n_rope=num_heads, n_scale=num_heads,
                       scale=1.0 / math.sqrt(dh))                        # [B, H, St, dh]
    kv = head_proj_rope(enc, ap["wkv"], ap["bkv"], sin_s, cos_s,
                        n_rope=num_heads, n_scale=0, scale=1.0)          # [B, 2H, Ss, dh]
    a = flash_attention(q, kv, kv, 0, 0, num_heads, pad_mask, num_heads, causal=False)
    return attn_out_res_ln(a, ap["wo"], ap["bo"], y, ln_g, ln_b)


def encoder_layer(x, p, enc_pad, sin, cos, num_heads):
    x = self_attention_block(x, p["self"], enc_pad, sin, cos,
                             p["ln1_g"], p["ln1_b"], num_heads, causal=False)
    return ffn_res_ln(x, p["w1"], p["b1"], p["w2"], p["b2"], p["ln2_g"], p["ln2_b"])


def decoder_layer(y, enc, p, tgt_pad, cross_pad, sin_t, cos_t, sin_s, cos_s, num_heads):
    y = self_attention_block(y, p["self"], tgt_pad, sin_t, cos_t,
                             p["ln1_g"], p["ln1_b"], num_heads, causal=True)
    y = cross_attention_block(y, enc, p["cross"], cross_pad, sin_t, cos_t, sin_s, cos_s,
                              p["ln2_g"], p["ln2_b"], num_heads)
    return ffn_res_ln(y, p["w1"], p["b1"], p["w2"], p["b2"], p["ln3_g"], p["ln3_b"])


def forward_train(params, source_ids, source_mask, target_ids, target_mask, *, num_heads, dim):
    """Mirror of MTRotary.forward_train, returning logits [B, St, vocab] (f32).
    source_mask/target_mask are per-token padding masks [B, S]; the causal structure of the
    decoder self-attention mask is generated in-kernel (no [B, St, St] mask is streamed)."""
    B, Ss = source_ids.shape
    St = target_ids.shape[1]
    dh = dim // num_heads
    emb_scale = math.sqrt(dim)

    # TODO(synk): token-id embedding gather is left to XLA (no clean dense-Pallas equivalent).
    src = (params["embedding"][source_ids] * emb_scale).astype(jnp.bfloat16)
    tgt = (params["embedding"][target_ids] * emb_scale).astype(jnp.bfloat16)

    sin, cos = rotary_tables(max(Ss, St), dh)            # positional_encoder.forward(max_seq_len)
    sin_s, cos_s = sin[:Ss], cos[:Ss]
    sin_t, cos_t = sin[:St], cos[:St]

    enc_pad = source_mask.astype(jnp.float32).reshape(B, 1, Ss)
    tgt_pad = target_mask.astype(jnp.float32).reshape(B, 1, St)

    x = src
    for p in params["encoder"]:
        x = encoder_layer(x, p, enc_pad, sin_s, cos_s, num_heads)
    enc = x

    y = tgt
    for p in params["decoder"]:
        y = decoder_layer(y, enc, p, tgt_pad, enc_pad, sin_t, cos_t, sin_s, cos_s, num_heads)

    emb_bf16 = params["embedding"].astype(jnp.bfloat16)  # cast once; halves table HBM reads
    return logits_proj(y, emb_bf16)                      # embedding.invert()

# TODO(synk): Base.get_loss (label-smoothed CE) and forward_dev beam search are host-side
# control flow / unavailable source; only forward_train's tensor path is kernelized.


if __name__ == "__main__":
    vocab_size, dim, num_heads, num_layers = 128, 256, 2, (2, 2)   # head_dim = 128 (lane-aligned)
    B, Ss, St = 2, 16, 16

    key = jax.random.PRNGKey(0)
    kp, ks, kt = jax.random.split(key, 3)
    params = init_params(kp, vocab_size, dim, num_heads, num_layers)

    source_ids = jax.random.randint(ks, (B, Ss), 0, vocab_size)
    target_ids = jax.random.randint(kt, (B, St), 0, vocab_size)
    source_mask = jnp.ones((B, Ss), jnp.float32)   # key-padding mask (1 = valid)
    target_mask = jnp.ones((B, St), jnp.float32)   # target padding; causal part built in-kernel

    fwd = jax.jit(partial(forward_train, num_heads=num_heads, dim=dim))
    logits = fwd(params, source_ids, source_mask, target_ids, target_mask)
    jax.block_until_ready(logits)

    assert logits.shape == (B, St, vocab_size)
    assert bool(jnp.all(jnp.isfinite(logits)))
    print("KERNEL_OK")
</pallas_src>

<mosaic_0001>
module attributes {stable_mosaic.version = 11 : i64} {
  func.func @_attn_out_res_ln_kernel(%arg0: i32, %arg1: memref<32x256xbf16, #tpu.memory_space<vmem>>, %arg2: memref<256x256xbf16, #tpu.memory_space<vmem>>, %arg3: memref<1x256xf32, #tpu.memory_space<vmem>>, %arg4: memref<32x256xbf16, #tpu.memory_space<vmem>>, %arg5: memref<1x256xf32, #tpu.memory_space<vmem>>, %arg6: memref<1x256xf32, #tpu.memory_space<vmem>>, %arg7: memref<32x256xbf16, #tpu.memory_space<vmem>>) attributes {dimension_semantics = [#tpu.dimension_semantics<parallel>], iteration_bounds = array<i64: 1>, scalar_prefetch = 0 : i64, scratch_operands = 0 : i64, tpu.core_type = #tpu.core_type<tc>, window_params = [{transform_indices = @transform_0, window_bounds = array<i64: 32, 256>}, {pipeline_mode = #tpu.pipeline_mode<synchronous>, transform_indices = @transform_1, window_bounds = array<i64: 256, 256>}, {pipeline_mode = #tpu.pipeline_mode<synchronous>, transform_indices = @transform_2, window_bounds = array<i64: 1, 256>}, {transform_indices = @transform_3, window_bounds = array<i64: 32, 256>}, {pipeline_mode = #tpu.pipeline_mode<synchronous>, transform_indices = @transform_4, window_bounds = array<i64: 1, 256>}, {pipeline_mode = #tpu.pipeline_mode<synchronous>, transform_indices = @transform_5, window_bounds = array<i64: 1, 256>}, {transform_indices = @transform_6, window_bounds = array<i64: 32, 256>}]} {
    %c0 = arith.constant 0 : index
    %c0_0 = arith.constant 0 : index
    %0 = vector.load %arg1[%c0, %c0_0] : memref<32x256xbf16, #tpu.memory_space<vmem>>, vector<32x256xbf16>
    %c0_1 = arith.constant 0 : index
    %c0_2 = arith.constant 0 : index
    %1 = vector.load %arg2[%c0_1, %c0_2] : memref<256x256xbf16, #tpu.memory_space<vmem>>, vector<256x256xbf16>
    %cst = arith.constant dense<0.000000e+00> : vector<32x256xf32>
    %2 = tpu.matmul %0, %1, %cst {dimension_numbers = #tpu.dot_dimension_numbers<[1], [0], [0], [1], [0, 0, 1, 1], [], []>} : vector<32x256xbf16>, vector<256x256xbf16>, vector<32x256xf32> -> vector<32x256xf32>
    %c0_3 = arith.constant 0 : index
    %c0_4 = arith.constant 0 : index
    %3 = vector.load %arg3[%c0_3, %c0_4] : memref<1x256xf32, #tpu.memory_space<vmem>>, vector<1x256xf32>
    %4 = vector.broadcast %3 : vector<1x256xf32> to vector<32x256xf32>
    %5 = arith.addf %2, %4 : vector<32x256xf32>
    %c0_5 = arith.constant 0 : index
    %c0_6 = arith.constant 0 : index
    %6 = vector.load %arg4[%c0_5, %c0_6] : memref<32x256xbf16, #tpu.memory_space<vmem>>, vector<32x256xbf16>
    %7 = arith.extf %6 : vector<32x256xbf16> to vector<32x256xf32>
    %8 = arith.addf %5, %7 : vector<32x256xf32>
    %cst_7 = arith.constant dense<0.000000e+00> : vector<32xf32>
    %9 = vector.multi_reduction <add>, %8, %cst_7 [1] : vector<32x256xf32> to vector<32xf32>
    %10 = vector.shape_cast %9 : vector<32xf32> to vector<32x1xf32>
    %cst_8 = arith.constant 2.560000e+02 : f32
    %11 = vector.broadcast %cst_8 : f32 to vector<32x1xf32>
    %12 = arith.divf %10, %11 : vector<32x1xf32>
    %13 = vector.broadcast %12 : vector<32x1xf32> to vector<32x256xf32>
    %14 = arith.subf %8, %13 : vector<32x256xf32>
    %15 = arith.mulf %14, %14 : vector<32x256xf32>
    %cst_9 = arith.constant dense<0.000000e+00> : vector<32xf32>
    %16 = vector.multi_reduction <add>, %15, %cst_9 [1] : vector<32x256xf32> to vector<32xf32>
    %17 = vector.shape_cast %16 : vector<32xf32> to vector<32x1xf32>
    %cst_10 = arith.constant 2.560000e+02 : f32
    %18 = vector.broadcast %cst_10 : f32 to vector<32x1xf32>
    %19 = arith.divf %17, %18 : vector<32x1xf32>
    %20 = vector.broadcast %12 : vector<32x1xf32> to vector<32x256xf32>
    %21 = arith.subf %8, %20 : vector<32x256xf32>
    %cst_11 = arith.constant 9.99999974E-6 : f32
    %22 = vector.broadcast %cst_11 : f32 to vector<32x1xf32>
    %23 = arith.addf %19, %22 : vector<32x1xf32>
    %24 = math.rsqrt %23 : vector<32x1xf32>
    %25 = vector.broadcast %24 : vector<32x1xf32> to vector<32x256xf32>
    %26 = arith.mulf %21, %25 : vector<32x256xf32>
    %c0_12 = arith.constant 0 : index
    %c0_13 = arith.constant 0 : index
    %27 = vector.load %arg5[%c0_12, %c0_13] : memref<1x256xf32, #tpu.memory_space<vmem>>, vector<1x256xf32>
    %28 = vector.broadcast %27 : vector<1x256xf32> to vector<32x256xf32>
    %29 = arith.mulf %26, %28 : vector<32x256xf32>
    %c0_14 = arith.constant 0 : index
    %c0_15 = arith.constant 0 : index
    %30 = vector.load %arg6[%c0_14, %c0_15] : memref<1x256xf32, #tpu.memory_space<vmem>>, vector<1x256xf32>
    %31 = vector.broadcast %30 : vector<1x256xf32> to vector<32x256xf32>
    %32 = arith.addf %29, %31 : vector<32x256xf32>
    %33 = arith.truncf %32 : vector<32x256xf32> to vector<32x256xbf16>
    %c0_16 = arith.constant 0 : index
    %c0_17 = arith.constant 0 : index
    %34 = vector.load %arg7[%c0_16, %c0_17] : memref<32x256xbf16, #tpu.memory_space<vmem>>, vector<32x256xbf16>
    tpu.vector_store %arg7[%c0_16, %c0_17], %33 {strides = array<i32>} : memref<32x256xbf16, #tpu.memory_space<vmem>>, vector<32x256xbf16>,
    return
  }
  func.func @transform_0(%arg0: i32) -> (i32, i32) {
    %c0_i32 = arith.constant 0 : i32
    %c0_i32_0 = arith.constant 0 : i32
    return %arg0, %c0_i32 : i32, i32
  }
  func.func @transform_1(%arg0: i32) -> (i32, i32) {
    %c0_i32 = arith.constant 0 : i32
    %c0_i32_0 = arith.constant 0 : i32
    %c0_i32_1 = arith.constant 0 : i32
    return %c0_i32, %c0_i32_0 : i32, i32
  }
  func.func @transform_2(%arg0: i32) -> (i32, i32) {
    %c0_i32 = arith.constant 0 : i32
    %c0_i32_0 = arith.constant 0 : i32
    %c0_i32_1 = arith.constant 0 : i32
    return %c0_i32, %c0_i32_0 : i32, i32
  }
  func.func @transform_3(%arg0: i32) -> (i32, i32) {
    %c0_i32 = arith.constant 0 : i32
    %c0_i32_0 = arith.constant 0 : i32
    return %arg0, %c0_i32 : i32, i32
  }
  func.func @transform_4(%arg0: i32) -> (i32, i32) {
    %c0_i32 = arith.constant 0 : i32
    %c0_i32_0 = arith.constant 0 : i32
    %c0_i32_1 = arith.constant 0 : i32
    return %c0_i32, %c0_i32_0 : i32, i32
  }
  func.func @transform_5(%arg0: i32) -> (i32, i32) {
    %c0_i32 = arith.constant 0 : i32
    %c0_i32_0 = arith.constant 0 : i32
    %c0_i32_1 = arith.constant 0 : i32
    return %c0_i32, %c0_i32_0 : i32, i32
  }
  func.func @transform_6(%arg0: i32) -> (i32, i32) {
    %c0_i32 = arith.constant 0 : i32
    %c0_i32_0 = arith.constant 0 : i32
    return %arg0, %c0_i32 : i32, i32
  }
}

module attributes {stable_mosaic.version = 11 : i64} {
  func.func @_flash_attn_kernel(%arg0: i32, %arg1: i32, %arg2: i32, %arg3: i32, %arg4: memref<1x1x16x128xbf16, #tpu.memory_space<vmem>>, %arg5: memref<1x1x16x128xbf16, #tpu.memory_space<vmem>>, %arg6: memref<1x1x16x128xbf16, #tpu.memory_space<vmem>>, %arg7: memref<1x1x16xf32, #tpu.memory_space<vmem>>, %arg8: memref<1x16x128xbf16, #tpu.memory_space<vmem>>, %arg9: memref<16x1xf32, #tpu.memory_space<vmem>>, %arg10: memref<16x1xf32, #tpu.memory_space<vmem>>, %arg11: memref<16x128xf32, #tpu.memory_space<vmem>>) attributes {dimension_semantics = [#tpu.dimension_semantics<parallel>, #tpu.dimension_semantics<parallel>, #tpu.dimension_semantics<parallel>, #tpu.dimension_semantics<arbitrary>], iteration_bounds = array<i64: 2, 2, 1, 1>, scalar_prefetch = 0 : i64, scratch_operands = 3 : i64, tpu.core_type = #tpu.core_type<tc>, window_params = [{transform_indices = @transform_0, window_bounds = array<i64: 1, 1, 16, 128>}, {transform_indices = @transform_1, window_bounds = array<i64: 1, 1, 16, 128>}, {transform_indices = @transform_2, window_bounds = array<i64: 1, 1, 16, 128>}, {transform_indices = @transform_3, window_bounds = array<i64: 1, 1, 16>}, {transform_indices = @transform_4, window_bounds = array<i64: 1, 16, 128>}]} {
    %c0_i32 = arith.constant 0 : i32
    %0 = arith.cmpi eq, %arg3, %c0_i32 : i32
    %1 = arith.extui %0 : i1 to i32
    %c0_i32_0 = arith.constant 0 : i32
    %2 = arith.cmpi ne, %1, %c0_i32_0 : i32
    scf.if %2 {
      %cst = arith.constant -1.000000e+30 : f32
      %12 = vector.broadcast %cst : f32 to vector<16x1xf32>
      %c0 = arith.constant 0 : index
      %c0_5 = arith.constant 0 : index
      %13 = vector.load %arg9[%c0, %c0_5] : memref<16x1xf32, #tpu.memory_space<vmem>>, vector<16x1xf32>
      tpu.vector_store %arg9[%c0, %c0_5], %12 {strides = array<i32>} : memref<16x1xf32, #tpu.memory_space<vmem>>, vector<16x1xf32>,
      %cst_6 = arith.constant 0.000000e+00 : f32
      %14 = vector.broadcast %cst_6 : f32 to vector<16x1xf32>
      %c0_7 = arith.constant 0 : index
      %c0_8 = arith.constant 0 : index
      %15 = vector.load %arg10[%c0_7, %c0_8] : memref<16x1xf32, #tpu.memory_space<vmem>>, vector<16x1xf32>
      tpu.vector_store %arg10[%c0_7, %c0_8], %14 {strides = array<i32>} : memref<16x1xf32, #tpu.memory_space<vmem>>, vector<16x1xf32>,
      %cst_9 = arith.constant 0.000000e+00 : f32
      %16 = vector.broadcast %cst_9 : f32 to vector<16x128xf32>
      %c0_10 = arith.constant 0 : index
      %c0_11 = arith.constant 0 : index
      %17 = vector.load %arg11[%c0_10, %c0_11] : memref<16x128xf32, #tpu.memory_space<vmem>>, vector<16x128xf32>
      tpu.vector_store %arg11[%c0_10, %c0_11], %16 {strides = array<i32>} : memref<16x128xf32, #tpu.memory_space<vmem>>, vector<16x128xf32>,
    } else {
    }
    %c16_i32 = arith.constant 16 : i32
    %3 = arith.muli %arg3, %c16_i32 : i32
    %c16_i32_1 = arith.constant 16 : i32
    %4 = arith.muli %arg2, %c16_i32_1 : i32
    %c15_i32 = arith.constant 15 : i32
    %5 = arith.addi %4, %c15_i32 : i32
    %6 = arith.cmpi sle, %3, %5 : i32
    %7 = arith.extui %6 : i1 to i32
    %c0_i32_2 = arith.constant 0 : i32
    %8 = arith.cmpi ne, %7, %c0_i32_2 : i32
    scf.if %8 {
      %c0 = arith.constant 0 : index
      %c0_5 = arith.constant 0 : index
      %c0_6 = arith.constant 0 : index
      %c0_7 = arith.constant 0 : index
      %12 = vector.load %arg4[%c0, %c0_5, %c0_6, %c0_7] : memref<1x1x16x128xbf16, #tpu.memory_space<vmem>>, vector<1x1x16x128xbf16>
      %13 = vector.shape_cast %12 : vector<1x1x16x128xbf16> to vector<16x128xbf16>
      %c0_8 = arith.constant 0 : index
      %c0_9 = arith.constant 0 : index
      %c0_10 = arith.constant 0 : index
      %c0_11 = arith.constant 0 : index
      %14 = vector.load %arg5[%c0_8, %c0_9, %c0_10, %c0_11] : memref<1x1x16x128xbf16, #tpu.memory_space<vmem>>, vector<1x1x16x128xbf16>
      %15 = vector.shape_cast %14 : vector<1x1x16x128xbf16> to vector<16x128xbf16>
      %cst = arith.constant dense<0.000000e+00> : vector<16x16xf32>
      %16 = tpu.matmul %13, %15, %cst {dimension_numbers = #tpu.dot_dimension_numbers<[1], [1], [0], [0], [0, 0, 1, 0], [], []>} : vector<16x128xbf16>, vector<16x128xbf16>, vector<16x16xf32> -> vector<16x16xf32>
      %c0_12 = arith.constant 0 : index
      %c0_13 = arith.constant 0 : index
      %c0_14 = arith.constant 0 : index
      %17 = vector.load %arg7[%c0_12, %c0_13, %c0_14] : memref<1x1x16xf32, #tpu.memory_space<vmem>>, vector<1x1x16xf32>
      %18 = vector.shape_cast %17 : vector<1x1x16xf32> to vector<1x16xf32>
      %cst_15 = arith.constant 0.000000e+00 : f32
      %19 = vector.broadcast %cst_15 : f32 to vector<1x16xf32>
      %20 = arith.cmpf ogt, %18, %19 : vector<1x16xf32>
      %c16_i32_16 = arith.constant 16 : i32
      %21 = arith.muli %arg2, %c16_i32_16 : i32
      %22 = tpu.iota {dimensions = array<i32: 0>} : vector<16x16xi32>
      %23 = vector.broadcast %21 : i32 to vector<16x16xi32>
      %24 = arith.addi %23, %22 : vector<16x16xi32>
      %c16_i32_17 = arith.constant 16 : i32
      %25 = arith.muli %arg3, %c16_i32_17 : i32
      %26 = tpu.iota {dimensions = array<i32: 1>} : vector<16x16xi32>
      %27 = vector.broadcast %25 : i32 to vector<16x16xi32>
      %28 = arith.addi %27, %26 : vector<16x16xi32>
      %29 = arith.cmpi sle, %28, %24 : vector<16x16xi32>
      %30 = vector.broadcast %20 : vector<1x16xi1> to vector<16x16xi1>
      %31 = arith.andi %30, %29 : vector<16x16xi1>
      %cst_18 = arith.constant -1.000000e+30 : f32
      %32 = vector.broadcast %cst_18 : f32 to vector<16x16xf32>
      %33 = arith.select %31, %16, %32 : vector<16x16xi1>, vector<16x16xf32>
      %c0_19 = arith.constant 0 : index
      %c0_20 = arith.constant 0 : index
      %34 = vector.load %arg9[%c0_19, %c0_20] : memref<16x1xf32, #tpu.memory_space<vmem>>, vector<16x1xf32>
      %cst_21 = arith.constant dense<0xFF800000> : vector<16xf32>
      %35 = vector.multi_reduction <maximumf>, %33, %cst_21 [1] : vector<16x16xf32> to vector<16xf32>
      %36 = vector.shape_cast %35 : vector<16xf32> to vector<16x1xf32>
      %37 = arith.maximumf %34, %36 : vector<16x1xf32>
      %38 = arith.subf %34, %37 : vector<16x1xf32>
      %39 = math.exp %38 : vector<16x1xf32>
      %40 = vector.broadcast %37 : vector<16x1xf32> to vector<16x16xf32>
      %41 = arith.subf %33, %40 : vector<16x16xf32>
      %42 = math.exp %41 : vector<16x16xf32>
      %cst_22 = arith.constant 0.000000e+00 : f32
      %43 = vector.broadcast %cst_22 : f32 to vector<16x16xf32>
      %44 = arith.select %31, %42, %43 : vector<16x16xi1>, vector<16x16xf32>
      %c0_23 = arith.constant 0 : index
      %c0_24 = arith.constant 0 : index
      %45 = vector.load %arg10[%c0_23, %c0_24] : memref<16x1xf32, #tpu.memory_space<vmem>>, vector<16x1xf32>
      %46 = arith.mulf %39, %45 : vector<16x1xf32>
      %cst_25 = arith.constant dense<0.000000e+00> : vector<16xf32>
      %47 = vector.multi_reduction <add>, %44, %cst_25 [1] : vector<16x16xf32> to vector<16xf32>
      %48 = vector.shape_cast %47 : vector<16xf32> to vector<16x1xf32>
      %49 = arith.addf %46, %48 : vector<16x1xf32>
      %c0_26 = arith.constant 0 : index
      %c0_27 = arith.constant 0 : index
      %50 = vector.load %arg10[%c0_26, %c0_27] : memref<16x1xf32, #tpu.memory_space<vmem>>, vector<16x1xf32>
      tpu.vector_store %arg10[%c0_26, %c0_27], %49 {strides = array<i32>} : memref<16x1xf32, #tpu.memory_space<vmem>>, vector<16x1xf32>,
      %c0_28 = arith.constant 0 : index
      %c0_29 = arith.constant 0 : index
      %51 = vector.load %arg11[%c0_28, %c0_29] : memref<16x128xf32, #tpu.memory_space<vmem>>, vector<16x128xf32>
      %52 = vector.broadcast %39 : vector<16x1xf32> to vector<16x128xf32>
      %53 = arith.mulf %52, %51 : vector<16x128xf32>
      %54 = arith.truncf %44 : vector<16x16xf32> to vector<16x16xbf16>
      %c0_30 = arith.constant 0 : index
      %c0_31 = arith.constant 0 : index
      %c0_32 = arith.constant 0 : index
      %c0_33 = arith.constant 0 : index
      %55 = vector.load %arg6[%c0_30, %c0_31, %c0_32, %c0_33] : memref<1x1x16x128xbf16, #tpu.memory_space<vmem>>, vector<1x1x16x128xbf16>
      %56 = vector.shape_cast %55 : vector<1x1x16x128xbf16> to vector<16x128xbf16>
      %cst_34 = arith.constant dense<0.000000e+00> : vector<16x128xf32>
      %57 = tpu.matmul %54, %56, %cst_34 {dimension_numbers = #tpu.dot_dimension_numbers<[1], [0], [0], [1], [0, 0, 1, 1], [], []>} : vector<16x16xbf16>, vector<16x128xbf16>, vector<16x128xf32> -> vector<16x128xf32>
      %58 = arith.addf %53, %57 : vector<16x128xf32>
      %c0_35 = arith.constant 0 : index
      %c0_36 = arith.constant 0 : index
      %59 = vector.load %arg11[%c0_35, %c0_36] : memref<16x128xf32, #tpu.memory_space<vmem>>, vector<16x128xf32>
      tpu.vector_store %arg11[%c0_35, %c0_36], %58 {strides = array<i32>} : memref<16x128xf32, #tpu.memory_space<vmem>>, vector<16x128xf32>,
      %c0_37 = arith.constant 0 : index
      %c0_38 = arith.constant 0 : index
      %60 = vector.load %arg9[%c0_37, %c0_38] : memref<16x1xf32, #tpu.memory_space<vmem>>, vector<16x1xf32>
      tpu.vector_store %arg9[%c0_37, %c0_38], %37 {strides = array<i32>} : memref<16x1xf32, #tpu.memory_space<vmem>>, vector<16x1xf32>,
    } else {
    }
    %c0_i32_3 = arith.constant 0 : i32
    %9 = arith.cmpi eq, %arg3, %c0_i32_3 : i32
    %10 = arith.extui %9 : i1 to i32
    %c0_i32_4 = arith.constant 0 : i32
    %11 = arith.cmpi ne, %10, %c0_i32_4 : i32
    scf.if %11 {
      %c0 = arith.constant 0 : index
      %c0_5 = arith.constant 0 : index
      %12 = vector.load %arg10[%c0, %c0_5] : memref<16x1xf32, #tpu.memory_space<vmem>>, vector<16x1xf32>
      %cst = arith.constant 0.000000e+00 : f32
      %13 = vector.broadcast %cst : f32 to vector<16x1xf32>
      %14 = arith.cmpf ogt, %12, %13 : vector<16x1xf32>
      %cst_6 = arith.constant 1.000000e+00 : f32
      %15 = vector.broadcast %cst_6 : f32 to vector<16x1xf32>
      %16 = arith.select %14, %12, %15 : vector<16x1xi1>, vector<16x1xf32>
      %c0_7 = arith.constant 0 : index
      %c0_8 = arith.constant 0 : index
      %17 = vector.load %arg11[%c0_7, %c0_8] : memref<16x128xf32, #tpu.memory_space<vmem>>, vector<16x128xf32>
      %18 = tpu.reciprocal %16 {approx = true} : vector<16x1xf32> -> vector<16x1xf32>
      %19 = vector.broadcast %18 : vector<16x1xf32> to vector<16x128xf32>
      %20 = arith.mulf %17, %19 : vector<16x128xf32>
      %21 = arith.truncf %20 : vector<16x128xf32> to vector<16x128xbf16>
      %c0_9 = arith.constant 0 : index
      %c0_10 = arith.constant 0 : index
      %c0_11 = arith.constant 0 : index
      %22 = vector.load %arg8[%c0_9, %c0_10, %c0_11] : memref<1x16x128xbf16, #tpu.memory_space<vmem>>, vector<1x16x128xbf16>
      %23 = vector.shape_cast %22 : vector<1x16x128xbf16> to vector<16x128xbf16>
      %24 = vector.shape_cast %21 : vector<16x128xbf16> to vector<1x16x128xbf16>
      tpu.vector_store %arg8[%c0_9, %c0_10, %c0_11], %24 {strides = array<i32>} : memref<1x16x128xbf16, #tpu.memory_space<vmem>>, vector<1x16x128xbf16>,
    } else {
    }
    return
  }
  func.func @transform_0(%arg0: i32, %arg1: i32, %arg2: i32, %arg3: i32) -> (i32, i32, i32, i32) {
    %c0_i32 = arith.constant 0 : i32
    %0 = arith.addi %c0_i32, %arg1 : i32
    %c0_i32_0 = arith.constant 0 : i32
    %c0_i32_1 = arith.constant 0 : i32
    return %arg0, %0, %arg2, %c0_i32_0 : i32, i32, i32, i32
  }
  func.func @transform_1(%arg0: i32, %arg1: i32, %arg2: i32, %arg3: i32) -> (i32, i32, i32, i32) {
    %c2_i32 = arith.constant 2 : i32
    %0 = arith.addi %c2_i32, %arg1 : i32
    %c0_i32 = arith.constant 0 : i32
    %c0_i32_0 = arith.constant 0 : i32
    return %arg0, %0, %arg3, %c0_i32 : i32, i32, i32, i32
  }
  func.func @transform_2(%arg0: i32, %arg1: i32, %arg2: i32, %arg3: i32) -> (i32, i32, i32, i32) {
    %c4_i32 = arith.constant 4 : i32
    %0 = arith.addi %c4_i32, %arg1 : i32
    %c0_i32 = arith.constant 0 : i32
    %c0_i32_0 = arith.constant 0 : i32
    return %arg0, %0, %arg3, %c0_i32 : i32, i32, i32, i32
  }
  func.func @transform_3(%arg0: i32, %arg1: i32, %arg2: i32, %arg3: i32) -> (i32, i32, i32) {
    %c0_i32 = arith.constant 0 : i32
    %c0_i32_0 = arith.constant 0 : i32
    return %arg0, %c0_i32, %arg3 : i32, i32, i32
  }
  func.func @transform_4(%arg0: i32, %arg1: i32, %arg2: i32, %arg3: i32) -> (i32, i32, i32) {
    %c0_i32 = arith.constant 0 : i32
    return %arg0, %arg2, %arg1 : i32, i32, i32
  }
}

module attributes {stable_mosaic.version = 11 : i64} {
  func.func @_head_proj_rope_kernel(%arg0: i32, %arg1: i32, %arg2: i32, %arg3: memref<1x16x256xbf16, #tpu.memory_space<vmem>>, %arg4: memref<1x256x128xbf16, #tpu.memory_space<vmem>>, %arg5: memref<1x1x128xf32, #tpu.memory_space<vmem>>, %arg6: memref<16x128xf32, #tpu.memory_space<vmem>>, %arg7: memref<16x128xf32, #tpu.memory_space<vmem>>, %arg8: memref<1x1x16x128xbf16, #tpu.memory_space<vmem>>) attributes {dimension_semantics = [#tpu.dimension_semantics<parallel>, #tpu.dimension_semantics<parallel>, #tpu.dimension_semantics<parallel>], iteration_bounds = array<i64: 2, 2, 1>, scalar_prefetch = 0 : i64, scratch_operands = 0 : i64, tpu.core_type = #tpu.core_type<tc>, window_params = [{transform_indices = @transform_0, window_bounds = array<i64: 1, 16, 256>}, {transform_indices = @transform_1, window_bounds = array<i64: 1, 256, 128>}, {transform_indices = @transform_2, window_bounds = array<i64: 1, 1, 128>}, {transform_indices = @transform_3, window_bounds = array<i64: 16, 128>}, {transform_indices = @transform_4, window_bounds = array<i64: 16, 128>}, {transform_indices = @transform_5, window_bounds = array<i64: 1, 1, 16, 128>}]} {
    %c0 = arith.constant 0 : index
    %c0_0 = arith.constant 0 : index
    %c0_1 = arith.constant 0 : index
    %0 = vector.load %arg3[%c0, %c0_0, %c0_1] : memref<1x16x256xbf16, #tpu.memory_space<vmem>>, vector<1x16x256xbf16>
    %1 = vector.shape_cast %0 : vector<1x16x256xbf16> to vector<16x256xbf16>
    %c0_2 = arith.constant 0 : index
    %c0_3 = arith.constant 0 : index
    %c0_4 = arith.constant 0 : index
    %2 = vector.load %arg4[%c0_2, %c0_3, %c0_4] : memref<1x256x128xbf16, #tpu.memory_space<vmem>>, vector<1x256x128xbf16>
    %3 = vector.shape_cast %2 : vector<1x256x128xbf16> to vector<256x128xbf16>
    %cst = arith.constant dense<0.000000e+00> : vector<16x128xf32>
    %4 = tpu.matmul %1, %3, %cst {dimension_numbers = #tpu.dot_dimension_numbers<[1], [0], [0], [1], [0, 0, 1, 1], [], []>} : vector<16x256xbf16>, vector<256x128xbf16>, vector<16x128xf32> -> vector<16x128xf32>
    %c0_5 = arith.constant 0 : index
    %c0_6 = arith.constant 0 : index
    %c0_7 = arith.constant 0 : index
    %5 = vector.load %arg5[%c0_5, %c0_6, %c0_7] : memref<1x1x128xf32, #tpu.memory_space<vmem>>, vector<1x1x128xf32>
    %6 = vector.shape_cast %5 : vector<1x1x128xf32> to vector<1x128xf32>
    %7 = vector.broadcast %6 : vector<1x128xf32> to vector<16x128xf32>
    %8 = arith.addf %4, %7 : vector<16x128xf32>
    %c0_8 = arith.constant 0 : index
    %c0_9 = arith.constant 0 : index
    %9 = vector.load %arg7[%c0_8, %c0_9] : memref<16x128xf32, #tpu.memory_space<vmem>>, vector<16x128xf32>
    %10 = arith.mulf %8, %9 : vector<16x128xf32>
    %c64_i32 = arith.constant 64 : i32
    %11 = tpu.dynamic_rotate %8 by %c64_i32 dim 1 : vector<16x128xf32>, i32 -> vector<16x128xf32>
    %c0_10 = arith.constant 0 : index
    %c0_11 = arith.constant 0 : index
    %12 = vector.load %arg6[%c0_10, %c0_11] : memref<16x128xf32, #tpu.memory_space<vmem>>, vector<16x128xf32>
    %13 = arith.mulf %11, %12 : vector<16x128xf32>
    %14 = arith.addf %10, %13 : vector<16x128xf32>
    %c2_i32 = arith.constant 2 : i32
    %15 = arith.cmpi slt, %arg0, %c2_i32 : i32
    %16 = arith.extui %15 : i1 to i32
    %17 = arith.sitofp %16 : i32 to f32
    %c2_i32_12 = arith.constant 2 : i32
    %18 = arith.cmpi slt, %arg0, %c2_i32_12 : i32
    %cst_13 = arith.constant 0.0883883461 : f32
    %cst_14 = arith.constant 1.000000e+00 : f32
    %19 = arith.select %18, %cst_13, %cst_14 : f32
    %20 = arith.subf %14, %8 : vector<16x128xf32>
    %21 = vector.broadcast %17 : f32 to vector<16x128xf32>
    %22 = arith.mulf %21, %20 : vector<16x128xf32>
    %23 = arith.addf %8, %22 : vector<16x128xf32>
    %24 = vector.broadcast %19 : f32 to vector<16x128xf32>
    %25 = arith.mulf %23, %24 : vector<16x128xf32>
    %26 = arith.truncf %25 : vector<16x128xf32> to vector<16x128xbf16>
    %c0_15 = arith.constant 0 : index
    %c0_16 = arith.constant 0 : index
    %c0_17 = arith.constant 0 : index
    %c0_18 = arith.constant 0 : index
    %27 = vector.load %arg8[%c0_15, %c0_16, %c0_17, %c0_18] : memref<1x1x16x128xbf16, #tpu.memory_space<vmem>>, vector<1x1x16x128xbf16>
    %28 = vector.shape_cast %27 : vector<1x1x16x128xbf16> to vector<16x128xbf16>
    %29 = vector.shape_cast %26 : vector<16x128xbf16> to vector<1x1x16x128xbf16>
    tpu.vector_store %arg8[%c0_15, %c0_16, %c0_17, %c0_18], %29 {strides = array<i32>} : memref<1x1x16x128xbf16, #tpu.memory_space<vmem>>, vector<1x1x16x128xbf16>,
    return
  }
  func.func @transform_0(%arg0: i32, %arg1: i32, %arg2: i32) -> (i32, i32, i32) {
    %c0_i32 = arith.constant 0 : i32
    %c0_i32_0 = arith.constant 0 : i32
    return %arg1, %arg2, %c0_i32 : i32, i32, i32
  }
  func.func @transform_1(%arg0: i32, %arg1: i32, %arg2: i32) -> (i32, i32, i32) {
    %c0_i32 = arith.constant 0 : i32
    %c0_i32_0 = arith.constant 0 : i32
    %c0_i32_1 = arith.constant 0 : i32
    return %arg0, %c0_i32, %c0_i32_0 : i32, i32, i32
  }
  func.func @transform_2(%arg0: i32, %arg1: i32, %arg2: i32) -> (i32, i32, i32) {
    %c0_i32 = arith.constant 0 : i32
    %c0_i32_0 = arith.constant 0 : i32
    %c0_i32_1 = arith.constant 0 : i32
    return %arg0, %c0_i32, %c0_i32_0 : i32, i32, i32
  }
  func.func @transform_3(%arg0: i32, %arg1: i32, %arg2: i32) -> (i32, i32) {
    %c0_i32 = arith.constant 0 : i32
    %c0_i32_0 = arith.constant 0 : i32
    return %arg2, %c0_i32 : i32, i32
  }
  func.func @transform_4(%arg0: i32, %arg1: i32, %arg2: i32) -> (i32, i32) {
    %c0_i32 = arith.constant 0 : i32
    %c0_i32_0 = arith.constant 0 : i32
    return %arg2, %c0_i32 : i32, i32
  }
  func.func @transform_5(%arg0: i32, %arg1: i32, %arg2: i32) -> (i32, i32, i32, i32) {
    %c0_i32 = arith.constant 0 : i32
    %c0_i32_0 = arith.constant 0 : i32
    return %arg1, %arg0, %arg2, %c0_i32 : i32, i32, i32, i32
  }
}

module attributes {stable_mosaic.version = 11 : i64} {
  func.func @_head_proj_rope_kernel(%arg0: i32, %arg1: i32, %arg2: i32, %arg3: memref<1x16x256xbf16, #tpu.memory_space<vmem>>, %arg4: memref<1x256x128xbf16, #tpu.memory_space<vmem>>, %arg5: memref<1x1x128xf32, #tpu.memory_space<vmem>>, %arg6: memref<16x128xf32, #tpu.memory_space<vmem>>, %arg7: memref<16x128xf32, #tpu.memory_space<vmem>>, %arg8: memref<1x1x16x128xbf16, #tpu.memory_space<vmem>>) attributes {dimension_semantics = [#tpu.dimension_semantics<parallel>, #tpu.dimension_semantics<parallel>, #tpu.dimension_semantics<parallel>], iteration_bounds = array<i64: 6, 2, 1>, scalar_prefetch = 0 : i64, scratch_operands = 0 : i64, tpu.core_type = #tpu.core_type<tc>, window_params = [{transform_indices = @transform_0, window_bounds = array<i64: 1, 16, 256>}, {transform_indices = @transform_1, window_bounds = array<i64: 1, 256, 128>}, {transform_indices = @transform_2, window_bounds = array<i64: 1, 1, 128>}, {transform_indices = @transform_3, window_bounds = array<i64: 16, 128>}, {transform_indices = @transform_4, window_bounds = array<i64: 16, 128>}, {transform_indices = @transform_5, window_bounds = array<i64: 1, 1, 16, 128>}]} {
    %c0 = arith.constant 0 : index
    %c0_0 = arith.constant 0 : index
    %c0_1 = arith.constant 0 : index
    %0 = vector.load %arg3[%c0, %c0_0, %c0_1] : memref<1x16x256xbf16, #tpu.memory_space<vmem>>, vector<1x16x256xbf16>
    %1 = vector.shape_cast %0 : vector<1x16x256xbf16> to vector<16x256xbf16>
    %c0_2 = arith.constant 0 : index
    %c0_3 = arith.constant 0 : index
    %c0_4 = arith.constant 0 : index
    %2 = vector.load %arg4[%c0_2, %c0_3, %c0_4] : memref<1x256x128xbf16, #tpu.memory_space<vmem>>, vector<1x256x128xbf16>
    %3 = vector.shape_cast %2 : vector<1x256x128xbf16> to vector<256x128xbf16>
    %cst = arith.constant dense<0.000000e+00> : vector<16x128xf32>
    %4 = tpu.matmul %1, %3, %cst {dimension_numbers = #tpu.dot_dimension_numbers<[1], [0], [0], [1], [0, 0, 1, 1], [], []>} : vector<16x256xbf16>, vector<256x128xbf16>, vector<16x128xf32> -> vector<16x128xf32>
    %c0_5 = arith.constant 0 : index
    %c0_6 = arith.constant 0 : index
    %c0_7 = arith.constant 0 : index
    %5 = vector.load %arg5[%c0_5, %c0_6, %c0_7] : memref<1x1x128xf32, #tpu.memory_space<vmem>>, vector<1x1x128xf32>
    %6 = vector.shape_cast %5 : vector<1x1x128xf32> to vector<1x128xf32>
    %7 = vector.broadcast %6 : vector<1x128xf32> to vector<16x128xf32>
    %8 = arith.addf %4, %7 : vector<16x128xf32>
    %c0_8 = arith.constant 0 : index
    %c0_9 = arith.constant 0 : index
    %9 = vector.load %arg7[%c0_8, %c0_9] : memref<16x128xf32, #tpu.memory_space<vmem>>, vector<16x128xf32>
    %10 = arith.mulf %8, %9 : vector<16x128xf32>
    %c64_i32 = arith.constant 64 : i32
    %11 = tpu.dynamic_rotate %8 by %c64_i32 dim 1 : vector<16x128xf32>, i32 -> vector<16x128xf32>
    %c0_10 = arith.constant 0 : index
    %c0_11 = arith.constant 0 : index
    %12 = vector.load %arg6[%c0_10, %c0_11] : memref<16x128xf32, #tpu.memory_space<vmem>>, vector<16x128xf32>
    %13 = arith.mulf %11, %12 : vector<16x128xf32>
    %14 = arith.addf %10, %13 : vector<16x128xf32>
    %c4_i32 = arith.constant 4 : i32
    %15 = arith.cmpi slt, %arg0, %c4_i32 : i32
    %16 = arith.extui %15 : i1 to i32
    %17 = arith.sitofp %16 : i32 to f32
    %c2_i32 = arith.constant 2 : i32
    %18 = arith.cmpi slt, %arg0, %c2_i32 : i32
    %cst_12 = arith.constant 0.0883883461 : f32
    %cst_13 = arith.constant 1.000000e+00 : f32
    %19 = arith.select %18, %cst_12, %cst_13 : f32
    %20 = arith.subf %14, %8 : vector<16x128xf32>
    %21 = vector.broadcast %17 : f32 to vector<16x128xf32>
    %22 = arith.mulf %21, %20 : vector<16x128xf32>
    %23 = arith.addf %8, %22 : vector<16x128xf32>
    %24 = vector.broadcast %19 : f32 to vector<16x128xf32>
    %25 = arith.mulf %23, %24 : vector<16x128xf32>
    %26 = arith.truncf %25 : vector<16x128xf32> to vector<16x128xbf16>
    %c0_14 = arith.constant 0 : index
    %c0_15 = arith.constant 0 : index
    %c0_16 = arith.constant 0 : index
    %c0_17 = arith.constant 0 : index
    %27 = vector.load %arg8[%c0_14, %c0_15, %c0_16, %c0_17] : memref<1x1x16x128xbf16, #tpu.memory_space<vmem>>, vector<1x1x16x128xbf16>
    %28 = vector.shape_cast %27 : vector<1x1x16x128xbf16> to vector<16x128xbf16>
    %29 = vector.shape_cast %26 : vector<16x128xbf16> to vector<1x1x16x128xbf16>
    tpu.vector_store %arg8[%c0_14, %c0_15, %c0_16, %c0_17], %29 {strides = array<i32>} : memref<1x1x16x128xbf16, #tpu.memory_space<vmem>>, vector<1x1x16x128xbf16>,
    return
  }
  func.func @transform_0(%arg0: i32, %arg1: i32, %arg2: i32) -> (i32, i32, i32) {
    %c0_i32 = arith.constant 0 : i32
    %c0_i32_0 = arith.constant 0 : i32
    return %arg1, %arg2, %c0_i32 : i32, i32, i32
  }
  func.func @transform_1(%arg0: i32, %arg1: i32, %arg2: i32) -> (i32, i32, i32) {
    %c0_i32 = arith.constant 0 : i32
    %c0_i32_0 = arith.constant 0 : i32
    %c0_i32_1 = arith.constant 0 : i32
    return %arg0, %c0_i32, %c0_i32_0 : i32, i32, i32
  }
  func.func @transform_2(%arg0: i32, %arg1: i32, %arg2: i32) -> (i32, i32, i32) {
    %c0_i32 = arith.constant 0 : i32
    %c0_i32_0 = arith.constant 0 : i32
    %c0_i32_1 = arith.constant 0 : i32
    return %arg0, %c0_i32, %c0_i32_0 : i32, i32, i32
  }
  func.func @transform_3(%arg0: i32, %arg1: i32, %arg2: i32) -> (i32, i32) {
    %c0_i32 = arith.constant 0 : i32
    %c0_i32_0 = arith.constant 0 : i32
    return %arg2, %c0_i32 : i32, i32
  }
  func.func @transform_4(%arg0: i32, %arg1: i32, %arg2: i32) -> (i32, i32) {
    %c0_i32 = arith.constant 0 : i32
    %c0_i32_0 = arith.constant 0 : i32
    return %arg2, %c0_i32 : i32, i32
  }
  func.func @transform_5(%arg0: i32, %arg1: i32, %arg2: i32) -> (i32, i32, i32, i32) {
    %c0_i32 = arith.constant 0 : i32
    %c0_i32_0 = arith.constant 0 : i32
    return %arg1, %arg0, %arg2, %c0_i32 : i32, i32, i32, i32
  }
}

module attributes {stable_mosaic.version = 11 : i64} {
  func.func @_flash_attn_kernel(%arg0: i32, %arg1: i32, %arg2: i32, %arg3: i32, %arg4: memref<1x1x16x128xbf16, #tpu.memory_space<vmem>>, %arg5: memref<1x1x16x128xbf16, #tpu.memory_space<vmem>>, %arg6: memref<1x1x16x128xbf16, #tpu.memory_space<vmem>>, %arg7: memref<1x1x16xf32, #tpu.memory_space<vmem>>, %arg8: memref<1x16x128xbf16, #tpu.memory_space<vmem>>, %arg9: memref<16x1xf32, #tpu.memory_space<vmem>>, %arg10: memref<16x1xf32, #tpu.memory_space<vmem>>, %arg11: memref<16x128xf32, #tpu.memory_space<vmem>>) attributes {dimension_semantics = [#tpu.dimension_semantics<parallel>, #tpu.dimension_semantics<parallel>, #tpu.dimension_semantics<parallel>, #tpu.dimension_semantics<arbitrary>], iteration_bounds = array<i64: 2, 2, 1, 1>, scalar_prefetch = 0 : i64, scratch_operands = 3 : i64, tpu.core_type = #tpu.core_type<tc>, window_params = [{transform_indices = @transform_0, window_bounds = array<i64: 1, 1, 16, 128>}, {transform_indices = @transform_1, window_bounds = array<i64: 1, 1, 16, 128>}, {transform_indices = @transform_2, window_bounds = array<i64: 1, 1, 16, 128>}, {transform_indices = @transform_3, window_bounds = array<i64: 1, 1, 16>}, {transform_indices = @transform_4, window_bounds = array<i64: 1, 16, 128>}]} {
    %c0_i32 = arith.constant 0 : i32
    %0 = arith.cmpi eq, %arg3, %c0_i32 : i32
    %1 = arith.extui %0 : i1 to i32
    %c0_i32_0 = arith.constant 0 : i32
    %2 = arith.cmpi ne, %1, %c0_i32_0 : i32
    scf.if %2 {
      %cst_35 = arith.constant -1.000000e+30 : f32
      %48 = vector.broadcast %cst_35 : f32 to vector<16x1xf32>
      %c0_36 = arith.constant 0 : index
      %c0_37 = arith.constant 0 : index
      %49 = vector.load %arg9[%c0_36, %c0_37] : memref<16x1xf32, #tpu.memory_space<vmem>>, vector<16x1xf32>
      tpu.vector_store %arg9[%c0_36, %c0_37], %48 {strides = array<i32>} : memref<16x1xf32, #tpu.memory_space<vmem>>, vector<16x1xf32>,
      %cst_38 = arith.constant 0.000000e+00 : f32
      %50 = vector.broadcast %cst_38 : f32 to vector<16x1xf32>
      %c0_39 = arith.constant 0 : index
      %c0_40 = arith.constant 0 : index
      %51 = vector.load %arg10[%c0_39, %c0_40] : memref<16x1xf32, #tpu.memory_space<vmem>>, vector<16x1xf32>
      tpu.vector_store %arg10[%c0_39, %c0_40], %50 {strides = array<i32>} : memref<16x1xf32, #tpu.memory_space<vmem>>, vector<16x1xf32>,
      %cst_41 = arith.constant 0.000000e+00 : f32
      %52 = vector.broadcast %cst_41 : f32 to vector<16x128xf32>
      %c0_42 = arith.constant 0 : index
      %c0_43 = arith.constant 0 : index
      %53 = vector.load %arg11[%c0_42, %c0_43] : memref<16x128xf32, #tpu.memory_space<vmem>>, vector<16x128xf32>
      tpu.vector_store %arg11[%c0_42, %c0_43], %52 {strides = array<i32>} : memref<16x128xf32, #tpu.memory_space<vmem>>, vector<16x128xf32>,
    } else {
    }
    %c0 = arith.constant 0 : index
    %c0_1 = arith.constant 0 : index
    %c0_2 = arith.constant 0 : index
    %c0_3 = arith.constant 0 : index
    %3 = vector.load %arg4[%c0, %c0_1, %c0_2, %c0_3] : memref<1x1x16x128xbf16, #tpu.memory_space<vmem>>, vector<1x1x16x128xbf16>
    %4 = vector.shape_cast %3 : vector<1x1x16x128xbf16> to vector<16x128xbf16>
    %c0_4 = arith.constant 0 : index
    %c0_5 = arith.constant 0 : index
    %c0_6 = arith.constant 0 : index
    %c0_7 = arith.constant 0 : index
    %5 = vector.load %arg5[%c0_4, %c0_5, %c0_6, %c0_7] : memref<1x1x16x128xbf16, #tpu.memory_space<vmem>>, vector<1x1x16x128xbf16>
    %6 = vector.shape_cast %5 : vector<1x1x16x128xbf16> to vector<16x128xbf16>
    %cst = arith.constant dense<0.000000e+00> : vector<16x16xf32>
    %7 = tpu.matmul %4, %6, %cst {dimension_numbers = #tpu.dot_dimension_numbers<[1], [1], [0], [0], [0, 0, 1, 0], [], []>} : vector<16x128xbf16>, vector<16x128xbf16>, vector<16x16xf32> -> vector<16x16xf32>
    %c0_8 = arith.constant 0 : index
    %c0_9 = arith.constant 0 : index
    %c0_10 = arith.constant 0 : index
    %8 = vector.load %arg7[%c0_8, %c0_9, %c0_10] : memref<1x1x16xf32, #tpu.memory_space<vmem>>, vector<1x1x16xf32>
    %9 = vector.shape_cast %8 : vector<1x1x16xf32> to vector<1x16xf32>
    %cst_11 = arith.constant 0.000000e+00 : f32
    %10 = vector.broadcast %cst_11 : f32 to vector<1x16xf32>
    %11 = arith.cmpf ogt, %9, %10 : vector<1x16xf32>
    %cst_12 = arith.constant -1.000000e+30 : f32
    %12 = vector.shape_cast %11 : vector<1x16xi1> to vector<1x16xi1>
    %13 = vector.broadcast %12 : vector<1x16xi1> to vector<16x16xi1>
    %14 = vector.broadcast %cst_12 : f32 to vector<16x16xf32>
    %15 = arith.select %13, %7, %14 : vector<16x16xi1>, vector<16x16xf32>
    %c0_13 = arith.constant 0 : index
    %c0_14 = arith.constant 0 : index
    %16 = vector.load %arg9[%c0_13, %c0_14] : memref<16x1xf32, #tpu.memory_space<vmem>>, vector<16x1xf32>
    %cst_15 = arith.constant dense<0xFF800000> : vector<16xf32>
    %17 = vector.multi_reduction <maximumf>, %15, %cst_15 [1] : vector<16x16xf32> to vector<16xf32>
    %18 = vector.shape_cast %17 : vector<16xf32> to vector<16x1xf32>
    %19 = arith.maximumf %16, %18 : vector<16x1xf32>
    %20 = arith.subf %16, %19 : vector<16x1xf32>
    %21 = math.exp %20 : vector<16x1xf32>
    %22 = vector.broadcast %19 : vector<16x1xf32> to vector<16x16xf32>
    %23 = arith.subf %15, %22 : vector<16x16xf32>
    %24 = math.exp %23 : vector<16x16xf32>
    %cst_16 = arith.constant 0.000000e+00 : f32
    %25 = vector.shape_cast %11 : vector<1x16xi1> to vector<1x16xi1>
    %26 = vector.broadcast %25 : vector<1x16xi1> to vector<16x16xi1>
    %27 = vector.broadcast %cst_16 : f32 to vector<16x16xf32>
    %28 = arith.select %26, %24, %27 : vector<16x16xi1>, vector<16x16xf32>
    %c0_17 = arith.constant 0 : index
    %c0_18 = arith.constant 0 : index
    %29 = vector.load %arg10[%c0_17, %c0_18] : memref<16x1xf32, #tpu.memory_space<vmem>>, vector<16x1xf32>
    %30 = arith.mulf %21, %29 : vector<16x1xf32>
    %cst_19 = arith.constant dense<0.000000e+00> : vector<16xf32>
    %31 = vector.multi_reduction <add>, %28, %cst_19 [1] : vector<16x16xf32> to vector<16xf32>
    %32 = vector.shape_cast %31 : vector<16xf32> to vector<16x1xf32>
    %33 = arith.addf %30, %32 : vector<16x1xf32>
    %c0_20 = arith.constant 0 : index
    %c0_21 = arith.constant 0 : index
    %34 = vector.load %arg10[%c0_20, %c0_21] : memref<16x1xf32, #tpu.memory_space<vmem>>, vector<16x1xf32>
    tpu.vector_store %arg10[%c0_20, %c0_21], %33 {strides = array<i32>} : memref<16x1xf32, #tpu.memory_space<vmem>>, vector<16x1xf32>,
    %c0_22 = arith.constant 0 : index
    %c0_23 = arith.constant 0 : index
    %35 = vector.load %arg11[%c0_22, %c0_23] : memref<16x128xf32, #tpu.memory_space<vmem>>, vector<16x128xf32>
    %36 = vector.broadcast %21 : vector<16x1xf32> to vector<16x128xf32>
    %37 = arith.mulf %36, %35 : vector<16x128xf32>
    %38 = arith.truncf %28 : vector<16x16xf32> to vector<16x16xbf16>
    %c0_24 = arith.constant 0 : index
    %c0_25 = arith.constant 0 : index
    %c0_26 = arith.constant 0 : index
    %c0_27 = arith.constant 0 : index
    %39 = vector.load %arg6[%c0_24, %c0_25, %c0_26, %c0_27] : memref<1x1x16x128xbf16, #tpu.memory_space<vmem>>, vector<1x1x16x128xbf16>
    %40 = vector.shape_cast %39 : vector<1x1x16x128xbf16> to vector<16x128xbf16>
    %cst_28 = arith.constant dense<0.000000e+00> : vector<16x128xf32>
    %41 = tpu.matmul %38, %40, %cst_28 {dimension_numbers = #tpu.dot_dimension_numbers<[1], [0], [0], [1], [0, 0, 1, 1], [], []>} : vector<16x16xbf16>, vector<16x128xbf16>, vector<16x128xf32> -> vector<16x128xf32>
    %42 = arith.addf %37, %41 : vector<16x128xf32>
    %c0_29 = arith.constant 0 : index
    %c0_30 = arith.constant 0 : index
    %43 = vector.load %arg11[%c0_29, %c0_30] : memref<16x128xf32, #tpu.memory_space<vmem>>, vector<16x128xf32>
    tpu.vector_store %arg11[%c0_29, %c0_30], %42 {strides = array<i32>} : memref<16x128xf32, #tpu.memory_space<vmem>>, vector<16x128xf32>,
    %c0_31 = arith.constant 0 : index
    %c0_32 = arith.constant 0 : index
    %44 = vector.load %arg9[%c0_31, %c0_32] : memref<16x1xf32, #tpu.memory_space<vmem>>, vector<16x1xf32>
    tpu.vector_store %arg9[%c0_31, %c0_32], %19 {strides = array<i32>} : memref<16x1xf32, #tpu.memory_space<vmem>>, vector<16x1xf32>,
    %c0_i32_33 = arith.constant 0 : i32
    %45 = arith.cmpi eq, %arg3, %c0_i32_33 : i32
    %46 = arith.extui %45 : i1 to i32
    %c0_i32_34 = arith.constant 0 : i32
    %47 = arith.cmpi ne, %46, %c0_i32_34 : i32
    scf.if %47 {
      %c0_35 = arith.constant 0 : index
      %c0_36 = arith.constant 0 : index
      %48 = vector.load %arg10[%c0_35, %c0_36] : memref<16x1xf32, #tpu.memory_space<vmem>>, vector<16x1xf32>
      %cst_37 = arith.constant 0.000000e+00 : f32
      %49 = vector.broadcast %cst_37 : f32 to vector<16x1xf32>
      %50 = arith.cmpf ogt, %48, %49 : vector<16x1xf32>
      %cst_38 = arith.constant 1.000000e+00 : f32
      %51 = vector.broadcast %cst_38 : f32 to vector<16x1xf32>
      %52 = arith.select %50, %48, %51 : vector<16x1xi1>, vector<16x1xf32>
      %c0_39 = arith.constant 0 : index
      %c0_40 = arith.constant 0 : index
      %53 = vector.load %arg11[%c0_39, %c0_40] : memref<16x128xf32, #tpu.memory_space<vmem>>, vector<16x128xf32>
      %54 = tpu.reciprocal %52 {approx = true} : vector<16x1xf32> -> vector<16x1xf32>
      %55 = vector.broadcast %54 : vector<16x1xf32> to vector<16x128xf32>
      %56 = arith.mulf %53, %55 : vector<16x128xf32>
      %57 = arith.truncf %56 : vector<16x128xf32> to vector<16x128xbf16>
      %c0_41 = arith.constant 0 : index
      %c0_42 = arith.constant 0 : index
      %c0_43 = arith.constant 0 : index
      %58 = vector.load %arg8[%c0_41, %c0_42, %c0_43] : memref<1x16x128xbf16, #tpu.memory_space<vmem>>, vector<1x16x128xbf16>
      %59 = vector.shape_cast %58 : vector<1x16x128xbf16> to vector<16x128xbf16>
      %60 = vector.shape_cast %57 : vector<16x128xbf16> to vector<1x16x128xbf16>
      tpu.vector_store %arg8[%c0_41, %c0_42, %c0_43], %60 {strides = array<i32>} : memref<1x16x128xbf16, #tpu.memory_space<vmem>>, vector<1x16x128xbf16>,
    } else {
    }
    return
  }
  func.func @transform_0(%arg0: i32, %arg1: i32, %arg2: i32, %arg3: i32) -> (i32, i32, i32, i32) {
    %c0_i32 = arith.constant 0 : i32
    %0 = arith.addi %c0_i32, %arg1 : i32
    %c0_i32_0 = arith.constant 0 : i32
    %c0_i32_1 = arith.constant 0 : i32
    return %arg0, %0, %arg2, %c0_i32_0 : i32, i32, i32, i32
  }
  func.func @transform_1(%arg0: i32, %arg1: i32, %arg2: i32, %arg3: i32) -> (i32, i32, i32, i32) {
    %c2_i32 = arith.constant 2 : i32
    %0 = arith.addi %c2_i32, %arg1 : i32
    %c0_i32 = arith.constant 0 : i32
    %c0_i32_0 = arith.constant 0 : i32
    return %arg0, %0, %arg3, %c0_i32 : i32, i32, i32, i32
  }
  func.func @transform_2(%arg0: i32, %arg1: i32, %arg2: i32, %arg3: i32) -> (i32, i32, i32, i32) {
    %c4_i32 = arith.constant 4 : i32
    %0 = arith.addi %c4_i32, %arg1 : i32
    %c0_i32 = arith.constant 0 : i32
    %c0_i32_0 = arith.constant 0 : i32
    return %arg0, %0, %arg3, %c0_i32 : i32, i32, i32, i32
  }
  func.func @transform_3(%arg0: i32, %arg1: i32, %arg2: i32, %arg3: i32) -> (i32, i32, i32) {
    %c0_i32 = arith.constant 0 : i32
    %c0_i32_0 = arith.constant 0 : i32
    return %arg0, %c0_i32, %arg3 : i32, i32, i32
  }
  func.func @transform_4(%arg0: i32, %arg1: i32, %arg2: i32, %arg3: i32) -> (i32, i32, i32) {
    %c0_i32 = arith.constant 0 : i32
    return %arg0, %arg2, %arg1 : i32, i32, i32
  }
}

module attributes {stable_mosaic.version = 11 : i64} {
  func.func @_flash_attn_kernel(%arg0: i32, %arg1: i32, %arg2: i32, %arg3: i32, %arg4: memref<1x1x16x128xbf16, #tpu.memory_space<vmem>>, %arg5: memref<1x1x16x128xbf16, #tpu.memory_space<vmem>>, %arg6: memref<1x1x16x128xbf16, #tpu.memory_space<vmem>>, %arg7: memref<1x1x16xf32, #tpu.memory_space<vmem>>, %arg8: memref<1x16x128xbf16, #tpu.memory_space<vmem>>, %arg9: memref<16x1xf32, #tpu.memory_space<vmem>>, %arg10: memref<16x1xf32, #tpu.memory_space<vmem>>, %arg11: memref<16x128xf32, #tpu.memory_space<vmem>>) attributes {dimension_semantics = [#tpu.dimension_semantics<parallel>, #tpu.dimension_semantics<parallel>, #tpu.dimension_semantics<parallel>, #tpu.dimension_semantics<arbitrary>], iteration_bounds = array<i64: 2, 2, 1, 1>, scalar_prefetch = 0 : i64, scratch_operands = 3 : i64, tpu.core_type = #tpu.core_type<tc>, window_params = [{transform_indices = @transform_0, window_bounds = array<i64: 1, 1, 16, 128>}, {transform_indices = @transform_1, window_bounds = array<i64: 1, 1, 16, 128>}, {transform_indices = @transform_2, window_bounds = array<i64: 1, 1, 16, 128>}, {transform_indices = @transform_3, window_bounds = array<i64: 1, 1, 16>}, {transform_indices = @transform_4, window_bounds = array<i64: 1, 16, 128>}]} {
    %c0_i32 = arith.constant 0 : i32
    %0 = arith.cmpi eq, %arg3, %c0_i32 : i32
    %1 = arith.extui %0 : i1 to i32
    %c0_i32_0 = arith.constant 0 : i32
    %2 = arith.cmpi ne, %1, %c0_i32_0 : i32
    scf.if %2 {
      %cst_35 = arith.constant -1.000000e+30 : f32
      %48 = vector.broadcast %cst_35 : f32 to vector<16x1xf32>
      %c0_36 = arith.constant 0 : index
      %c0_37 = arith.constant 0 : index
      %49 = vector.load %arg9[%c0_36, %c0_37] : memref<16x1xf32, #tpu.memory_space<vmem>>, vector<16x1xf32>
      tpu.vector_store %arg9[%c0_36, %c0_37], %48 {strides = array<i32>} : memref<16x1xf32, #tpu.memory_space<vmem>>, vector<16x1xf32>,
      %cst_38 = arith.constant 0.000000e+00 : f32
      %50 = vector.broadcast %cst_38 : f32 to vector<16x1xf32>
      %c0_39 = arith.constant 0 : index
      %c0_40 = arith.constant 0 : index
      %51 = vector.load %arg10[%c0_39, %c0_40] : memref<16x1xf32, #tpu.memory_space<vmem>>, vector<16x1xf32>
      tpu.vector_store %arg10[%c0_39, %c0_40], %50 {strides = array<i32>} : memref<16x1xf32, #tpu.memory_space<vmem>>, vector<16x1xf32>,
      %cst_41 = arith.constant 0.000000e+00 : f32
      %52 = vector.broadcast %cst_41 : f32 to vector<16x128xf32>
      %c0_42 = arith.constant 0 : index
      %c0_43 = arith.constant 0 : index
      %53 = vector.load %arg11[%c0_42, %c0_43] : memref<16x128xf32, #tpu.memory_space<vmem>>, vector<16x128xf32>
      tpu.vector_store %arg11[%c0_42, %c0_43], %52 {strides = array<i32>} : memref<16x128xf32, #tpu.memory_space<vmem>>, vector<16x128xf32>,
    } else {
    }
    %c0 = arith.constant 0 : index
    %c0_1 = arith.constant 0 : index
    %c0_2 = arith.constant 0 : index
    %c0_3 = arith.constant 0 : index
    %3 = vector.load %arg4[%c0, %c0_1, %c0_2, %c0_3] : memref<1x1x16x128xbf16, #tpu.memory_space<vmem>>, vector<1x1x16x128xbf16>
    %4 = vector.shape_cast %3 : vector<1x1x16x128xbf16> to vector<16x128xbf16>
    %c0_4 = arith.constant 0 : index
    %c0_5 = arith.constant 0 : index
    %c0_6 = arith.constant 0 : index
    %c0_7 = arith.constant 0 : index
    %5 = vector.load %arg5[%c0_4, %c0_5, %c0_6, %c0_7] : memref<1x1x16x128xbf16, #tpu.memory_space<vmem>>, vector<1x1x16x128xbf16>
    %6 = vector.shape_cast %5 : vector<1x1x16x128xbf16> to vector<16x128xbf16>
    %cst = arith.constant dense<0.000000e+00> : vector<16x16xf32>
    %7 = tpu.matmul %4, %6, %cst {dimension_numbers = #tpu.dot_dimension_numbers<[1], [1], [0], [0], [0, 0, 1, 0], [], []>} : vector<16x128xbf16>, vector<16x128xbf16>, vector<16x16xf32> -> vector<16x16xf32>
    %c0_8 = arith.constant 0 : index
    %c0_9 = arith.constant 0 : index
    %c0_10 = arith.constant 0 : index
    %8 = vector.load %arg7[%c0_8, %c0_9, %c0_10] : memref<1x1x16xf32, #tpu.memory_space<vmem>>, vector<1x1x16xf32>
    %9 = vector.shape_cast %8 : vector<1x1x16xf32> to vector<1x16xf32>
    %cst_11 = arith.constant 0.000000e+00 : f32
    %10 = vector.broadcast %cst_11 : f32 to vector<1x16xf32>
    %11 = arith.cmpf ogt, %9, %10 : vector<1x16xf32>
    %cst_12 = arith.constant -1.000000e+30 : f32
    %12 = vector.shape_cast %11 : vector<1x16xi1> to vector<1x16xi1>
    %13 = vector.broadcast %12 : vector<1x16xi1> to vector<16x16xi1>
    %14 = vector.broadcast %cst_12 : f32 to vector<16x16xf32>
    %15 = arith.select %13, %7, %14 : vector<16x16xi1>, vector<16x16xf32>
    %c0_13 = arith.constant 0 : index
    %c0_14 = arith.constant 0 : index
    %16 = vector.load %arg9[%c0_13, %c0_14] : memref<16x1xf32, #tpu.memory_space<vmem>>, vector<16x1xf32>
    %cst_15 = arith.constant dense<0xFF800000> : vector<16xf32>
    %17 = vector.multi_reduction <maximumf>, %15, %cst_15 [1] : vector<16x16xf32> to vector<16xf32>
    %18 = vector.shape_cast %17 : vector<16xf32> to vector<16x1xf32>
    %19 = arith.maximumf %16, %18 : vector<16x1xf32>
    %20 = arith.subf %16, %19 : vector<16x1xf32>
    %21 = math.exp %20 : vector<16x1xf32>
    %22 = vector.broadcast %19 : vector<16x1xf32> to vector<16x16xf32>
    %23 = arith.subf %15, %22 : vector<16x16xf32>
    %24 = math.exp %23 : vector<16x16xf32>
    %cst_16 = arith.constant 0.000000e+00 : f32
    %25 = vector.shape_cast %11 : vector<1x16xi1> to vector<1x16xi1>
    %26 = vector.broadcast %25 : vector<1x16xi1> to vector<16x16xi1>
    %27 = vector.broadcast %cst_16 : f32 to vector<16x16xf32>
    %28 = arith.select %26, %24, %27 : vector<16x16xi1>, vector<16x16xf32>
    %c0_17 = arith.constant 0 : index
    %c0_18 = arith.constant 0 : index
    %29 = vector.load %arg10[%c0_17, %c0_18] : memref<16x1xf32, #tpu.memory_space<vmem>>, vector<16x1xf32>
    %30 = arith.mulf %21, %29 : vector<16x1xf32>
    %cst_19 = arith.constant dense<0.000000e+00> : vector<16xf32>
    %31 = vector.multi_reduction <add>, %28, %cst_19 [1] : vector<16x16xf32> to vector<16xf32>
    %32 = vector.shape_cast %31 : vector<16xf32> to vector<16x1xf32>
    %33 = arith.addf %30, %32 : vector<16x1xf32>
    %c0_20 = arith.constant 0 : index
    %c0_21 = arith.constant 0 : index
    %34 = vector.load %arg10[%c0_20, %c0_21] : memref<16x1xf32, #tpu.memory_space<vmem>>, vector<16x1xf32>
    tpu.vector_store %arg10[%c0_20, %c0_21], %33 {strides = array<i32>} : memref<16x1xf32, #tpu.memory_space<vmem>>, vector<16x1xf32>,
    %c0_22 = arith.constant 0 : index
    %c0_23 = arith.constant 0 : index
    %35 = vector.load %arg11[%c0_22, %c0_23] : memref<16x128xf32, #tpu.memory_space<vmem>>, vector<16x128xf32>
    %36 = vector.broadcast %21 : vector<16x1xf32> to vector<16x128xf32>
    %37 = arith.mulf %36, %35 : vector<16x128xf32>
    %38 = arith.truncf %28 : vector<16x16xf32> to vector<16x16xbf16>
    %c0_24 = arith.constant 0 : index
    %c0_25 = arith.constant 0 : index
    %c0_26 = arith.constant 0 : index
    %c0_27 = arith.constant 0 : index
    %39 = vector.load %arg6[%c0_24, %c0_25, %c0_26, %c0_27] : memref<1x1x16x128xbf16, #tpu.memory_space<vmem>>, vector<1x1x16x128xbf16>
    %40 = vector.shape_cast %39 : vector<1x1x16x128xbf16> to vector<16x128xbf16>
    %cst_28 = arith.constant dense<0.000000e+00> : vector<16x128xf32>
    %41 = tpu.matmul %38, %40, %cst_28 {dimension_numbers = #tpu.dot_dimension_numbers<[1], [0], [0], [1], [0, 0, 1, 1], [], []>} : vector<16x16xbf16>, vector<16x128xbf16>, vector<16x128xf32> -> vector<16x128xf32>
    %42 = arith.addf %37, %41 : vector<16x128xf32>
    %c0_29 = arith.constant 0 : index
    %c0_30 = arith.constant 0 : index
    %43 = vector.load %arg11[%c0_29, %c0_30] : memref<16x128xf32, #tpu.memory_space<vmem>>, vector<16x128xf32>
    tpu.vector_store %arg11[%c0_29, %c0_30], %42 {strides = array<i32>} : memref<16x128xf32, #tpu.memory_space<vmem>>, vector<16x128xf32>,
    %c0_31 = arith.constant 0 : index
    %c0_32 = arith.constant 0 : index
    %44 = vector.load %arg9[%c0_31, %c0_32] : memref<16x1xf32, #tpu.memory_space<vmem>>, vector<16x1xf32>
    tpu.vector_store %arg9[%c0_31, %c0_32], %19 {strides = array<i32>} : memref<16x1xf32, #tpu.memory_space<vmem>>, vector<16x1xf32>,
    %c0_i32_33 = arith.constant 0 : i32
    %45 = arith.cmpi eq, %arg3, %c0_i32_33 : i32
    %46 = arith.extui %45 : i1 to i32
    %c0_i32_34 = arith.constant 0 : i32
    %47 = arith.cmpi ne, %46, %c0_i32_34 : i32
    scf.if %47 {
      %c0_35 = arith.constant 0 : index
      %c0_36 = arith.constant 0 : index
      %48 = vector.load %arg10[%c0_35, %c0_36] : memref<16x1xf32, #tpu.memory_space<vmem>>, vector<16x1xf32>
      %cst_37 = arith.constant 0.000000e+00 : f32
      %49 = vector.broadcast %cst_37 : f32 to vector<16x1xf32>
      %50 = arith.cmpf ogt, %48, %49 : vector<16x1xf32>
      %cst_38 = arith.constant 1.000000e+00 : f32
      %51 = vector.broadcast %cst_38 : f32 to vector<16x1xf32>
      %52 = arith.select %50, %48, %51 : vector<16x1xi1>, vector<16x1xf32>
      %c0_39 = arith.constant 0 : index
      %c0_40 = arith.constant 0 : index
      %53 = vector.load %arg11[%c0_39, %c0_40] : memref<16x128xf32, #tpu.memory_space<vmem>>, vector<16x128xf32>
      %54 = tpu.reciprocal %52 {approx = true} : vector<16x1xf32> -> vector<16x1xf32>
      %55 = vector.broadcast %54 : vector<16x1xf32> to vector<16x128xf32>
      %56 = arith.mulf %53, %55 : vector<16x128xf32>
      %57 = arith.truncf %56 : vector<16x128xf32> to vector<16x128xbf16>
      %c0_41 = arith.constant 0 : index
      %c0_42 = arith.constant 0 : index
      %c0_43 = arith.constant 0 : index
      %58 = vector.load %arg8[%c0_41, %c0_42, %c0_43] : memref<1x16x128xbf16, #tpu.memory_space<vmem>>, vector<1x16x128xbf16>
      %59 = vector.shape_cast %58 : vector<1x16x128xbf16> to vector<16x128xbf16>
      %60 = vector.shape_cast %57 : vector<16x128xbf16> to vector<1x16x128xbf16>
      tpu.vector_store %arg8[%c0_41, %c0_42, %c0_43], %60 {strides = array<i32>} : memref<1x16x128xbf16, #tpu.memory_space<vmem>>, vector<1x16x128xbf16>,
    } else {
    }
    return
  }
  func.func @transform_0(%arg0: i32, %arg1: i32, %arg2: i32, %arg3: i32) -> (i32, i32, i32, i32) {
    %c0_i32 = arith.constant 0 : i32
    %0 = arith.addi %c0_i32, %arg1 : i32
    %c0_i32_0 = arith.constant 0 : i32
    %c0_i32_1 = arith.constant 0 : i32
    return %arg0, %0, %arg2, %c0_i32_0 : i32, i32, i32, i32
  }
  func.func @transform_1(%arg0: i32, %arg1: i32, %arg2: i32, %arg3: i32) -> (i32, i32, i32, i32) {
    %c0_i32 = arith.constant 0 : i32
    %0 = arith.addi %c0_i32, %arg1 : i32
    %c0_i32_0 = arith.constant 0 : i32
    %c0_i32_1 = arith.constant 0 : i32
    return %arg0, %0, %arg3, %c0_i32_0 : i32, i32, i32, i32
  }
  func.func @transform_2(%arg0: i32, %arg1: i32, %arg2: i32, %arg3: i32) -> (i32, i32, i32, i32) {
    %c2_i32 = arith.constant 2 : i32
    %0 = arith.addi %c2_i32, %arg1 : i32
    %c0_i32 = arith.constant 0 : i32
    %c0_i32_0 = arith.constant 0 : i32
    return %arg0, %0, %arg3, %c0_i32 : i32, i32, i32, i32
  }
  func.func @transform_3(%arg0: i32, %arg1: i32, %arg2: i32, %arg3: i32) -> (i32, i32, i32) {
    %c0_i32 = arith.constant 0 : i32
    %c0_i32_0 = arith.constant 0 : i32
    return %arg0, %c0_i32, %arg3 : i32, i32, i32
  }
  func.func @transform_4(%arg0: i32, %arg1: i32, %arg2: i32, %arg3: i32) -> (i32, i32, i32) {
    %c0_i32 = arith.constant 0 : i32
    return %arg0, %arg2, %arg1 : i32, i32, i32
  }
}

module attributes {stable_mosaic.version = 11 : i64} {
  func.func @_ffn_res_ln_kernel(%arg0: i32, %arg1: memref<32x256xbf16, #tpu.memory_space<vmem>>, %arg2: memref<256x1024xbf16, #tpu.memory_space<vmem>>, %arg3: memref<1x1024xf32, #tpu.memory_space<vmem>>, %arg4: memref<1024x256xbf16, #tpu.memory_space<vmem>>, %arg5: memref<1x256xf32, #tpu.memory_space<vmem>>, %arg6: memref<1x256xf32, #tpu.memory_space<vmem>>, %arg7: memref<1x256xf32, #tpu.memory_space<vmem>>, %arg8: memref<32x256xbf16, #tpu.memory_space<vmem>>) attributes {dimension_semantics = [#tpu.dimension_semantics<parallel>], iteration_bounds = array<i64: 1>, scalar_prefetch = 0 : i64, scratch_operands = 0 : i64, tpu.core_type = #tpu.core_type<tc>, window_params = [{transform_indices = @transform_0, window_bounds = array<i64: 32, 256>}, {pipeline_mode = #tpu.pipeline_mode<synchronous>, transform_indices = @transform_1, window_bounds = array<i64: 256, 1024>}, {pipeline_mode = #tpu.pipeline_mode<synchronous>, transform_indices = @transform_2, window_bounds = array<i64: 1, 1024>}, {pipeline_mode = #tpu.pipeline_mode<synchronous>, transform_indices = @transform_3, window_bounds = array<i64: 1024, 256>}, {pipeline_mode = #tpu.pipeline_mode<synchronous>, transform_indices = @transform_4, window_bounds = array<i64: 1, 256>}, {pipeline_mode = #tpu.pipeline_mode<synchronous>, transform_indices = @transform_5, window_bounds = array<i64: 1, 256>}, {pipeline_mode = #tpu.pipeline_mode<synchronous>, transform_indices = @transform_6, window_bounds = array<i64: 1, 256>}, {transform_indices = @transform_7, window_bounds = array<i64: 32, 256>}]} {
    %c0 = arith.constant 0 : index
    %c0_0 = arith.constant 0 : index
    %0 = vector.load %arg1[%c0, %c0_0] : memref<32x256xbf16, #tpu.memory_space<vmem>>, vector<32x256xbf16>
    %c0_1 = arith.constant 0 : index
    %c0_2 = arith.constant 0 : index
    %1 = vector.load %arg2[%c0_1, %c0_2] : memref<256x1024xbf16, #tpu.memory_space<vmem>>, vector<256x1024xbf16>
    %cst = arith.constant dense<0.000000e+00> : vector<32x1024xf32>
    %2 = tpu.matmul %0, %1, %cst {dimension_numbers = #tpu.dot_dimension_numbers<[1], [0], [0], [1], [0, 0, 1, 1], [], []>} : vector<32x256xbf16>, vector<256x1024xbf16>, vector<32x1024xf32> -> vector<32x1024xf32>
    %c0_3 = arith.constant 0 : index
    %c0_4 = arith.constant 0 : index
    %3 = vector.load %arg3[%c0_3, %c0_4] : memref<1x1024xf32, #tpu.memory_space<vmem>>, vector<1x1024xf32>
    %4 = vector.broadcast %3 : vector<1x1024xf32> to vector<32x1024xf32>
    %5 = arith.addf %2, %4 : vector<32x1024xf32>
    %cst_5 = arith.constant 0.000000e+00 : f32
    %6 = vector.broadcast %cst_5 : f32 to vector<32x1024xf32>
    %7 = arith.maximumf %5, %6 : vector<32x1024xf32>
    %8 = arith.truncf %7 : vector<32x1024xf32> to vector<32x1024xbf16>
    %c0_6 = arith.constant 0 : index
    %c0_7 = arith.constant 0 : index
    %9 = vector.load %arg4[%c0_6, %c0_7] : memref<1024x256xbf16, #tpu.memory_space<vmem>>, vector<1024x256xbf16>
    %cst_8 = arith.constant dense<0.000000e+00> : vector<32x256xf32>
    %10 = tpu.matmul %8, %9, %cst_8 {dimension_numbers = #tpu.dot_dimension_numbers<[1], [0], [0], [1], [0, 0, 1, 1], [], []>} : vector<32x1024xbf16>, vector<1024x256xbf16>, vector<32x256xf32> -> vector<32x256xf32>
    %c0_9 = arith.constant 0 : index
    %c0_10 = arith.constant 0 : index
    %11 = vector.load %arg5[%c0_9, %c0_10] : memref<1x256xf32, #tpu.memory_space<vmem>>, vector<1x256xf32>
    %12 = vector.broadcast %11 : vector<1x256xf32> to vector<32x256xf32>
    %13 = arith.addf %10, %12 : vector<32x256xf32>
    %14 = arith.extf %0 : vector<32x256xbf16> to vector<32x256xf32>
    %15 = arith.addf %13, %14 : vector<32x256xf32>
    %cst_11 = arith.constant dense<0.000000e+00> : vector<32xf32>
    %16 = vector.multi_reduction <add>, %15, %cst_11 [1] : vector<32x256xf32> to vector<32xf32>
    %17 = vector.shape_cast %16 : vector<32xf32> to vector<32x1xf32>
    %cst_12 = arith.constant 2.560000e+02 : f32
    %18 = vector.broadcast %cst_12 : f32 to vector<32x1xf32>
    %19 = arith.divf %17, %18 : vector<32x1xf32>
    %20 = vector.broadcast %19 : vector<32x1xf32> to vector<32x256xf32>
    %21 = arith.subf %15, %20 : vector<32x256xf32>
    %22 = arith.mulf %21, %21 : vector<32x256xf32>
    %cst_13 = arith.constant dense<0.000000e+00> : vector<32xf32>
    %23 = vector.multi_reduction <add>, %22, %cst_13 [1] : vector<32x256xf32> to vector<32xf32>
    %24 = vector.shape_cast %23 : vector<32xf32> to vector<32x1xf32>
    %cst_14 = arith.constant 2.560000e+02 : f32
    %25 = vector.broadcast %cst_14 : f32 to vector<32x1xf32>
    %26 = arith.divf %24, %25 : vector<32x1xf32>
    %27 = vector.broadcast %19 : vector<32x1xf32> to vector<32x256xf32>
    %28 = arith.subf %15, %27 : vector<32x256xf32>
    %cst_15 = arith.constant 9.99999974E-6 : f32
    %29 = vector.broadcast %cst_15 : f32 to vector<32x1xf32>
    %30 = arith.addf %26, %29 : vector<32x1xf32>
    %31 = math.rsqrt %30 : vector<32x1xf32>
    %32 = vector.broadcast %31 : vector<32x1xf32> to vector<32x256xf32>
    %33 = arith.mulf %28, %32 : vector<32x256xf32>
    %c0_16 = arith.constant 0 : index
    %c0_17 = arith.constant 0 : index
    %34 = vector.load %arg6[%c0_16, %c0_17] : memref<1x256xf32, #tpu.memory_space<vmem>>, vector<1x256xf32>
    %35 = vector.broadcast %34 : vector<1x256xf32> to vector<32x256xf32>
    %36 = arith.mulf %33, %35 : vector<32x256xf32>
    %c0_18 = arith.constant 0 : index
    %c0_19 = arith.constant 0 : index
    %37 = vector.load %arg7[%c0_18, %c0_19] : memref<1x256xf32, #tpu.memory_space<vmem>>, vector<1x256xf32>
    %38 = vector.broadcast %37 : vector<1x256xf32> to vector<32x256xf32>
    %39 = arith.addf %36, %38 : vector<32x256xf32>
    %40 = arith.truncf %39 : vector<32x256xf32> to vector<32x256xbf16>
    %c0_20 = arith.constant 0 : index
    %c0_21 = arith.constant 0 : index
    %41 = vector.load %arg8[%c0_20, %c0_21] : memref<32x256xbf16, #tpu.memory_space<vmem>>, vector<32x256xbf16>
    tpu.vector_store %arg8[%c0_20, %c0_21], %40 {strides = array<i32>} : memref<32x256xbf16, #tpu.memory_space<vmem>>, vector<32x256xbf16>,
    return
  }
  func.func @transform_0(%arg0: i32) -> (i32, i32) {
    %c0_i32 = arith.constant 0 : i32
    %c0_i32_0 = arith.constant 0 : i32
    return %arg0, %c0_i32 : i32, i32
  }
  func.func @transform_1(%arg0: i32) -> (i32, i32) {
    %c0_i32 = arith.constant 0 : i32
    %c0_i32_0 = arith.constant 0 : i32
    %c0_i32_1 = arith.constant 0 : i32
    return %c0_i32, %c0_i32_0 : i32, i32
  }
  func.func @transform_2(%arg0: i32) -> (i32, i32) {
    %c0_i32 = arith.constant 0 : i32
    %c0_i32_0 = arith.constant 0 : i32
    %c0_i32_1 = arith.constant 0 : i32
    return %c0_i32, %c0_i32_0 : i32, i32
  }
  func.func @transform_3(%arg0: i32) -> (i32, i32) {
    %c0_i32 = arith.constant 0 : i32
    %c0_i32_0 = arith.constant 0 : i32
    %c0_i32_1 = arith.constant 0 : i32
    return %c0_i32, %c0_i32_0 : i32, i32
  }
  func.func @transform_4(%arg0: i32) -> (i32, i32) {
    %c0_i32 = arith.constant 0 : i32
    %c0_i32_0 = arith.constant 0 : i32
    %c0_i32_1 = arith.constant 0 : i32
    return %c0_i32, %c0_i32_0 : i32, i32
  }
  func.func @transform_5(%arg0: i32) -> (i32, i32) {
    %c0_i32 = arith.constant 0 : i32
    %c0_i32_0 = arith.constant 0 : i32
    %c0_i32_1 = arith.constant 0 : i32
    return %c0_i32, %c0_i32_0 : i32, i32
  }
  func.func @transform_6(%arg0: i32) -> (i32, i32) {
    %c0_i32 = arith.constant 0 : i32
    %c0_i32_0 = arith.constant 0 : i32
    %c0_i32_1 = arith.constant 0 : i32
    return %c0_i32, %c0_i32_0 : i32, i32
  }
  func.func @transform_7(%arg0: i32) -> (i32, i32) {
    %c0_i32 = arith.constant 0 : i32
    %c0_i32_0 = arith.constant 0 : i32
    return %arg0, %c0_i32 : i32, i32
  }
}

module attributes {stable_mosaic.version = 11 : i64} {
  func.func @_head_proj_rope_kernel(%arg0: i32, %arg1: i32, %arg2: i32, %arg3: memref<1x16x256xbf16, #tpu.memory_space<vmem>>, %arg4: memref<1x256x128xbf16, #tpu.memory_space<vmem>>, %arg5: memref<1x1x128xf32, #tpu.memory_space<vmem>>, %arg6: memref<16x128xf32, #tpu.memory_space<vmem>>, %arg7: memref<16x128xf32, #tpu.memory_space<vmem>>, %arg8: memref<1x1x16x128xbf16, #tpu.memory_space<vmem>>) attributes {dimension_semantics = [#tpu.dimension_semantics<parallel>, #tpu.dimension_semantics<parallel>, #tpu.dimension_semantics<parallel>], iteration_bounds = array<i64: 4, 2, 1>, scalar_prefetch = 0 : i64, scratch_operands = 0 : i64, tpu.core_type = #tpu.core_type<tc>, window_params = [{transform_indices = @transform_0, window_bounds = array<i64: 1, 16, 256>}, {transform_indices = @transform_1, window_bounds = array<i64: 1, 256, 128>}, {transform_indices = @transform_2, window_bounds = array<i64: 1, 1, 128>}, {transform_indices = @transform_3, window_bounds = array<i64: 16, 128>}, {transform_indices = @transform_4, window_bounds = array<i64: 16, 128>}, {transform_indices = @transform_5, window_bounds = array<i64: 1, 1, 16, 128>}]} {
    %c0 = arith.constant 0 : index
    %c0_0 = arith.constant 0 : index
    %c0_1 = arith.constant 0 : index
    %0 = vector.load %arg3[%c0, %c0_0, %c0_1] : memref<1x16x256xbf16, #tpu.memory_space<vmem>>, vector<1x16x256xbf16>
    %1 = vector.shape_cast %0 : vector<1x16x256xbf16> to vector<16x256xbf16>
    %c0_2 = arith.constant 0 : index
    %c0_3 = arith.constant 0 : index
    %c0_4 = arith.constant 0 : index
    %2 = vector.load %arg4[%c0_2, %c0_3, %c0_4] : memref<1x256x128xbf16, #tpu.memory_space<vmem>>, vector<1x256x128xbf16>
    %3 = vector.shape_cast %2 : vector<1x256x128xbf16> to vector<256x128xbf16>
    %cst = arith.constant dense<0.000000e+00> : vector<16x128xf32>
    %4 = tpu.matmul %1, %3, %cst {dimension_numbers = #tpu.dot_dimension_numbers<[1], [0], [0], [1], [0, 0, 1, 1], [], []>} : vector<16x256xbf16>, vector<256x128xbf16>, vector<16x128xf32> -> vector<16x128xf32>
    %c0_5 = arith.constant 0 : index
    %c0_6 = arith.constant 0 : index
    %c0_7 = arith.constant 0 : index
    %5 = vector.load %arg5[%c0_5, %c0_6, %c0_7] : memref<1x1x128xf32, #tpu.memory_space<vmem>>, vector<1x1x128xf32>
    %6 = vector.shape_cast %5 : vector<1x1x128xf32> to vector<1x128xf32>
    %7 = vector.broadcast %6 : vector<1x128xf32> to vector<16x128xf32>
    %8 = arith.addf %4, %7 : vector<16x128xf32>
    %c0_8 = arith.constant 0 : index
    %c0_9 = arith.constant 0 : index
    %9 = vector.load %arg7[%c0_8, %c0_9] : memref<16x128xf32, #tpu.memory_space<vmem>>, vector<16x128xf32>
    %10 = arith.mulf %8, %9 : vector<16x128xf32>
    %c64_i32 = arith.constant 64 : i32
    %11 = tpu.dynamic_rotate %8 by %c64_i32 dim 1 : vector<16x128xf32>, i32 -> vector<16x128xf32>
    %c0_10 = arith.constant 0 : index
    %c0_11 = arith.constant 0 : index
    %12 = vector.load %arg6[%c0_10, %c0_11] : memref<16x128xf32, #tpu.memory_space<vmem>>, vector<16x128xf32>
    %13 = arith.mulf %11, %12 : vector<16x128xf32>
    %14 = arith.addf %10, %13 : vector<16x128xf32>
    %c2_i32 = arith.constant 2 : i32
    %15 = arith.cmpi slt, %arg0, %c2_i32 : i32
    %16 = arith.extui %15 : i1 to i32
    %17 = arith.sitofp %16 : i32 to f32
    %c0_i32 = arith.constant 0 : i32
    %18 = arith.cmpi slt, %arg0, %c0_i32 : i32
    %cst_12 = arith.constant 1.000000e+00 : f32
    %cst_13 = arith.constant 1.000000e+00 : f32
    %19 = arith.select %18, %cst_12, %cst_13 : f32
    %20 = arith.subf %14, %8 : vector<16x128xf32>
    %21 = vector.broadcast %17 : f32 to vector<16x128xf32>
    %22 = arith.mulf %21, %20 : vector<16x128xf32>
    %23 = arith.addf %8, %22 : vector<16x128xf32>
    %24 = vector.broadcast %19 : f32 to vector<16x128xf32>
    %25 = arith.mulf %23, %24 : vector<16x128xf32>
    %26 = arith.truncf %25 : vector<16x128xf32> to vector<16x128xbf16>
    %c0_14 = arith.constant 0 : index
    %c0_15 = arith.constant 0 : index
    %c0_16 = arith.constant 0 : index
    %c0_17 = arith.constant 0 : index
    %27 = vector.load %arg8[%c0_14, %c0_15, %c0_16, %c0_17] : memref<1x1x16x128xbf16, #tpu.memory_space<vmem>>, vector<1x1x16x128xbf16>
    %28 = vector.shape_cast %27 : vector<1x1x16x128xbf16> to vector<16x128xbf16>
    %29 = vector.shape_cast %26 : vector<16x128xbf16> to vector<1x1x16x128xbf16>
    tpu.vector_store %arg8[%c0_14, %c0_15, %c0_16, %c0_17], %29 {strides = array<i32>} : memref<1x1x16x128xbf16, #tpu.memory_space<vmem>>, vector<1x1x16x128xbf16>,
    return
  }
  func.func @transform_0(%arg0: i32, %arg1: i32, %arg2: i32) -> (i32, i32, i32) {
    %c0_i32 = arith.constant 0 : i32
    %c0_i32_0 = arith.constant 0 : i32
    return %arg1, %arg2, %c0_i32 : i32, i32, i32
  }
  func.func @transform_1(%arg0: i32, %arg1: i32, %arg2: i32) -> (i32, i32, i32) {
    %c0_i32 = arith.constant 0 : i32
    %c0_i32_0 = arith.constant 0 : i32
    %c0_i32_1 = arith.constant 0 : i32
    return %arg0, %c0_i32, %c0_i32_0 : i32, i32, i32
  }
  func.func @transform_2(%arg0: i32, %arg1: i32, %arg2: i32) -> (i32, i32, i32) {
    %c0_i32 = arith.constant 0 : i32
    %c0_i32_0 = arith.constant 0 : i32
    %c0_i32_1 = arith.constant 0 : i32
    return %arg0, %c0_i32, %c0_i32_0 : i32, i32, i32
  }
  func.func @transform_3(%arg0: i32, %arg1: i32, %arg2: i32) -> (i32, i32) {
    %c0_i32 = arith.constant 0 : i32
    %c0_i32_0 = arith.constant 0 : i32
    return %arg2, %c0_i32 : i32, i32
  }
  func.func @transform_4(%arg0: i32, %arg1: i32, %arg2: i32) -> (i32, i32) {
    %c0_i32 = arith.constant 0 : i32
    %c0_i32_0 = arith.constant 0 : i32
    return %arg2, %c0_i32 : i32, i32
  }
  func.func @transform_5(%arg0: i32, %arg1: i32, %arg2: i32) -> (i32, i32, i32, i32) {
    %c0_i32 = arith.constant 0 : i32
    %c0_i32_0 = arith.constant 0 : i32
    return %arg1, %arg0, %arg2, %c0_i32 : i32, i32, i32, i32
  }
}

module attributes {stable_mosaic.version = 11 : i64} {
  func.func @_logits_kernel(%arg0: i32, %arg1: i32, %arg2: memref<32x256xbf16, #tpu.memory_space<vmem>>, %arg3: memref<128x256xbf16, #tpu.memory_space<vmem>>, %arg4: memref<32x128xf32, #tpu.memory_space<vmem>>) attributes {dimension_semantics = [#tpu.dimension_semantics<parallel>, #tpu.dimension_semantics<parallel>], iteration_bounds = array<i64: 1, 1>, scalar_prefetch = 0 : i64, scratch_operands = 0 : i64, tpu.core_type = #tpu.core_type<tc>, window_params = [{transform_indices = @transform_0, window_bounds = array<i64: 32, 256>}, {transform_indices = @transform_1, window_bounds = array<i64: 128, 256>}, {transform_indices = @transform_2, window_bounds = array<i64: 32, 128>}]} {
    %c0 = arith.constant 0 : index
    %c0_0 = arith.constant 0 : index
    %0 = vector.load %arg2[%c0, %c0_0] : memref<32x256xbf16, #tpu.memory_space<vmem>>, vector<32x256xbf16>
    %c0_1 = arith.constant 0 : index
    %c0_2 = arith.constant 0 : index
    %1 = vector.load %arg3[%c0_1, %c0_2] : memref<128x256xbf16, #tpu.memory_space<vmem>>, vector<128x256xbf16>
    %cst = arith.constant dense<0.000000e+00> : vector<32x128xf32>
    %2 = tpu.matmul %0, %1, %cst {dimension_numbers = #tpu.dot_dimension_numbers<[1], [1], [0], [0], [0, 0, 1, 0], [], []>} : vector<32x256xbf16>, vector<128x256xbf16>, vector<32x128xf32> -> vector<32x128xf32>
    %c0_3 = arith.constant 0 : index
    %c0_4 = arith.constant 0 : index
    %3 = vector.load %arg4[%c0_3, %c0_4] : memref<32x128xf32, #tpu.memory_space<vmem>>, vector<32x128xf32>
    tpu.vector_store %arg4[%c0_3, %c0_4], %2 {strides = array<i32>} : memref<32x128xf32, #tpu.memory_space<vmem>>, vector<32x128xf32>,
    return
  }
  func.func @transform_0(%arg0: i32, %arg1: i32) -> (i32, i32) {
    %c0_i32 = arith.constant 0 : i32
    %c0_i32_0 = arith.constant 0 : i32
    return %arg1, %c0_i32 : i32, i32
  }
  func.func @transform_1(%arg0: i32, %arg1: i32) -> (i32, i32) {
    %c0_i32 = arith.constant 0 : i32
    %c0_i32_0 = arith.constant 0 : i32
    return %arg0, %c0_i32 : i32, i32
  }
  func.func @transform_2(%arg0: i32, %arg1: i32) -> (i32, i32) {
    %c0_i32 = arith.constant 0 : i32
    return %arg1, %arg0 : i32, i32
  }
}

</mosaic_0001>

<bundles_post_ra>
// kernel: forward_train.34
= control target key start
LH: loop header
LB: loop body
LE: loop exit
PB: predicated region body
PF: predicated region fallthrough
CT: control target
= control target key end

     0   :  { %s1060_s15 = smov 0   ;;  %s1062_s16 = smov 0   ;;  %s1200_s0 = inlined_call_operand.vmem [shape: bf16[2,6,16,128], index: 0, kind: input, shape index: {}, may-alias: {0,1,2}]   ;;  %s1201_s1 = inlined_call_operand.vmem [shape: bf16[2,6,16,128], index: 1, kind: input, shape index: {}, may-alias: {0,1,2}]   ;;  %s1202_s2 = inlined_call_operand.vmem [shape: bf16[2,6,16,128], index: 2, kind: input, shape index: {}, may-alias: {0,1,2}]   ;;  %s1203_s3 = inlined_call_operand.vmem [shape: f32[2,1,16], index: 3, kind: input, shape index: {}]   ;;  %s1204_s4 = inlined_call_operand.vmem [shape: bf16[2,16,256], index: 4, kind: output, shape index: {}]  }
   0x1   :  { %s1064_s17 = smov 0   ;;  %s1066_s18 = smov 0  }
   0x2   :  { %s1068_s19 = smov 0   ;;  %s1070_s20 = smov 0  }
   0x3   :  { %s1072_s21 = smov 0  }
   0x4 LB: > { %s36_s22 = sadd.s32 1, %s1021_s19  ;;  %s40_s23 = sadd.s32 1, %s1025_s20  ;;  %s1029_s21 = sphi %s1072_s21, %s14_s21   ;;  %s1025_s20 = sphi %s1070_s20, %s1221_s20   ;;  %s1021_s19 = sphi %s1068_s19, %s1220_s19   ;;  %s1017_s18 = sphi %s1066_s18, %s1219_s18   ;;  %s1013_s17 = sphi %s1064_s17, %s1218_s17   ;;  %s1009_s16 = sphi %s1062_s16, %s1217_s16   ;;  %s1005_s15 = sphi %s1060_s15, %s1216_s15  }
   0x5   : > { %p38_p0 = scmp.ge.s32.totalorder %s36_s22, 2  ;;  %s851_s24 = sadd.s32 4294967295, %s1029_s21  }
   0x6   : > { %p183_p1 = scmp.ne.s32.totalorder %s1009_s16, %s1005_s15  ;;  %p184_p2 = scmp.eq.s32.totalorder %s851_s24, 3 }
   0x7   : > { %s1223_s22 = smov (%p38_p0, %s36_s22), 0  ;;  %s1225_s23 = smov (!%p38_p0, %s40_s23), %s1025_s20 }
   0x8   : > { %1207 = sst [smem:[#allocation6_spill]] %s1223_s22  ;;  %s169_s25 = ssub.s32 %s1021_s19, %s1223_s22 }
   0x9   : > { %p42_p3 = scmp.ge.s32.totalorder %s1225_s23, 2  ;;  %p855_p4 = scmp.ge.s32.totalorder %s1029_s21, 1 }
   0xa   : > { %p1106_p5 = por %p184_p2, %p183_p1  ;;  %p272_p6 = scmp.lt.s32.totalorder %s1029_s21, 5 }
   0xb   : > { %s1227_s23 = smov (%p42_p3, %s1225_s23), 0  ;;  %s173_s29 = sadd.s32 1, %s1009_s16 }
   0xc   : > { %1209 = sst [smem:[#allocation7_spill]] %s1227_s23  ;;  %p273_p7 = pnand %p855_p4, %p272_p6 }
   0xd   : > { %s166_s27 = ssub.s32 %s1025_s20, %s1227_s23  ;;  %p340_p9 = scmp.lt.s32.totalorder (!%p273_p7), %s1017_s18, 1  ;;  %v1031_v0 = vmov (!%p273_p7), 0.0   ;;  %vm1032_vm0 = vmmov (!%p273_p7), 0   ;;  %v1033_v4 = vmov (!%p273_p7), 0   ;;  %vm397_vm2 = vcmask (!%p273_p7), 7168  }
   0xe   : > { %s170_s28 = sor.u32 %s169_s25, %s166_s27  ;;  %276 = sbr.rel (%p273_p7) target bundleno = 849 (0x351), region = 36  ;;  %885 = vmatprep.subr.bf16.mxu0 (!%p273_p7), %v1031_v0  ;;  %887 = vmatprep.mubr.msk.bf16.mxu0 (!%p273_p7), %vm1032_vm0, %v1031_v0  ;;  %v1034_v6 = vmov (!%p273_p7), -1e+30   ;;  %400 = vst.msk [vmem:[#allocation3] sm:$0xff] (!%p273_p7), %vm397_vm2, %v1031_v0  ;;  %401 = vst.msk [vmem:[#allocation3 + $0x8] sm:$0xff] (!%p273_p7), %vm397_vm2, %v1031_v0  ;;  %v470_v7 = vlaneseq (!%p273_p7)  ;;  %vm494_vm7 = vcmask (!%p273_p7), 130048  }
   0xf   : > { %p171_p8 = scmp.eq.s32.totalorder %s170_s28, 0  ;;  %s353_s5 = sadd.s32 (!%p273_p7), 2, %s1013_s17  ;;  %891 = vmatprep.subr.bf16.mxu1 (!%p273_p7), %v1031_v0  ;;  %893 = vmatprep.mubr.msk.bf16.mxu1 (!%p273_p7), %vm1032_vm0, %v1031_v0  ;;  %398 = vst.msk [vmem:[#allocation2] sm:$0xff] (!%p273_p7), %vm397_vm2, %v1034_v6  ;;  %399 = vst.msk [vmem:[#allocation2 + $0x8] sm:$0xff] (!%p273_p7), %vm397_vm2, %v1034_v6 }
  0x10   : > { %p357_p10 = scmp.lt.s32.totalorder (!%p273_p7), %s353_s5, 5  ;;  %p342_p11 = scmp.lt.s32.totalorder (!%p273_p7), %s1013_s17, 5  ;;  %958 = vset.pattern.permute.xlu1 (!%p273_p7), %v1033_v4  ;;  %959 = vset.pattern.permute.xlu0 (!%p273_p7), %v1033_v4  ;;  %v471_v8 = vshrl.u32 (!%p273_p7), %v470_v7, 7  ;;  %v477_v10 = vand.u32 (!%p273_p7), 127, %v470_v7 }
  0x11   : > { %s1117_s30 = scalar_select %p171_p8, %s1009_s16, %s173_s29  }
  0x12   : > { %v485_v9 = vsub.s32 (!%p273_p7), 0, %v471_v8  ;;  %v472_v12 = vadd.s32 (!%p273_p7), 8, %v471_v8  ;;  %vm480_vm3 = vcmp.le.s32.totalorder (!%p273_p7), %v477_v10, %v471_v8  ;;  %s369_s22 = sadd.s32 (!%p273_p7), 4, %s1013_s17 }
  0x13   : > { %p373_p12 = scmp.lt.s32.totalorder (!%p273_p7), %s369_s22, 5 }
  0x14   : > { %vm481_vm5 = vcmp.le.s32.totalorder (!%p273_p7), %v477_v10, %v472_v12 }
  0x15   : > { %s341_s6 = scalar_select %p340_p9, %s1017_s18, 1  ;;  %v527_v49 = vld [vmem:[#allocation3] sm:$0xff]  ;;  %v528_v52 = vld [vmem:[#allocation3 + $0x8] sm:$0xff] }
  0x16   : > { %s1229_s5 = smov (!%p357_p10, %s353_s5), 5  ;;  %v492_v23 = vld [vmem:[#allocation2] sm:$0xff]  ;;  %v493_v26 = vld [vmem:[#allocation2 + $0x8] sm:$0xff]  ;;  %s1231_s22 = smov (!%p373_p12, %s369_s22), 5 }
  0x17   : > { %s1122_s7 = smul.u32 12, %s341_s6  ;;  %s859_s8 = sshll.u32 %s1229_s5, 1 }
  0x18   : > { %s343_s14 = scalar_select %p342_p11, %s1013_s17, 5 }
  0x19   : > { %s364_s9 = sadd.s32 %s1122_s7, %s859_s8  ;;  %s390_s8 = scalar_lea.vmem %s1203_s3, %s341_s6 }
  0x1a   : > { %s860_s10 = sshll.u32 %s364_s9, 2  ;;  %s857_s24 = sshll.u32 %s343_s14, 1  ;;  %v468_v3 = vld [vmem:[%s390_s8] sm:$0x1] }
  0x1b   : > { %s366_s13 = scalar_lea.vmem %s1201_s1, %s860_s10  ;;  %s349_s25 = sadd.s32 %s1122_s7, %s857_s24  ;;  %vm469_vm1 = vcmp.gt.f32.partialorder %v468_v3, 0.0 }
  0x1c   : > { %v960_v1 = vld [vmem:[%s366_s13] sm:$0xff]   ;;  %s858_s27 = sshll.u32 %s349_s25, 2  ;;  %v482_v5 = vsel %vm469_vm1, 1, %v1033_v4  ;;  %s870_s24 = sshll.u32 (%p1106_p5), %s1017_s18, 2 }
  0x1d   : > { %886 = vmatpush3.bf16.xpose.msra.mxu0 %v960_v1  ;;  %s351_s23 = scalar_lea.vmem %s1200_s0, %s858_s27  ;;  %v486_v11 = vrot.slane %v482_v5, %v485_v9  ;;  %s661_s25 = sadd.s32 (%p1106_p5), %s1013_s17, %s870_s24 }
  0x1e   : > { %v961_v2 = vld [vmem:[%s351_s23] sm:$0xff]   ;;  %s861_s23 = sshll.u32 %s1231_s22, 1 }
  0x1f   : > { %vm487_vm4 = vcmp.eq.s32.totalorder %v486_v11, 1  ;;  %s380_s6 = sadd.s32 %s1122_s7, %s861_s23  ;;  %s336_s7 = sand.u32 1, %s1005_s15  }
  0x20   : > { %vm1141_vm6 = vmand %vm487_vm4, %vm480_vm3  ;;  %s862_s9 = sshll.u32 %s380_s6, 2  ;;  %s856_s13 = sshll.u32 %s336_s7, 3 }
  0x21   : > { %vm1145_vm8 = vmand %vm487_vm4, %vm481_vm5  ;;  %s382_s12 = scalar_lea.vmem %s1202_s2, %s862_s9  ;;  %s338_s14 = scalar_lea.vmem [#allocation5], %s856_s13 }
  0x22   : > { %v962_v31 = vld [vmem:[%s382_s12] sm:$0xff]   ;;  %s871_s15 = sshll.u32 (%p1106_p5), %s661_s25, 2 }
  0x23   : > { %892 = vmatpush3.bf16.msra.mxu1 %v962_v31  ;;  %s663_s29 = scalar_lea.vmem (%p1106_p5), %s1204_s4, %s871_s15 }
  0x24   : > { %888 = vmatmul.mubr.bf16.vlgmr.msra.gmra.mrb[0].mxu0 %v961_v2 }
  0xf7   : > { %v461_v14 = vpop.f32.mrb[0].mxu0 }
  0xf8   : > { %v490_v16 = vsel %vm1141_vm6, %v461_v14, -1e+30  ;;  %v889_v17 = vpop.f32.mrb[1].mxu0 }
  0xf9   : > { %v464_v18 = vpop.f32.mrb[2].mxu0  ;;  %v495_v19 = vsel %vm494_vm7, %v490_v16, -inf }
  0xfa   : > { %v491_v20 = vsel %vm1145_vm8, %v464_v18, -1e+30  ;;  %496 = vmax.xlane.f32.xlu0 %v495_v19  ;;  %v890_v21 = vpop.f32.mrb[3].mxu0 }
  0xfb   : > { %v498_v22 = vsel %vm494_vm7, %v491_v20, -inf }
  0xfe   : > { %499 = vmax.xlane.f32.xlu0 %v498_v22 }
 0x187   : > { %v497_v24 = vpop.xlane.xlu0 %496 }
 0x188   : > { %v501_v25 = vmax.f32 %v492_v23, %v497_v24 }
 0x18a   : > { %v503_v27 = vsub.f32 %v492_v23, %v501_v25  ;;  %613 = vst.msk [vmem:[#allocation2] sm:$0xff] %vm397_vm2, %v501_v25  ;;  %511 = vperm.xlu1 %958, %v501_v25  }
 0x18b   : > { %v500_v28 = vpop.xlane.xlu0 %499 }
 0x18c   : > { %v502_v29 = vmax.f32 %v493_v26, %v500_v28  ;;  %v505_v46 = vmul.f32 1.442695, %v503_v27 }
 0x18e   : > { %v504_v30 = vsub.f32 %v493_v26, %v502_v29  ;;  %614 = vst.msk [vmem:[#allocation2 + $0x8] sm:$0xff] %vm397_vm2, %v502_v29  ;;  %516 = vperm.xlu1 %958, %v502_v29  }
 0x190   : > { %v507_v45 = vmul.f32 1.442695, %v504_v30 }
 0x209   : > { %v512_v32 = vpop.permute.xlu1 %511 }
 0x20a   : > { %v519_v33 = vsub.f32 %v490_v16, %v512_v32 }
 0x20c   : > { %v521_v34 = vmul.f32 1.442695, %v519_v33 }
 0x20d   : > { %v517_v35 = vpop.permute.xlu1 %516 }
 0x20e   : > { %963 = vpow2.f32 %v521_v34  ;;  %v520_v36 = vsub.f32 %v491_v20, %v517_v35 }
 0x210   : > { %v523_v37 = vmul.f32 1.442695, %v520_v36 }
 0x212   : > { %965 = vpow2.f32 %v523_v37 }
 0x213   : > { %967 = vpow2.f32 %v507_v45 }
 0x214   : > { %969 = vpow2.f32 %v505_v46 }
 0x218   : > { %v964_v38 = vpop.eup %963 }
 0x219   : > { %v525_v39 = vsel %vm1141_vm6, %v964_v38, 0.0 }
 0x21a   : > { %v531_v40 = vsel %vm494_vm7, %v525_v39, 0.0 }
 0x21b   : > { %532 = vadd.xlane.f32.xlu0 %v531_v40 }
 0x21c   : > { %v966_v41 = vpop.eup %965 }
 0x21d   : > { %v526_v42 = vsel %vm1145_vm8, %v966_v41, 0.0  ;;  %v968_v47 = vpop.eup %967 }
 0x21e   : > { %v534_v43 = vsel %vm494_vm7, %v526_v42, 0.0  ;;  %v556_v44 = vpack.c.bf16 %v526_v42, %v525_v39  ;;  %v970_v48 = vpop.eup %969  ;;  %v530_v54 = vmul.f32 %v968_v47, %v528_v52 }
 0x21f   : > { %535 = vadd.xlane.f32.xlu1 %v534_v43  ;;  %v529_v50 = vmul.f32 %v970_v48, %v527_v49 }
 0x220   : > { %894 = vmatmul.mubr.msk.bf16.vlgmr.msra.gmra.mrb[0].mxu1 %vm494_vm7, %v556_v44 }
 0x230   : > { %551 = vperm.xlu1 %958, %v968_v47  }
 0x231   : > { %546 = vperm.xlu0 %959, %v970_v48  }
 0x2a8   : > { %v533_v51 = vpop.xlane.xlu0 %532 }
 0x2a9   : > { %v537_v53 = vadd.f32 %v533_v51, %v529_v50 }
 0x2ab   : > { %540 = vst.msk [vmem:[#allocation3] sm:$0xff] %vm397_vm2, %v537_v53 }
 0x2ac   : > { %v536_v55 = vpop.xlane.xlu1 %535 }
 0x2ad   : > { %v538_v56 = vadd.f32 %v536_v55, %v530_v54 }
 0x2af   : > { %541 = vst.msk [vmem:[#allocation3 + $0x8] sm:$0xff] %vm397_vm2, %v538_v56 }
 0x2b0   : > { %v547_v3 = vpop.permute.xlu0 %546  ;;  %v552_v4 = vpop.permute.xlu1 %551 }
 0x2b1   : > { %v555_v6 = vmul.f32 0.0, %v552_v4  ;;  %v554_v7 = vmul.f32 0.0, %v547_v3 }
 0x2b2   : > { %v618_v57 = vld [vmem:[#allocation3] sm:$0xff] }
 0x2b3   : > { %vm620_vm9 = vcmp.gt.f32.partialorder %v618_v57, 0.0 }
 0x2b4   : > { %v622_v58 = vsel %vm620_vm9, %v618_v57, 1.0 }
 0x2b5   : > { %971 = vrcp.f32 %v622_v58 }
 0x2b6   : > { %v619_v59 = vld [vmem:[#allocation3 + $0x8] sm:$0xff] }
 0x2b7   : > { %vm621_vm10 = vcmp.gt.f32.partialorder %v619_v59, 0.0 }
 0x2b8   : > { %v623_v60 = vsel %vm621_vm10, %v619_v59, 1.0 }
 0x2b9   : > { %973 = vrcp.f32 %v623_v60 }
 0x2bf   : > { %v972_v61 = vpop.eup %971 }
 0x2c0   : > { %630 = vperm.xlu0 %959, %v972_v61  }
 0x2c3   : > { %v974_v62 = vpop.eup %973 }
 0x2c4   : > { %635 = vperm.xlu0 %959, %v974_v62  }
 0x2f3   : > { %v602_v63 = vpop.f32.mrb[0].mxu1 }
 0x2f4   : > { %v895_v0 = vpop.f32.mrb[1].mxu1  ;;  %v609_v8 = vadd.f32 %v602_v63, %v554_v7 }
 0x2f5   : > { %v605_v1 = vpop.f32.mrb[2].mxu1 }
 0x2f6   : > { %v896_v2 = vpop.f32.mrb[3].mxu1  ;;  %v610_v9 = vadd.f32 %v605_v1, %v555_v6 }
 0x33f   : > { %v631_v5 = vpop.permute.xlu0 %630 }
 0x340   : > { %v638_v11 = vmul.f32 %v631_v5, %v609_v8 }
 0x342   : > { %656 = sbr.rel (!%p1106_p5) target bundleno = 849 (0x351), region = 52 }
 0x343   : > { %v636_v10 = vpop.permute.xlu0 %635 }
 0x344   : > { %v639_v12 = vmul.f32 %v636_v10, %v610_v9 }
 0x346   : > { %v879_v13 = vpack.c.bf16 %v639_v12, %v638_v11 }
 0x348   : > { %880 = vst [vmem:[%s338_s14] sm:$0xff] %v879_v13  }
 0x34f   : > { %v679_v14 = vld [vmem:[%s338_s14] sm:$0xf]  ;;  %v681_v15 = vld [vmem:[%s338_s14 + $0x4] sm:$0xf] }
 0x350   : > { %680 = vst [vmem:[%s663_s29] sm:$0xf] %v679_v14  ;;  %682 = vst [vmem:[%s663_s29 + $0x8] sm:$0xf] %v681_v15 }
 0x351 PF: > { %s14_s21 = sadd.s32 1, %s1029_s21   ;;  %s1214_s26 = sld [smem:[#allocation6_spill]] }
 0x352   : > { %p11_p13 = scmp.ge.s32.totalorder %s14_s21, 6   ;;  %s1215_s5 = sld [smem:[#allocation7_spill]] }
 0x353   : > { %s1216_s15 = smov %s1009_s16  ;;  %s1217_s16 = smov %s1117_s30 }
 0x354   : > { %s1218_s17 = smov %s1021_s19  ;;  %s1219_s18 = smov %s1025_s20 }
 0x355   :  { %13 = sbr.rel (!%p11_p13) target bundleno = 4 (0x4), region = 128 }
 0x357   : > { %s1220_s19 = smov %s1214_s26 }
 0x358   : > { %s1221_s20 = smov %s1215_s5 }

// kernel: forward_train.36
= control target key start
LH: loop header
LB: loop body
LE: loop exit
PB: predicated region body
PF: predicated region fallthrough
CT: control target
= control target key end

     0   :  { %s951_s18 = smov 0   ;;  %s953_s19 = smov 0   ;;  %s1060_s0 = inlined_call_operand.vmem [shape: bf16[2,16,256], index: 0, kind: input, shape index: {}]   ;;  %s1061_s1 = inlined_call_operand.vmem [shape: bf16[2,256,128], index: 1, kind: input, shape index: {}]   ;;  %s1062_s2 = inlined_call_operand.vmem [shape: f32[2,1,128], index: 2, kind: input, shape index: {}]   ;;  %s1063_s3 = inlined_call_operand.vmem [shape: f32[16,128], index: 3, kind: input, shape index: {}]   ;;  %s1064_s4 = inlined_call_operand.vmem [shape: f32[16,128], index: 4, kind: input, shape index: {}]   ;;  %s1065_s5 = inlined_call_operand.vmem [shape: bf16[2,2,16,128], index: 5, kind: output, shape index: {}]  }
   0x1   :  { %s955_s20 = smov 0   ;;  %s957_s21 = smov 0  }
   0x2   :  { %s959_s22 = smov 0  }
   0x3 LB: > { %s30_s23 = sadd.s32 1, %s910_s20  ;;  %s34_s24 = sadd.s32 1, %s914_s21  ;;  %s918_s22 = sphi %s959_s22, %s15_s22   ;;  %s914_s21 = sphi %s957_s21, %s1069_s21   ;;  %s910_s20 = sphi %s955_s20, %s1068_s20   ;;  %s906_s19 = sphi %s953_s19, %s1067_s19   ;;  %s902_s18 = sphi %s951_s18, %s1066_s18  }
   0x4   : > { %p32_p0 = scmp.ge.s32.totalorder %s30_s23, 2  ;;  %p758_p1 = scmp.ge.s32.totalorder %s918_s22, 1 }
   0x5   : > { %p258_p2 = scmp.lt.s32.totalorder %s918_s22, 5 }
   0x6   : > { %s1071_s23 = smov (%p32_p0, %s30_s23), 0  ;;  %s1073_s24 = smov (!%p32_p0, %s34_s24), %s914_s21 }
   0x7   : > { %p259_p3 = pnand %p758_p1, %p258_p2  ;;  %p36_p4 = scmp.ge.s32.totalorder %s1073_s24, 2 }
   0x8   : > { %p328_p5 = scmp.lt.s32.totalorder (!%p259_p3), %s906_s19, 1  ;;  %p318_p6 = scmp.lt.s32.totalorder (!%p259_p3), %s902_s18, 1  ;;  %v551_v27 = vld [vmem:[%s1064_s4] sm:$0xff] (!%p259_p3)  ;;  %v552_v32 = vld [vmem:[%s1064_s4 + $0x8] sm:$0xff] (!%p259_p3) }
   0x9   : > { %s1075_s24 = smov (%p36_p4, %s1073_s24), 0  ;;  %262 = sbr.rel (%p259_p3) target bundleno = 404 (0x194), region = 40 }
   0xa   : > { %s920_s12 = smov (!%p259_p3), 64   ;;  %p565_p7 = scmp.lt.s32.totalorder (!%p259_p3), %s906_s19, 2  ;;  %v559_v28 = vld [vmem:[%s1063_s3] sm:$0xff] (!%p259_p3)  ;;  %v560_v33 = vld [vmem:[%s1063_s3 + $0x8] sm:$0xff] (!%p259_p3) }
  0x10   : > { %s987_s25 = scalar_select %p328_p5, %s906_s19, 1 }
  0x11   : > { %s1077_s18 = smov (!%p318_p6, %s902_s18), 1 }
  0x12   : > { %s790_s26 = sshll.u32 %s987_s25, 7  ;;  %s789_s30 = sshll.u32 %s1077_s18, 4 }
  0x13   : > { %s993_s29 = scalar_lea.vmem %s1061_s1, %s790_s26  ;;  %s326_s8 = scalar_lea.vmem %s1060_s0, %s789_s30 }
  0x14   : > { %v861_v0 = vld [vmem:[%s993_s29 + $0x40] sm:$0xff]   ;;  %v863_v2 = vld [vmem:[%s993_s29 + $0x48] sm:$0xff]   ;;  %v865_v4 = vld [vmem:[%s993_s29 + $0x50] sm:$0xff]   ;;  %s335_s11 = scalar_lea.vmem %s1062_s2, %s987_s25  ;;  %s763_s6 = sshll.u32 %s987_s25, 1 }
  0x15   : > { %v862_v1 = vld [vmem:[%s993_s29] sm:$0xff]   ;;  %798 = vmatprep.subr.bf16.mxu0 %v861_v0  ;;  %v864_v3 = vld [vmem:[%s993_s29 + $0x8] sm:$0xff]   ;;  %v866_v5 = vld [vmem:[%s993_s29 + $0x10] sm:$0xff]   ;;  %s566_s13 = scalar_select %p565_p7, 1, 0 }
  0x16   : > { %799 = vmatpush3.bf16.msra.mxu0 %v862_v1  ;;  %v867_v6 = vld [vmem:[%s993_s29 + $0x58] sm:$0xff]   ;;  %v869_v8 = vld [vmem:[%s993_s29 + $0x60] sm:$0xff]   ;;  %v871_v10 = vld [vmem:[%s993_s29 + $0x68] sm:$0xff]   ;;  %s764_s7 = sshll.u32 %s1077_s18, 2 }
  0x17   : > { %800 = vmatprep.subr.bf16.mxu0 %v863_v2  ;;  %v868_v7 = vld [vmem:[%s993_s29 + $0x18] sm:$0xff]   ;;  %v870_v9 = vld [vmem:[%s993_s29 + $0x20] sm:$0xff]   ;;  %v872_v12 = vld [vmem:[%s993_s29 + $0x28] sm:$0xff]   ;;  %s567_s26 = scvt.s32.f32 %s566_s13  ;;  %s358_s9 = sadd.s32 %s764_s7, %s763_s6 }
  0x18   : > { %v879_v11 = vld [vmem:[%s326_s8 + $0x4] ss:$8 sps:$4 sm:$0xff]   ;;  %v873_v13 = vld [vmem:[%s993_s29 + $0x70] sm:$0xff]   ;;  %v875_v15 = vld [vmem:[%s993_s29 + $0x78] sm:$0xff]   ;;  %s765_s10 = sshll.u32 %s358_s9, 2 }
  0x19   : > { %542 = vmatprep.mubr.bf16.mxu0 %v879_v11  ;;  %v874_v14 = vld [vmem:[%s993_s29 + $0x30] sm:$0xff]   ;;  %v876_v16 = vld [vmem:[%s993_s29 + $0x38] sm:$0xff]   ;;  %v877_v17 = vld [vmem:[%s326_s8] ss:$8 sps:$4 sm:$0xff]   ;;  %v571_v35 = vstv %s567_s26  ;;  %s360_s13 = scalar_lea.vmem %s1065_s5, %s765_s10 }
  0x1a   : > { %801 = vmatpush3.bf16.msra.mxu0 %v864_v3  ;;  %v766_v19 = vld [vmem:[%s335_s11] ss:$0 sm:$0xff]  ;;  %s568_s8 = scalar_select %p565_p7, 0.088388346, 1.0 }
  0x1b   : > { %802 = vmatprep.subr.bf16.mxu0 %v865_v4 }
  0x1c   : > { %v576_v45 = vstv %s568_s8 }
  0x1e   : > { %803 = vmatpush3.bf16.msra.mxu0 %v866_v5 }
  0x1f   : > { %804 = vmatprep.subr.bf16.mxu0 %v867_v6 }
  0x22   : > { %805 = vmatpush3.bf16.msra.mxu0 %v868_v7 }
  0x23   : > { %806 = vmatprep.subr.bf16.mxu0 %v869_v8 }
  0x26   : > { %807 = vmatpush3.bf16.msra.mxu0 %v870_v9 }
  0x27   : > { %808 = vmatprep.subr.bf16.mxu0 %v871_v10 }
  0x2a   : > { %809 = vmatpush3.bf16.msra.mxu0 %v872_v12 }
  0x2b   : > { %810 = vmatprep.subr.bf16.mxu0 %v873_v13 }
  0x2e   : > { %811 = vmatpush3.bf16.msra.mxu0 %v874_v14 }
  0x2f   : > { %812 = vmatprep.subr.bf16.mxu0 %v875_v15 }
  0x32   : > { %813 = vmatpush3.bf16.msra.mxu0 %v876_v16 }
  0x35   : > { %543 = vmatmul.mubr.bf16.vlgmr.msra.gmra.mrb[0].mxu0 %v877_v17 }
 0x108   : > { %v814_v18 = vpop.f32.mrb[0].mxu0 }
 0x109   : > { %v815_v20 = vpop.f32.mrb[1].mxu0 }
 0x10a   : > { %v816_v21 = vadd.f32 %v815_v20, %v814_v18  ;;  %v817_v22 = vpop.f32.mrb[2].mxu0 }
 0x10b   : > { %v818_v23 = vpop.f32.mrb[3].mxu0 }
 0x10c   : > { %v545_v24 = vadd.f32 %v816_v21, %v766_v19  ;;  %v819_v25 = vadd.f32 %v818_v23, %v817_v22 }
 0x10e   : > { %555 = vrot.lane.b32.xlu0 %v545_v24, %s920_s12  ;;  %v548_v26 = vadd.f32 %v819_v25, %v766_v19  ;;  %v553_v30 = vmul.f32 %v551_v27, %v545_v24 }
 0x110   : > { %v554_v38 = vmul.f32 %v552_v32, %v548_v26 }
 0x112   : > { %557 = vrot.lane.b32.xlu0 %v548_v26, %s920_s12 }
 0x180   : > { %v556_v29 = vpop.permute.xlu0 %555 }
 0x181   : > { %v561_v31 = vmul.f32 %v559_v28, %v556_v29 }
 0x183   : > { %v563_v34 = vadd.f32 %v561_v31, %v553_v30 }
 0x184   : > { %v558_v36 = vpop.permute.xlu0 %557 }
 0x185   : > { %v569_v37 = vsub.f32 %v563_v34, %v545_v24  ;;  %v562_v39 = vmul.f32 %v560_v33, %v558_v36 }
 0x187   : > { %v572_v40 = vmul.f32 %v571_v35, %v569_v37  ;;  %v564_v41 = vadd.f32 %v562_v39, %v554_v38 }
 0x189   : > { %v570_v42 = vsub.f32 %v564_v41, %v548_v26  ;;  %v574_v43 = vadd.f32 %v572_v40, %v545_v24 }
 0x18b   : > { %v573_v44 = vmul.f32 %v571_v35, %v570_v42  ;;  %v577_v47 = vmul.f32 %v576_v45, %v574_v43 }
 0x18d   : > { %v575_v46 = vadd.f32 %v573_v44, %v548_v26 }
 0x18f   : > { %v578_v48 = vmul.f32 %v576_v45, %v575_v46 }
 0x191   : > { %v796_v49 = vpack.c.bf16 %v578_v48, %v577_v47 }
 0x193   : > { %797 = vst [vmem:[%s360_s13] sm:$0xff] %v796_v49  }
 0x194 PF: > { %s15_s22 = sadd.s32 1, %s918_s22   ;;  %s1066_s18 = smov %s910_s20 }
 0x195   : > { %p12_p8 = scmp.ge.s32.totalorder %s15_s22, 6   ;;  %s1067_s19 = smov %s914_s21 }
 0x196   : > { %s1068_s20 = smov %s1071_s23  ;;  %s1069_s21 = smov %s1075_s24 }
 0x197   :  { %14 = sbr.rel (!%p12_p8) target bundleno = 3 (0x3), region = 82 }

// kernel: forward_train.35
= control target key start
LH: loop header
LB: loop body
LE: loop exit
PB: predicated region body
PF: predicated region fallthrough
CT: control target
= control target key end

     0   :  { %v61_v36 = vlaneseq  ;;  %s795_s1 = inlined_call_operand.vmem [shape: bf16[256,256], index: 1, kind: input, shape index: {}]   ;;  %s796_s0 = inlined_call_operand.vmem [shape: bf16[32,256], index: 0, kind: input, shape index: {}]   ;;  %s797_s2 = inlined_call_operand.vmem [shape: f32[1,256], index: 2, kind: input, shape index: {}]   ;;  %s798_s3 = inlined_call_operand.vmem [shape: bf16[32,256], index: 3, kind: input, shape index: {}]   ;;  %s799_s4 = inlined_call_operand.vmem [shape: f32[1,256], index: 4, kind: input, shape index: {}]   ;;  %s800_s5 = inlined_call_operand.vmem [shape: f32[1,256], index: 5, kind: input, shape index: {}]   ;;  %s801_s6 = inlined_call_operand.vmem [shape: bf16[32,256], index: 6, kind: output, shape index: {}]  }
   0x1   :  { %v537_v0 = vld [vmem:[%s795_s1 + $0x4] ss:$8 sps:$4 sm:$0xff]   ;;  %v539_v1 = vld [vmem:[%s795_s1] ss:$8 sps:$4 sm:$0xff]   ;;  %v540_v2 = vld [vmem:[%s795_s1 + $0x14] ss:$8 sps:$4 sm:$0xff]  }
   0x2   :  { %251 = vmatprep.subr.bf16.mxu0 %v537_v0  ;;  %505 = vmatprep.subr.bf16.mxu1 %v537_v0  ;;  %v542_v3 = vld [vmem:[%s795_s1 + $0x10] ss:$8 sps:$4 sm:$0xff]   ;;  %v543_v4 = vld [vmem:[%s795_s1 + $0x24] ss:$8 sps:$4 sm:$0xff]   ;;  %v545_v5 = vld [vmem:[%s795_s1 + $0x20] ss:$8 sps:$4 sm:$0xff]  }
   0x3   :  { %252 = vmatpush1.bf16.msra.mxu0 %v539_v1  ;;  %521 = vmatpush1.bf16.msra.mxu1 %v539_v1  ;;  %v546_v6 = vld [vmem:[%s795_s1 + $0x34] ss:$8 sps:$4 sm:$0xff]   ;;  %v548_v7 = vld [vmem:[%s795_s1 + $0x30] ss:$8 sps:$4 sm:$0xff]   ;;  %v549_v8 = vld [vmem:[%s795_s1 + $0x44] ss:$8 sps:$4 sm:$0xff]  }
   0x4   :  { %253 = vmatprep.subr.bf16.mxu0 %v540_v2  ;;  %506 = vmatprep.subr.bf16.mxu1 %v540_v2  ;;  %v551_v9 = vld [vmem:[%s795_s1 + $0x40] ss:$8 sps:$4 sm:$0xff]   ;;  %v552_v10 = vld [vmem:[%s795_s1 + $0x54] ss:$8 sps:$4 sm:$0xff]   ;;  %v554_v11 = vld [vmem:[%s795_s1 + $0x50] ss:$8 sps:$4 sm:$0xff]  }
   0x5   :  { %v555_v12 = vld [vmem:[%s795_s1 + $0x64] ss:$8 sps:$4 sm:$0xff]   ;;  %v557_v14 = vld [vmem:[%s795_s1 + $0x60] ss:$8 sps:$4 sm:$0xff]   ;;  %v590_v15 = vld [vmem:[%s796_s0 + $0x14] ss:$8 sps:$4 sm:$0xff]  }
   0x6   :  { %v587_v13 = vld [vmem:[%s796_s0 + $0x4] ss:$8 sps:$4 sm:$0xff]   ;;  %v558_v16 = vld [vmem:[%s795_s1 + $0x74] ss:$8 sps:$4 sm:$0xff]   ;;  %293 = vmatprep.mubr.bf16.mxu1 %v590_v15  ;;  %v560_v17 = vld [vmem:[%s795_s1 + $0x70] ss:$8 sps:$4 sm:$0xff]  }
   0x7   :  { %254 = vmatpush1.bf16.msra.mxu0 %v542_v3  ;;  %522 = vmatpush1.bf16.msra.mxu1 %v542_v3  ;;  %v561_v18 = vld [vmem:[%s795_s1 + $0x84] ss:$8 sps:$4 sm:$0xff]   ;;  %v563_v19 = vld [vmem:[%s795_s1 + $0x80] ss:$8 sps:$4 sm:$0xff]   ;;  %v564_v20 = vld [vmem:[%s795_s1 + $0x94] ss:$8 sps:$4 sm:$0xff]  }
   0x8   :  { %255 = vmatprep.subr.bf16.mxu0 %v543_v4  ;;  %507 = vmatprep.subr.bf16.mxu1 %v543_v4  ;;  %v566_v21 = vld [vmem:[%s795_s1 + $0x90] ss:$8 sps:$4 sm:$0xff]   ;;  %v567_v22 = vld [vmem:[%s795_s1 + $0xa4] ss:$8 sps:$4 sm:$0xff]   ;;  %v569_v23 = vld [vmem:[%s795_s1 + $0xa0] ss:$8 sps:$4 sm:$0xff]  }
   0x9   :  { %283 = vmatprep.mubr.bf16.mxu0 %v587_v13  ;;  %v570_v24 = vld [vmem:[%s795_s1 + $0xb4] ss:$8 sps:$4 sm:$0xff]   ;;  %v572_v25 = vld [vmem:[%s795_s1 + $0xb0] ss:$8 sps:$4 sm:$0xff]   ;;  %v573_v26 = vld [vmem:[%s795_s1 + $0xc4] ss:$8 sps:$4 sm:$0xff]  }
   0xa   :  { %v575_v27 = vld [vmem:[%s795_s1 + $0xc0] ss:$8 sps:$4 sm:$0xff]   ;;  %v576_v28 = vld [vmem:[%s795_s1 + $0xd4] ss:$8 sps:$4 sm:$0xff]   ;;  %v578_v29 = vld [vmem:[%s795_s1 + $0xd0] ss:$8 sps:$4 sm:$0xff]  }
   0xb   :  { %256 = vmatpush1.bf16.msra.mxu0 %v545_v5  ;;  %523 = vmatpush1.bf16.msra.mxu1 %v545_v5  ;;  %v579_v30 = vld [vmem:[%s795_s1 + $0xe4] ss:$8 sps:$4 sm:$0xff]   ;;  %v581_v31 = vld [vmem:[%s795_s1 + $0xe0] ss:$8 sps:$4 sm:$0xff]   ;;  %v582_v32 = vld [vmem:[%s795_s1 + $0xf4] ss:$8 sps:$4 sm:$0xff]  }
   0xc   :  { %257 = vmatprep.subr.bf16.mxu0 %v546_v6  ;;  %508 = vmatprep.subr.bf16.mxu1 %v546_v6  ;;  %v584_v33 = vld [vmem:[%s795_s1 + $0xf0] ss:$8 sps:$4 sm:$0xff]   ;;  %v585_v34 = vld [vmem:[%s796_s0] ss:$8 sps:$4 sm:$0xff]   ;;  %v62_v37 = vshrl.u32 %v61_v36, 7 }
   0xd   :  { %v588_v35 = vld [vmem:[%s796_s0 + $0x10] ss:$8 sps:$4 sm:$0xff]   ;;  %v59_v39 = vld [vmem:[%s797_s2] sm:$0x3]  ;;  %v305_v45 = vld [vmem:[%s798_s3 + $0x8] sm:$0xff] }
   0xe   :  { %v742_v38 = vsub.s32 0, %v62_v37  ;;  %v747_v40 = vsub.s32 1, %v62_v37  ;;  %v306_v41 = vld [vmem:[%s798_s3 + $0x10] sm:$0xff]  ;;  %v304_v42 = vld [vmem:[%s798_s3] sm:$0xff]  ;;  %v307_v46 = vld [vmem:[%s798_s3 + $0x18] sm:$0xff]  ;;  %v310_v57 = vunpack.c.l.bf16 %v305_v45  ;;  %v311_v62 = vunpack.c.h.bf16 %v305_v45 }
   0xf   :  { %258 = vmatpush1.bf16.msra.mxu0 %v548_v7  ;;  %524 = vmatpush1.bf16.msra.mxu1 %v548_v7  ;;  %v312_v47 = vunpack.c.l.bf16 %v306_v41  ;;  %v308_v48 = vunpack.c.l.bf16 %v304_v42  ;;  %v313_v51 = vunpack.c.h.bf16 %v306_v41  ;;  %v309_v52 = vunpack.c.h.bf16 %v304_v42 }
  0x10   :  { %259 = vmatprep.subr.bf16.mxu0 %v549_v8  ;;  %509 = vmatprep.subr.bf16.mxu1 %v549_v8  ;;  %v64_v43 = vrot.slane %v59_v39, %v742_v38  ;;  %v68_v44 = vrot.slane %v59_v39, %v747_v40  ;;  %v314_v58 = vunpack.c.l.bf16 %v307_v46  ;;  %v315_v0 = vunpack.c.h.bf16 %v307_v46 }
  0x13   :  { %260 = vmatpush1.bf16.msra.mxu0 %v551_v9  ;;  %525 = vmatpush1.bf16.msra.mxu1 %v551_v9 }
  0x14   :  { %261 = vmatprep.subr.bf16.mxu0 %v552_v10  ;;  %510 = vmatprep.subr.bf16.mxu1 %v552_v10 }
  0x17   :  { %262 = vmatpush1.bf16.msra.mxu0 %v554_v11  ;;  %526 = vmatpush1.bf16.msra.mxu1 %v554_v11 }
  0x18   :  { %263 = vmatprep.subr.bf16.mxu0 %v555_v12  ;;  %511 = vmatprep.subr.bf16.mxu1 %v555_v12 }
  0x1b   :  { %264 = vmatpush1.bf16.msra.mxu0 %v557_v14  ;;  %527 = vmatpush1.bf16.msra.mxu1 %v557_v14 }
  0x1c   :  { %265 = vmatprep.subr.bf16.mxu0 %v558_v16  ;;  %512 = vmatprep.subr.bf16.mxu1 %v558_v16 }
  0x1f   :  { %266 = vmatpush1.bf16.msra.mxu0 %v560_v17  ;;  %528 = vmatpush1.bf16.msra.mxu1 %v560_v17 }
  0x20   :  { %267 = vmatprep.subr.bf16.mxu0 %v561_v18  ;;  %513 = vmatprep.subr.bf16.mxu1 %v561_v18 }
  0x23   :  { %268 = vmatpush1.bf16.msra.mxu0 %v563_v19  ;;  %529 = vmatpush1.bf16.msra.mxu1 %v563_v19 }
  0x24   :  { %269 = vmatprep.subr.bf16.mxu0 %v564_v20  ;;  %514 = vmatprep.subr.bf16.mxu1 %v564_v20 }
  0x27   :  { %270 = vmatpush1.bf16.msra.mxu0 %v566_v21  ;;  %530 = vmatpush1.bf16.msra.mxu1 %v566_v21 }
  0x28   :  { %271 = vmatprep.subr.bf16.mxu0 %v567_v22  ;;  %515 = vmatprep.subr.bf16.mxu1 %v567_v22 }
  0x2b   :  { %272 = vmatpush1.bf16.msra.mxu0 %v569_v23  ;;  %531 = vmatpush1.bf16.msra.mxu1 %v569_v23 }
  0x2c   :  { %273 = vmatprep.subr.bf16.mxu0 %v570_v24  ;;  %516 = vmatprep.subr.bf16.mxu1 %v570_v24 }
  0x2f   :  { %274 = vmatpush1.bf16.msra.mxu0 %v572_v25  ;;  %532 = vmatpush1.bf16.msra.mxu1 %v572_v25 }
  0x30   :  { %275 = vmatprep.subr.bf16.mxu0 %v573_v26  ;;  %517 = vmatprep.subr.bf16.mxu1 %v573_v26 }
  0x33   :  { %276 = vmatpush1.bf16.msra.mxu0 %v575_v27  ;;  %533 = vmatpush1.bf16.msra.mxu1 %v575_v27 }
  0x34   :  { %277 = vmatprep.subr.bf16.mxu0 %v576_v28  ;;  %518 = vmatprep.subr.bf16.mxu1 %v576_v28 }
  0x37   :  { %278 = vmatpush1.bf16.msra.mxu0 %v578_v29  ;;  %534 = vmatpush1.bf16.msra.mxu1 %v578_v29 }
  0x38   :  { %279 = vmatprep.subr.bf16.mxu0 %v579_v30  ;;  %519 = vmatprep.subr.bf16.mxu1 %v579_v30 }
  0x3b   :  { %280 = vmatpush1.bf16.msra.mxu0 %v581_v31  ;;  %535 = vmatpush1.bf16.msra.mxu1 %v581_v31 }
  0x3c   :  { %281 = vmatprep.subr.bf16.mxu0 %v582_v32  ;;  %520 = vmatprep.subr.bf16.mxu1 %v582_v32 }
  0x3f   :  { %282 = vmatpush1.bf16.msra.mxu0 %v584_v33  ;;  %536 = vmatpush1.bf16.msra.mxu1 %v584_v33 }
  0x42   :  { %284 = vmatmul.mubr.bf16.vlgmr.msra.gmra.mrb[0].mxu0 %v585_v34  ;;  %294 = vmatmul.mubr.bf16.vlgmr.msra.gmra.mrb[0].mxu1 %v588_v35 }
 0x115   :  { %v285_v49 = vpop.f32.mrb[0].mxu0  ;;  %v295_v50 = vpop.f32.mrb[0].mxu1 }
 0x116   :  { %v286_v53 = vadd.f32 %v285_v49, %v64_v43  ;;  %v296_v54 = vadd.f32 %v295_v50, %v64_v43  ;;  %v287_v55 = vpop.f32.mrb[1].mxu0  ;;  %v297_v56 = vpop.f32.mrb[1].mxu1 }
 0x117   :  { %v288_v59 = vadd.f32 %v287_v55, %v68_v44  ;;  %v298_v60 = vadd.f32 %v297_v56, %v68_v44  ;;  %v289_v61 = vpop.f32.mrb[2].mxu0  ;;  %v299_v63 = vpop.f32.mrb[2].mxu1 }
 0x118   :  { %v290_v1 = vadd.f32 %v289_v61, %v64_v43  ;;  %v291_v2 = vpop.f32.mrb[3].mxu0  ;;  %v300_v3 = vadd.f32 %v299_v63, %v64_v43  ;;  %v301_v4 = vpop.f32.mrb[3].mxu1  ;;  %v320_v5 = vadd.f32 %v312_v47, %v296_v54  ;;  %v316_v6 = vadd.f32 %v308_v48, %v286_v53  ;;  %v389_v61 = vld [vmem:[%s799_s4] sm:$0x3] }
 0x119   :  { %v292_v7 = vadd.f32 %v291_v2, %v68_v44  ;;  %v302_v8 = vadd.f32 %v301_v4, %v68_v44  ;;  %v321_v9 = vadd.f32 %v313_v51, %v298_v60  ;;  %v317_v10 = vadd.f32 %v309_v52, %v288_v59 }
 0x11a   :  { %v318_v11 = vadd.f32 %v310_v57, %v290_v1  ;;  %v322_v12 = vadd.f32 %v314_v58, %v300_v3  ;;  %v394_v63 = vrot.slane %v389_v61, %v742_v38 }
 0x11b   :  { %v319_v13 = vadd.f32 %v311_v62, %v292_v7  ;;  %v323_v14 = vadd.f32 %v315_v0, %v302_v8  ;;  %v330_v15 = vadd.f32 %v321_v9, %v320_v5  ;;  %v324_v16 = vadd.f32 %v317_v10, %v316_v6  ;;  %v409_v62 = vld [vmem:[%s800_s5] sm:$0x3] }
 0x11c   :  { %v398_v0 = vrot.slane %v389_v61, %v747_v40  ;;  %v414_v2 = vrot.slane %v409_v62, %v742_v38  ;;  %v418_v3 = vrot.slane %v409_v62, %v747_v40 }
 0x11d   :  { %331 = vadd.xlane.f32.xlu1 %v330_v15  ;;  %325 = vadd.xlane.f32.xlu0 %v324_v16  ;;  %v333_v17 = vadd.f32 %v323_v14, %v322_v12  ;;  %v327_v18 = vadd.f32 %v319_v13, %v318_v11 }
 0x121   :  { %334 = vadd.xlane.f32.xlu1 %v333_v17  ;;  %328 = vadd.xlane.f32.xlu0 %v327_v18 }
 0x1aa   :  { %v332_v19 = vpop.xlane.xlu1 %331  ;;  %v326_v20 = vpop.xlane.xlu0 %325 }
 0x1ab   :  { %v339_v21 = vmul.f32 0.00390625, %v332_v19  ;;  %v337_v22 = vmul.f32 0.00390625, %v326_v20 }
 0x1ad   :  { %v341_v23 = vsub.f32 %v316_v6, %v337_v22  ;;  %v342_v24 = vsub.f32 %v317_v10, %v337_v22  ;;  %v345_v25 = vsub.f32 %v320_v5, %v339_v21  ;;  %v346_v26 = vsub.f32 %v321_v9, %v339_v21 }
 0x1ae   :  { %v335_v27 = vpop.xlane.xlu1 %334  ;;  %v329_v28 = vpop.xlane.xlu0 %328 }
 0x1af   :  { %v340_v29 = vmul.f32 0.00390625, %v335_v27  ;;  %v338_v30 = vmul.f32 0.00390625, %v329_v28  ;;  %v349_v31 = vmul.f32 %v341_v23, %v341_v23  ;;  %v350_v32 = vmul.f32 %v342_v24, %v342_v24 }
 0x1b0   :  { %v353_v39 = vmul.f32 %v345_v25, %v345_v25  ;;  %v354_v41 = vmul.f32 %v346_v26, %v346_v26 }
 0x1b1   :  { %v763_v33 = vsub.f32 %v322_v12, %v340_v29  ;;  %v765_v34 = vsub.f32 %v323_v14, %v340_v29  ;;  %v343_v35 = vsub.f32 %v318_v11, %v338_v30  ;;  %v344_v36 = vsub.f32 %v319_v13, %v338_v30 }
 0x1b2   :  { %v357_v37 = vadd.f32 %v350_v32, %v349_v31  ;;  %v363_v47 = vadd.f32 %v354_v41, %v353_v39 }
 0x1b3   :  { %v351_v42 = vmul.f32 %v343_v35, %v343_v35  ;;  %v352_v43 = vmul.f32 %v344_v36, %v344_v36  ;;  %v355_v45 = vmul.f32 %v763_v33, %v763_v33  ;;  %v356_v46 = vmul.f32 %v765_v34, %v765_v34 }
 0x1b4   :  { %358 = vadd.xlane.f32.xlu0 %v357_v37 }
 0x1b5   :  { %v360_v44 = vadd.f32 %v352_v43, %v351_v42  ;;  %v366_v48 = vadd.f32 %v356_v46, %v355_v45 }
 0x1b7   :  { %361 = vadd.xlane.f32.xlu1 %v360_v44 }
 0x1b8   :  { %364 = vadd.xlane.f32.xlu0 %v363_v47 }
 0x1bb   :  { %367 = vadd.xlane.f32.xlu1 %v366_v48 }
 0x241   :  { %v359_v49 = vpop.xlane.xlu0 %358 }
 0x242   :  { %v369_v50 = vmul.f32 0.00390625, %v359_v49 }
 0x244   :  { %v373_v51 = vadd.f32 1e-05, %v369_v50  ;;  %v362_v52 = vpop.xlane.xlu1 %361 }
 0x245   :  { %v370_v53 = vmul.f32 0.00390625, %v362_v52  ;;  %v365_v54 = vpop.xlane.xlu0 %364 }
 0x246   :  { %591 = vrsqrt.f32 %v373_v51  ;;  %v371_v55 = vmul.f32 0.00390625, %v365_v54 }
 0x247   :  { %v374_v56 = vadd.f32 1e-05, %v370_v53 }
 0x248   :  { %v375_v57 = vadd.f32 1e-05, %v371_v55  ;;  %v368_v58 = vpop.xlane.xlu1 %367 }
 0x249   :  { %593 = vrsqrt.f32 %v374_v56  ;;  %v372_v59 = vmul.f32 0.00390625, %v368_v58 }
 0x24a   :  { %595 = vrsqrt.f32 %v375_v57 }
 0x24b   :  { %v376_v60 = vadd.f32 1e-05, %v372_v59 }
 0x24d   :  { %597 = vrsqrt.f32 %v376_v60 }
 0x250   :  { %v592_v1 = vpop.eup %591 }
 0x251   :  { %v381_v4 = vmul.f32 %v592_v1, %v341_v23  ;;  %v382_v5 = vmul.f32 %v592_v1, %v342_v24 }
 0x253   :  { %v594_v6 = vpop.eup %593  ;;  %v401_v7 = vmul.f32 %v394_v63, %v381_v4  ;;  %v402_v8 = vmul.f32 %v398_v0, %v382_v5 }
 0x254   :  { %v596_v9 = vpop.eup %595  ;;  %v383_v10 = vmul.f32 %v594_v6, %v343_v35  ;;  %v384_v11 = vmul.f32 %v594_v6, %v344_v36 }
 0x255   :  { %v421_v12 = vadd.f32 %v414_v2, %v401_v7  ;;  %v422_v13 = vadd.f32 %v418_v3, %v402_v8  ;;  %v385_v14 = vmul.f32 %v596_v9, %v345_v25  ;;  %v386_v15 = vmul.f32 %v596_v9, %v346_v26 }
 0x256   :  { %v403_v16 = vmul.f32 %v394_v63, %v383_v10  ;;  %v404_v17 = vmul.f32 %v398_v0, %v384_v11 }
 0x257   :  { %v598_v18 = vpop.eup %597  ;;  %v501_v19 = vpack.c.bf16 %v422_v13, %v421_v12  ;;  %v405_v20 = vmul.f32 %v394_v63, %v385_v14  ;;  %v406_v38 = vmul.f32 %v398_v0, %v386_v15 }
 0x258   :  { %v423_v21 = vadd.f32 %v414_v2, %v403_v16  ;;  %v424_v40 = vadd.f32 %v418_v3, %v404_v17  ;;  %v387_v22 = vmul.f32 %v598_v18, %v763_v33  ;;  %v388_v23 = vmul.f32 %v598_v18, %v765_v34 }
 0x259   :  { %453 = vst [vmem:[%s801_s6] sm:$0xff] %v501_v19  ;;  %v425_v24 = vadd.f32 %v414_v2, %v405_v20  ;;  %v426_v27 = vadd.f32 %v418_v3, %v406_v38 }
 0x25a   :  { %v502_v25 = vpack.c.bf16 %v424_v40, %v423_v21  ;;  %v407_v26 = vmul.f32 %v394_v63, %v387_v22  ;;  %v408_v28 = vmul.f32 %v398_v0, %v388_v23 }
 0x25b   :  { %v503_v29 = vpack.c.bf16 %v426_v27, %v425_v24 }
 0x25c   :  { %454 = vst [vmem:[%s801_s6 + $0x8] sm:$0xff] %v502_v25  ;;  %v427_v30 = vadd.f32 %v414_v2, %v407_v26  ;;  %v428_v31 = vadd.f32 %v418_v3, %v408_v28 }
 0x25d   :  { %455 = vst [vmem:[%s801_s6 + $0x10] sm:$0xff] %v503_v29 }
 0x25e   :  { %v504_v32 = vpack.c.bf16 %v428_v31, %v427_v30 }
 0x260   :  { %456 = vst [vmem:[%s801_s6 + $0x18] sm:$0xff] %v504_v32 }

// kernel: forward_train.33
= control target key start
LH: loop header
LB: loop body
LE: loop exit
PB: predicated region body
PF: predicated region fallthrough
CT: control target
= control target key end

     0   :  { %s952_s18 = smov 0   ;;  %s954_s19 = smov 0   ;;  %s1058_s0 = inlined_call_operand.vmem [shape: bf16[2,16,256], index: 0, kind: input, shape index: {}]   ;;  %s1059_s1 = inlined_call_operand.vmem [shape: bf16[6,256,128], index: 1, kind: input, shape index: {}]   ;;  %s1060_s2 = inlined_call_operand.vmem [shape: f32[6,1,128], index: 2, kind: input, shape index: {}]   ;;  %s1061_s3 = inlined_call_operand.vmem [shape: f32[16,128], index: 3, kind: input, shape index: {}]   ;;  %s1062_s4 = inlined_call_operand.vmem [shape: f32[16,128], index: 4, kind: input, shape index: {}]   ;;  %s1063_s5 = inlined_call_operand.vmem [shape: bf16[2,6,16,128], index: 5, kind: output, shape index: {}]  }
   0x1   :  { %s956_s20 = smov 0   ;;  %s958_s21 = smov 0  }
   0x2   :  { %s960_s22 = smov 0  }
   0x3 LB: > { %s30_s23 = sadd.s32 1, %s911_s20  ;;  %s34_s24 = sadd.s32 1, %s915_s21  ;;  %s919_s22 = sphi %s960_s22, %s15_s22   ;;  %s915_s21 = sphi %s958_s21, %s1067_s21   ;;  %s911_s20 = sphi %s956_s20, %s1066_s20   ;;  %s907_s19 = sphi %s954_s19, %s1065_s19   ;;  %s903_s18 = sphi %s952_s18, %s1064_s18  }
   0x4   : > { %p32_p0 = scmp.ge.s32.totalorder %s30_s23, 2  ;;  %p759_p1 = scmp.ge.s32.totalorder %s919_s22, 1 }
   0x5   : > { %p258_p2 = scmp.lt.s32.totalorder %s919_s22, 13 }
   0x6   : > { %s1069_s23 = smov (%p32_p0, %s30_s23), 0  ;;  %s1071_s24 = smov (!%p32_p0, %s34_s24), %s915_s21 }
   0x7   : > { %p259_p3 = pnand %p759_p1, %p258_p2  ;;  %p36_p4 = scmp.ge.s32.totalorder %s1071_s24, 6 }
   0x8   : > { %p328_p5 = scmp.lt.s32.totalorder (!%p259_p3), %s907_s19, 5  ;;  %p318_p6 = scmp.lt.s32.totalorder (!%p259_p3), %s903_s18, 1  ;;  %v551_v27 = vld [vmem:[%s1062_s4] sm:$0xff] (!%p259_p3)  ;;  %v552_v32 = vld [vmem:[%s1062_s4 + $0x8] sm:$0xff] (!%p259_p3) }
   0x9   : > { %s1073_s24 = smov (%p36_p4, %s1071_s24), 0  ;;  %262 = sbr.rel (%p259_p3) target bundleno = 404 (0x194), region = 40 }
   0xa   : > { %s921_s12 = smov (!%p259_p3), 64   ;;  %p565_p7 = scmp.lt.s32.totalorder (!%p259_p3), %s907_s19, 4  ;;  %v559_v28 = vld [vmem:[%s1061_s3] sm:$0xff] (!%p259_p3)  ;;  %v560_v33 = vld [vmem:[%s1061_s3 + $0x8] sm:$0xff] (!%p259_p3) }
   0xb   : > { %p568_p8 = scmp.lt.s32.totalorder (!%p259_p3), %s907_s19, 2 }
  0x10   : > { %s988_s25 = scalar_select %p328_p5, %s907_s19, 5 }
  0x11   : > { %s1075_s18 = smov (!%p318_p6, %s903_s18), 1 }
  0x12   : > { %s790_s26 = sshll.u32 %s988_s25, 7  ;;  %s789_s30 = sshll.u32 %s1075_s18, 4 }
  0x13   : > { %s994_s29 = scalar_lea.vmem %s1059_s1, %s790_s26  ;;  %s326_s8 = scalar_lea.vmem %s1058_s0, %s789_s30 }
  0x14   : > { %v862_v0 = vld [vmem:[%s994_s29 + $0x40] sm:$0xff]   ;;  %v864_v2 = vld [vmem:[%s994_s29 + $0x48] sm:$0xff]   ;;  %v866_v4 = vld [vmem:[%s994_s29 + $0x50] sm:$0xff]   ;;  %s335_s11 = scalar_lea.vmem %s1060_s2, %s988_s25  ;;  %s820_s6 = smul.u32 12, %s1075_s18 }
  0x15   : > { %v863_v1 = vld [vmem:[%s994_s29] sm:$0xff]   ;;  %798 = vmatprep.subr.bf16.mxu0 %v862_v0  ;;  %v865_v3 = vld [vmem:[%s994_s29 + $0x8] sm:$0xff]   ;;  %v867_v5 = vld [vmem:[%s994_s29 + $0x10] sm:$0xff]   ;;  %s566_s13 = scalar_select %p565_p7, 1, 0 }
  0x16   : > { %799 = vmatpush3.bf16.msra.mxu0 %v863_v1  ;;  %v868_v6 = vld [vmem:[%s994_s29 + $0x58] sm:$0xff]   ;;  %v870_v8 = vld [vmem:[%s994_s29 + $0x60] sm:$0xff]   ;;  %v872_v10 = vld [vmem:[%s994_s29 + $0x68] sm:$0xff]   ;;  %s764_s7 = sshll.u32 %s988_s25, 1 }
  0x17   : > { %800 = vmatprep.subr.bf16.mxu0 %v864_v2  ;;  %v869_v7 = vld [vmem:[%s994_s29 + $0x18] sm:$0xff]   ;;  %v871_v9 = vld [vmem:[%s994_s29 + $0x20] sm:$0xff]   ;;  %v873_v12 = vld [vmem:[%s994_s29 + $0x28] sm:$0xff]   ;;  %s567_s26 = scvt.s32.f32 %s566_s13  ;;  %s358_s9 = sadd.s32 %s820_s6, %s764_s7 }
  0x18   : > { %v880_v11 = vld [vmem:[%s326_s8 + $0x4] ss:$8 sps:$4 sm:$0xff]   ;;  %v874_v13 = vld [vmem:[%s994_s29 + $0x70] sm:$0xff]   ;;  %v876_v15 = vld [vmem:[%s994_s29 + $0x78] sm:$0xff]   ;;  %s765_s10 = sshll.u32 %s358_s9, 2 }
  0x19   : > { %542 = vmatprep.mubr.bf16.mxu0 %v880_v11  ;;  %v875_v14 = vld [vmem:[%s994_s29 + $0x30] sm:$0xff]   ;;  %v877_v16 = vld [vmem:[%s994_s29 + $0x38] sm:$0xff]   ;;  %v878_v17 = vld [vmem:[%s326_s8] ss:$8 sps:$4 sm:$0xff]   ;;  %v572_v35 = vstv %s567_s26 }
  0x1a   : > { %801 = vmatpush3.bf16.msra.mxu0 %v865_v3  ;;  %v766_v19 = vld [vmem:[%s335_s11] ss:$0 sm:$0xff]  ;;  %s569_s8 = scalar_select %p568_p8, 0.088388346, 1.0 }
  0x1b   : > { %802 = vmatprep.subr.bf16.mxu0 %v866_v4 }
  0x1c   : > { %v577_v45 = vstv %s569_s8 }
  0x1e   : > { %803 = vmatpush3.bf16.msra.mxu0 %v867_v5 }
  0x1f   : > { %804 = vmatprep.subr.bf16.mxu0 %v868_v6 }
  0x22   : > { %805 = vmatpush3.bf16.msra.mxu0 %v869_v7 }
  0x23   : > { %806 = vmatprep.subr.bf16.mxu0 %v870_v8 }
  0x26   : > { %807 = vmatpush3.bf16.msra.mxu0 %v871_v9 }
  0x27   : > { %808 = vmatprep.subr.bf16.mxu0 %v872_v10 }
  0x2a   : > { %809 = vmatpush3.bf16.msra.mxu0 %v873_v12 }
  0x2b   : > { %810 = vmatprep.subr.bf16.mxu0 %v874_v13 }
  0x2e   : > { %811 = vmatpush3.bf16.msra.mxu0 %v875_v14 }
  0x2f   : > { %812 = vmatprep.subr.bf16.mxu0 %v876_v15 }
  0x32   : > { %813 = vmatpush3.bf16.msra.mxu0 %v877_v16 }
  0x35   : > { %543 = vmatmul.mubr.bf16.vlgmr.msra.gmra.mrb[0].mxu0 %v878_v17 }
 0x108   : > { %v814_v18 = vpop.f32.mrb[0].mxu0 }
 0x109   : > { %v815_v20 = vpop.f32.mrb[1].mxu0 }
 0x10a   : > { %v816_v21 = vadd.f32 %v815_v20, %v814_v18  ;;  %v817_v22 = vpop.f32.mrb[2].mxu0 }
 0x10b   : > { %v818_v23 = vpop.f32.mrb[3].mxu0 }
 0x10c   : > { %v545_v24 = vadd.f32 %v816_v21, %v766_v19  ;;  %v819_v25 = vadd.f32 %v818_v23, %v817_v22 }
 0x10e   : > { %555 = vrot.lane.b32.xlu0 %v545_v24, %s921_s12  ;;  %v548_v26 = vadd.f32 %v819_v25, %v766_v19  ;;  %v553_v30 = vmul.f32 %v551_v27, %v545_v24 }
 0x110   : > { %v554_v38 = vmul.f32 %v552_v32, %v548_v26 }
 0x112   : > { %557 = vrot.lane.b32.xlu0 %v548_v26, %s921_s12  ;;  %s360_s12 = scalar_lea.vmem %s1063_s5, %s765_s10 }
 0x180   : > { %v556_v29 = vpop.permute.xlu0 %555 }
 0x181   : > { %v561_v31 = vmul.f32 %v559_v28, %v556_v29 }
 0x183   : > { %v563_v34 = vadd.f32 %v561_v31, %v553_v30 }
 0x184   : > { %v558_v36 = vpop.permute.xlu0 %557 }
 0x185   : > { %v570_v37 = vsub.f32 %v563_v34, %v545_v24  ;;  %v562_v39 = vmul.f32 %v560_v33, %v558_v36 }
 0x187   : > { %v573_v40 = vmul.f32 %v572_v35, %v570_v37  ;;  %v564_v41 = vadd.f32 %v562_v39, %v554_v38 }
 0x189   : > { %v571_v42 = vsub.f32 %v564_v41, %v548_v26  ;;  %v575_v43 = vadd.f32 %v573_v40, %v545_v24 }
 0x18b   : > { %v574_v44 = vmul.f32 %v572_v35, %v571_v42  ;;  %v578_v47 = vmul.f32 %v577_v45, %v575_v43 }
 0x18d   : > { %v576_v46 = vadd.f32 %v574_v44, %v548_v26 }
 0x18f   : > { %v579_v48 = vmul.f32 %v577_v45, %v576_v46 }
 0x191   : > { %v796_v49 = vpack.c.bf16 %v579_v48, %v578_v47 }
 0x193   : > { %797 = vst [vmem:[%s360_s12] sm:$0xff] %v796_v49  }
 0x194 PF: > { %s15_s22 = sadd.s32 1, %s919_s22   ;;  %s1064_s18 = smov %s911_s20 }
 0x195   : > { %p12_p9 = scmp.ge.s32.totalorder %s15_s22, 14   ;;  %s1065_s19 = smov %s915_s21 }
 0x196   : > { %s1066_s20 = smov %s1069_s23  ;;  %s1067_s21 = smov %s1073_s24 }
 0x197   :  { %14 = sbr.rel (!%p12_p9) target bundleno = 3 (0x3), region = 82 }

// kernel: forward_train.26
= control target key start
LH: loop header
LB: loop body
LE: loop exit
PB: predicated region body
PF: predicated region fallthrough
CT: control target
= control target key end

     0   :  { %s1039_s15 = smov 0   ;;  %s1041_s16 = smov 0   ;;  %s1167_s0 = inlined_call_operand.vmem [shape: bf16[2,6,16,128], index: 0, kind: input, shape index: {}, may-alias: {0,1,2}]   ;;  %s1168_s1 = inlined_call_operand.vmem [shape: bf16[2,6,16,128], index: 1, kind: input, shape index: {}, may-alias: {0,1,2}]   ;;  %s1169_s2 = inlined_call_operand.vmem [shape: bf16[2,6,16,128], index: 2, kind: input, shape index: {}, may-alias: {0,1,2}]   ;;  %s1170_s3 = inlined_call_operand.vmem [shape: f32[2,1,16], index: 3, kind: input, shape index: {}]   ;;  %s1171_s4 = inlined_call_operand.vmem [shape: bf16[2,16,256], index: 4, kind: output, shape index: {}]  }
   0x1   :  { %s1043_s17 = smov 0   ;;  %s1045_s18 = smov 0  }
   0x2   :  { %s1047_s19 = smov 0   ;;  %s1049_s20 = smov 0  }
   0x3   :  { %s1051_s21 = smov 0  }
   0x4 LB: > { %s36_s22 = sadd.s32 1, %s1000_s19  ;;  %s40_s23 = sadd.s32 1, %s1004_s20  ;;  %s1008_s21 = sphi %s1051_s21, %s14_s21   ;;  %s1004_s20 = sphi %s1049_s20, %s1184_s20   ;;  %s1000_s19 = sphi %s1047_s19, %s1183_s19   ;;  %s996_s18 = sphi %s1045_s18, %s1182_s18   ;;  %s992_s17 = sphi %s1043_s17, %s1181_s17   ;;  %s988_s16 = sphi %s1041_s16, %s1180_s16   ;;  %s984_s15 = sphi %s1039_s15, %s1179_s15  }
   0x5   : > { %p38_p0 = scmp.ge.s32.totalorder %s36_s22, 2  ;;  %s830_s24 = sadd.s32 4294967295, %s1008_s21  }
   0x6   : > { %p183_p1 = scmp.ne.s32.totalorder %s988_s16, %s984_s15  ;;  %p184_p2 = scmp.eq.s32.totalorder %s830_s24, 3 }
   0x7   : > { %s1186_s22 = smov (%p38_p0, %s36_s22), 0  ;;  %s1188_s23 = smov (!%p38_p0, %s40_s23), %s1004_s20 }
   0x8   : > { %1174 = sst [smem:[#allocation6_spill]] %s1186_s22  ;;  %s169_s25 = ssub.s32 %s1000_s19, %s1186_s22 }
   0x9   : > { %p42_p3 = scmp.ge.s32.totalorder %s1188_s23, 2  ;;  %p834_p4 = scmp.ge.s32.totalorder %s1008_s21, 1 }
   0xa   : > { %p1085_p5 = por %p184_p2, %p183_p1  ;;  %p272_p6 = scmp.lt.s32.totalorder %s1008_s21, 5 }
   0xb   : > { %s1190_s23 = smov (%p42_p3, %s1188_s23), 0  ;;  %s173_s29 = sadd.s32 1, %s988_s16 }
   0xc   : > { %1176 = sst [smem:[#allocation7_spill]] %s1190_s23  ;;  %p273_p7 = pnand %p834_p4, %p272_p6 }
   0xd   : > { %s166_s27 = ssub.s32 %s1004_s20, %s1190_s23  ;;  %p340_p9 = scmp.lt.s32.totalorder (!%p273_p7), %s996_s18, 1  ;;  %v1010_v0 = vmov (!%p273_p7), 0.0   ;;  %vm1011_vm0 = vmmov (!%p273_p7), 0   ;;  %v1012_v4 = vmov (!%p273_p7), 0   ;;  %vm397_vm2 = vcmask (!%p273_p7), 7168  }
   0xe   : > { %s170_s28 = sor.u32 %s169_s25, %s166_s27  ;;  %276 = sbr.rel (%p273_p7) target bundleno = 849 (0x351), region = 36  ;;  %864 = vmatprep.subr.bf16.mxu0 (!%p273_p7), %v1010_v0  ;;  %866 = vmatprep.mubr.msk.bf16.mxu0 (!%p273_p7), %vm1011_vm0, %v1010_v0  ;;  %v1013_v6 = vmov (!%p273_p7), -1e+30   ;;  %400 = vst.msk [vmem:[#allocation3] sm:$0xff] (!%p273_p7), %vm397_vm2, %v1010_v0  ;;  %401 = vst.msk [vmem:[#allocation3 + $0x8] sm:$0xff] (!%p273_p7), %vm397_vm2, %v1010_v0  ;;  %v464_v7 = vlaneseq (!%p273_p7)  ;;  %vm473_vm4 = vcmask (!%p273_p7), 130048  }
   0xf   : > { %p171_p8 = scmp.eq.s32.totalorder %s170_s28, 0  ;;  %s353_s5 = sadd.s32 (!%p273_p7), 2, %s992_s17  ;;  %870 = vmatprep.subr.bf16.mxu1 (!%p273_p7), %v1010_v0  ;;  %872 = vmatprep.mubr.msk.bf16.mxu1 (!%p273_p7), %vm1011_vm0, %v1010_v0  ;;  %398 = vst.msk [vmem:[#allocation2] sm:$0xff] (!%p273_p7), %vm397_vm2, %v1013_v6  ;;  %399 = vst.msk [vmem:[#allocation2 + $0x8] sm:$0xff] (!%p273_p7), %vm397_vm2, %v1013_v6 }
  0x10   : > { %p357_p10 = scmp.lt.s32.totalorder (!%p273_p7), %s353_s5, 5  ;;  %p342_p11 = scmp.lt.s32.totalorder (!%p273_p7), %s992_s17, 5  ;;  %937 = vset.pattern.permute.xlu1 (!%p273_p7), %v1012_v4  ;;  %938 = vset.pattern.permute.xlu0 (!%p273_p7), %v1012_v4  ;;  %v465_v8 = vshrl.u32 (!%p273_p7), %v464_v7, 7 }
  0x11   : > { %s1096_s30 = scalar_select %p171_p8, %s988_s16, %s173_s29  }
  0x12   : > { %v466_v9 = vsub.s32 (!%p273_p7), 0, %v465_v8  ;;  %s369_s22 = sadd.s32 (!%p273_p7), 4, %s992_s17 }
  0x13   : > { %p373_p12 = scmp.lt.s32.totalorder (!%p273_p7), %s369_s22, 5 }
  0x15   : > { %s341_s6 = scalar_select %p340_p9, %s996_s18, 1  ;;  %v506_v45 = vld [vmem:[#allocation3] sm:$0xff]  ;;  %v507_v48 = vld [vmem:[#allocation3 + $0x8] sm:$0xff] }
  0x16   : > { %s1192_s5 = smov (!%p357_p10, %s353_s5), 5  ;;  %v471_v19 = vld [vmem:[#allocation2] sm:$0xff]  ;;  %v472_v22 = vld [vmem:[#allocation2 + $0x8] sm:$0xff]  ;;  %s1194_s22 = smov (!%p373_p12, %s369_s22), 5 }
  0x17   : > { %s1101_s7 = smul.u32 12, %s341_s6  ;;  %s838_s8 = sshll.u32 %s1192_s5, 1 }
  0x18   : > { %s343_s14 = scalar_select %p342_p11, %s992_s17, 5 }
  0x19   : > { %s364_s9 = sadd.s32 %s1101_s7, %s838_s8  ;;  %s390_s8 = scalar_lea.vmem %s1170_s3, %s341_s6 }
  0x1a   : > { %s839_s10 = sshll.u32 %s364_s9, 2  ;;  %s836_s24 = sshll.u32 %s343_s14, 1  ;;  %v461_v3 = vld [vmem:[%s390_s8] sm:$0x1] }
  0x1b   : > { %s366_s13 = scalar_lea.vmem %s1168_s1, %s839_s10  ;;  %s349_s25 = sadd.s32 %s1101_s7, %s836_s24  ;;  %vm462_vm1 = vcmp.gt.f32.partialorder %v461_v3, 0.0 }
  0x1c   : > { %v939_v1 = vld [vmem:[%s366_s13] sm:$0xff]   ;;  %s837_s27 = sshll.u32 %s349_s25, 2  ;;  %v463_v5 = vsel %vm462_vm1, 1, %v1012_v4  ;;  %s849_s24 = sshll.u32 (%p1085_p5), %s996_s18, 2 }
  0x1d   : > { %865 = vmatpush3.bf16.xpose.msra.mxu0 %v939_v1  ;;  %s351_s23 = scalar_lea.vmem %s1167_s0, %s837_s27  ;;  %v467_v10 = vrot.slane %v463_v5, %v466_v9  ;;  %s640_s25 = sadd.s32 (%p1085_p5), %s992_s17, %s849_s24 }
  0x1e   : > { %v940_v2 = vld [vmem:[%s351_s23] sm:$0xff]   ;;  %s840_s23 = sshll.u32 %s1194_s22, 1 }
  0x1f   : > { %vm468_vm3 = vcmp.eq.s32.totalorder %v467_v10, 1  ;;  %s380_s6 = sadd.s32 %s1101_s7, %s840_s23  ;;  %s336_s7 = sand.u32 1, %s984_s15  }
  0x20   : > { %s841_s9 = sshll.u32 %s380_s6, 2  ;;  %s835_s13 = sshll.u32 %s336_s7, 3 }
  0x21   : > { %s382_s12 = scalar_lea.vmem %s1169_s2, %s841_s9  ;;  %s338_s14 = scalar_lea.vmem [#allocation5], %s835_s13 }
  0x22   : > { %v941_v27 = vld [vmem:[%s382_s12] sm:$0xff]   ;;  %s850_s15 = sshll.u32 (%p1085_p5), %s640_s25, 2 }
  0x23   : > { %871 = vmatpush3.bf16.msra.mxu1 %v941_v27  ;;  %s642_s29 = scalar_lea.vmem (%p1085_p5), %s1171_s4, %s850_s15 }
  0x24   : > { %867 = vmatmul.mubr.bf16.vlgmr.msra.gmra.mrb[0].mxu0 %v940_v2 }
  0xf7   : > { %v454_v11 = vpop.f32.mrb[0].mxu0 }
  0xf8   : > { %v469_v12 = vsel %vm468_vm3, %v454_v11, -1e+30  ;;  %v868_v13 = vpop.f32.mrb[1].mxu0 }
  0xf9   : > { %v457_v14 = vpop.f32.mrb[2].mxu0  ;;  %v474_v15 = vsel %vm473_vm4, %v469_v12, -inf }
  0xfa   : > { %v470_v16 = vsel %vm468_vm3, %v457_v14, -1e+30  ;;  %475 = vmax.xlane.f32.xlu0 %v474_v15  ;;  %v869_v17 = vpop.f32.mrb[3].mxu0 }
  0xfb   : > { %v477_v18 = vsel %vm473_vm4, %v470_v16, -inf }
  0xfe   : > { %478 = vmax.xlane.f32.xlu0 %v477_v18 }
 0x187   : > { %v476_v20 = vpop.xlane.xlu0 %475 }
 0x188   : > { %v480_v21 = vmax.f32 %v471_v19, %v476_v20 }
 0x18a   : > { %v482_v23 = vsub.f32 %v471_v19, %v480_v21  ;;  %592 = vst.msk [vmem:[#allocation2] sm:$0xff] %vm397_vm2, %v480_v21  ;;  %490 = vperm.xlu1 %937, %v480_v21  }
 0x18b   : > { %v479_v24 = vpop.xlane.xlu0 %478 }
 0x18c   : > { %v481_v25 = vmax.f32 %v472_v22, %v479_v24  ;;  %v484_v42 = vmul.f32 1.442695, %v482_v23 }
 0x18e   : > { %v483_v26 = vsub.f32 %v472_v22, %v481_v25  ;;  %593 = vst.msk [vmem:[#allocation2 + $0x8] sm:$0xff] %vm397_vm2, %v481_v25  ;;  %495 = vperm.xlu1 %937, %v481_v25  }
 0x190   : > { %v486_v41 = vmul.f32 1.442695, %v483_v26 }
 0x209   : > { %v491_v28 = vpop.permute.xlu1 %490 }
 0x20a   : > { %v498_v29 = vsub.f32 %v469_v12, %v491_v28 }
 0x20c   : > { %v500_v30 = vmul.f32 1.442695, %v498_v29 }
 0x20d   : > { %v496_v31 = vpop.permute.xlu1 %495 }
 0x20e   : > { %942 = vpow2.f32 %v500_v30  ;;  %v499_v32 = vsub.f32 %v470_v16, %v496_v31 }
 0x210   : > { %v502_v33 = vmul.f32 1.442695, %v499_v32 }
 0x212   : > { %944 = vpow2.f32 %v502_v33 }
 0x213   : > { %946 = vpow2.f32 %v486_v41 }
 0x214   : > { %948 = vpow2.f32 %v484_v42 }
 0x218   : > { %v943_v34 = vpop.eup %942 }
 0x219   : > { %v504_v35 = vsel %vm468_vm3, %v943_v34, 0.0 }
 0x21a   : > { %v510_v36 = vsel %vm473_vm4, %v504_v35, 0.0 }
 0x21b   : > { %511 = vadd.xlane.f32.xlu0 %v510_v36 }
 0x21c   : > { %v945_v37 = vpop.eup %944 }
 0x21d   : > { %v505_v38 = vsel %vm468_vm3, %v945_v37, 0.0  ;;  %v947_v43 = vpop.eup %946 }
 0x21e   : > { %v513_v39 = vsel %vm473_vm4, %v505_v38, 0.0  ;;  %v535_v40 = vpack.c.bf16 %v505_v38, %v504_v35  ;;  %v949_v44 = vpop.eup %948  ;;  %v509_v50 = vmul.f32 %v947_v43, %v507_v48 }
 0x21f   : > { %514 = vadd.xlane.f32.xlu1 %v513_v39  ;;  %v508_v46 = vmul.f32 %v949_v44, %v506_v45 }
 0x220   : > { %873 = vmatmul.mubr.msk.bf16.vlgmr.msra.gmra.mrb[0].mxu1 %vm473_vm4, %v535_v40 }
 0x230   : > { %530 = vperm.xlu1 %937, %v947_v43  }
 0x231   : > { %525 = vperm.xlu0 %938, %v949_v44  }
 0x2a8   : > { %v512_v47 = vpop.xlane.xlu0 %511 }
 0x2a9   : > { %v516_v49 = vadd.f32 %v512_v47, %v508_v46 }
 0x2ab   : > { %519 = vst.msk [vmem:[#allocation3] sm:$0xff] %vm397_vm2, %v516_v49 }
 0x2ac   : > { %v515_v51 = vpop.xlane.xlu1 %514 }
 0x2ad   : > { %v517_v52 = vadd.f32 %v515_v51, %v509_v50 }
 0x2af   : > { %520 = vst.msk [vmem:[#allocation3 + $0x8] sm:$0xff] %vm397_vm2, %v517_v52 }
 0x2b0   : > { %v526_v63 = vpop.permute.xlu0 %525  ;;  %v531_v0 = vpop.permute.xlu1 %530 }
 0x2b1   : > { %v534_v2 = vmul.f32 0.0, %v531_v0  ;;  %v533_v3 = vmul.f32 0.0, %v526_v63 }
 0x2b2   : > { %v597_v53 = vld [vmem:[#allocation3] sm:$0xff] }
 0x2b3   : > { %vm599_vm5 = vcmp.gt.f32.partialorder %v597_v53, 0.0 }
 0x2b4   : > { %v601_v54 = vsel %vm599_vm5, %v597_v53, 1.0 }
 0x2b5   : > { %950 = vrcp.f32 %v601_v54 }
 0x2b6   : > { %v598_v55 = vld [vmem:[#allocation3 + $0x8] sm:$0xff] }
 0x2b7   : > { %vm600_vm6 = vcmp.gt.f32.partialorder %v598_v55, 0.0 }
 0x2b8   : > { %v602_v56 = vsel %vm600_vm6, %v598_v55, 1.0 }
 0x2b9   : > { %952 = vrcp.f32 %v602_v56 }
 0x2bf   : > { %v951_v57 = vpop.eup %950 }
 0x2c0   : > { %609 = vperm.xlu0 %938, %v951_v57  }
 0x2c3   : > { %v953_v58 = vpop.eup %952 }
 0x2c4   : > { %614 = vperm.xlu0 %938, %v953_v58  }
 0x2f3   : > { %v581_v59 = vpop.f32.mrb[0].mxu1 }
 0x2f4   : > { %v874_v60 = vpop.f32.mrb[1].mxu1  ;;  %v588_v4 = vadd.f32 %v581_v59, %v533_v3 }
 0x2f5   : > { %v584_v61 = vpop.f32.mrb[2].mxu1 }
 0x2f6   : > { %v875_v62 = vpop.f32.mrb[3].mxu1  ;;  %v589_v5 = vadd.f32 %v584_v61, %v534_v2 }
 0x33f   : > { %v610_v1 = vpop.permute.xlu0 %609 }
 0x340   : > { %v617_v7 = vmul.f32 %v610_v1, %v588_v4 }
 0x342   : > { %635 = sbr.rel (!%p1085_p5) target bundleno = 849 (0x351), region = 48 }
 0x343   : > { %v615_v6 = vpop.permute.xlu0 %614 }
 0x344   : > { %v618_v8 = vmul.f32 %v615_v6, %v589_v5 }
 0x346   : > { %v858_v9 = vpack.c.bf16 %v618_v8, %v617_v7 }
 0x348   : > { %859 = vst [vmem:[%s338_s14] sm:$0xff] %v858_v9  }
 0x34f   : > { %v658_v10 = vld [vmem:[%s338_s14] sm:$0xf]  ;;  %v660_v11 = vld [vmem:[%s338_s14 + $0x4] sm:$0xf] }
 0x350   : > { %659 = vst [vmem:[%s642_s29] sm:$0xf] %v658_v10  ;;  %661 = vst [vmem:[%s642_s29 + $0x8] sm:$0xf] %v660_v11 }
 0x351 PF: > { %s14_s21 = sadd.s32 1, %s1008_s21   ;;  %s1177_s26 = sld [smem:[#allocation6_spill]] }
 0x352   : > { %p11_p13 = scmp.ge.s32.totalorder %s14_s21, 6   ;;  %s1178_s5 = sld [smem:[#allocation7_spill]] }
 0x353   : > { %s1179_s15 = smov %s988_s16  ;;  %s1180_s16 = smov %s1096_s30 }
 0x354   : > { %s1181_s17 = smov %s1000_s19  ;;  %s1182_s18 = smov %s1004_s20 }
 0x355   :  { %13 = sbr.rel (!%p11_p13) target bundleno = 4 (0x4), region = 124 }
 0x357   : > { %s1183_s19 = smov %s1177_s26 }
 0x358   : > { %s1184_s20 = smov %s1178_s5 }

// kernel: forward_train.38
= control target key start
LH: loop header
LB: loop body
LE: loop exit
PB: predicated region body
PF: predicated region fallthrough
CT: control target
= control target key end

     0   :  { %s1034_s15 = smov 0   ;;  %s1036_s16 = smov 0   ;;  %s1167_s0 = inlined_call_operand.vmem [shape: bf16[2,2,16,128], index: 0, kind: input, shape index: {}]   ;;  %s1168_s1 = inlined_call_operand.vmem [shape: bf16[2,4,16,128], index: 1, kind: input, shape index: {}, may-alias: {1,2}]   ;;  %s1169_s2 = inlined_call_operand.vmem [shape: bf16[2,4,16,128], index: 2, kind: input, shape index: {}, may-alias: {1,2}]   ;;  %s1170_s3 = inlined_call_operand.vmem [shape: f32[2,1,16], index: 3, kind: input, shape index: {}]   ;;  %s1171_s4 = inlined_call_operand.vmem [shape: bf16[2,16,256], index: 4, kind: output, shape index: {}]  }
   0x1   :  { %s1038_s17 = smov 0   ;;  %s1040_s18 = smov 0  }
   0x2   :  { %s1042_s19 = smov 0   ;;  %s1044_s20 = smov 0  }
   0x3   :  { %s1046_s21 = smov 0  }
   0x4 LB: > { %s36_s22 = sadd.s32 1, %s995_s19  ;;  %s40_s23 = sadd.s32 1, %s999_s20  ;;  %s1003_s21 = sphi %s1046_s21, %s14_s21   ;;  %s999_s20 = sphi %s1044_s20, %s1184_s20   ;;  %s995_s19 = sphi %s1042_s19, %s1183_s19   ;;  %s991_s18 = sphi %s1040_s18, %s1182_s18   ;;  %s987_s17 = sphi %s1038_s17, %s1181_s17   ;;  %s983_s16 = sphi %s1036_s16, %s1180_s16   ;;  %s979_s15 = sphi %s1034_s15, %s1179_s15  }
   0x5   : > { %p38_p0 = scmp.ge.s32.totalorder %s36_s22, 2  ;;  %s823_s24 = sadd.s32 4294967295, %s1003_s21  }
   0x6   : > { %p181_p1 = scmp.ne.s32.totalorder %s983_s16, %s979_s15  ;;  %p182_p2 = scmp.eq.s32.totalorder %s823_s24, 3 }
   0x7   : > { %s1186_s22 = smov (%p38_p0, %s36_s22), 0  ;;  %s1188_s23 = smov (!%p38_p0, %s40_s23), %s999_s20 }
   0x8   : > { %1174 = sst [smem:[#allocation6_spill]] %s1186_s22  ;;  %s167_s25 = ssub.s32 %s995_s19, %s1186_s22 }
   0x9   : > { %p42_p3 = scmp.ge.s32.totalorder %s1188_s23, 2  ;;  %p827_p4 = scmp.ge.s32.totalorder %s1003_s21, 1 }
   0xa   : > { %p1080_p5 = por %p182_p2, %p181_p1  ;;  %p268_p6 = scmp.lt.s32.totalorder %s1003_s21, 5 }
   0xb   : > { %s1190_s23 = smov (%p42_p3, %s1188_s23), 0  ;;  %s171_s29 = sadd.s32 1, %s983_s16 }
   0xc   : > { %1176 = sst [smem:[#allocation7_spill]] %s1190_s23  ;;  %p269_p7 = pnand %p827_p4, %p268_p6 }
   0xd   : > { %s164_s27 = ssub.s32 %s999_s20, %s1190_s23  ;;  %p335_p9 = scmp.lt.s32.totalorder (!%p269_p7), %s991_s18, 1  ;;  %v1005_v0 = vmov (!%p269_p7), 0.0   ;;  %vm1006_vm0 = vmmov (!%p269_p7), 0   ;;  %v1007_v4 = vmov (!%p269_p7), 0   ;;  %vm390_vm2 = vcmask (!%p269_p7), 7168  }
   0xe   : > { %s168_s28 = sor.u32 %s167_s25, %s164_s27  ;;  %272 = sbr.rel (%p269_p7) target bundleno = 849 (0x351), region = 36  ;;  %860 = vmatprep.subr.bf16.mxu0 (!%p269_p7), %v1005_v0  ;;  %862 = vmatprep.mubr.msk.bf16.mxu0 (!%p269_p7), %vm1006_vm0, %v1005_v0  ;;  %v1008_v6 = vmov (!%p269_p7), -1e+30   ;;  %393 = vst.msk [vmem:[#allocation3] sm:$0xff] (!%p269_p7), %vm390_vm2, %v1005_v0  ;;  %394 = vst.msk [vmem:[#allocation3 + $0x8] sm:$0xff] (!%p269_p7), %vm390_vm2, %v1005_v0  ;;  %v457_v7 = vlaneseq (!%p269_p7)  ;;  %vm466_vm4 = vcmask (!%p269_p7), 130048  }
   0xf   : > { %p169_p8 = scmp.eq.s32.totalorder %s168_s28, 0  ;;  %p351_p10 = scmp.lt.s32.totalorder (!%p269_p7), %s987_s17, 3  ;;  %866 = vmatprep.subr.bf16.mxu1 (!%p269_p7), %v1005_v0  ;;  %868 = vmatprep.mubr.msk.bf16.mxu1 (!%p269_p7), %vm1006_vm0, %v1005_v0  ;;  %391 = vst.msk [vmem:[#allocation2] sm:$0xff] (!%p269_p7), %vm390_vm2, %v1008_v6  ;;  %392 = vst.msk [vmem:[#allocation2 + $0x8] sm:$0xff] (!%p269_p7), %vm390_vm2, %v1008_v6 }
  0x10   : > { %p337_p11 = scmp.lt.s32.totalorder (!%p269_p7), %s987_s17, 1  ;;  %932 = vset.pattern.permute.xlu1 (!%p269_p7), %v1007_v4  ;;  %933 = vset.pattern.permute.xlu0 (!%p269_p7), %v1007_v4  ;;  %v458_v8 = vshrl.u32 (!%p269_p7), %v457_v7, 7 }
  0x11   : > { %s1091_s30 = scalar_select %p169_p8, %s983_s16, %s171_s29  }
  0x12   : > { %v459_v9 = vsub.s32 (!%p269_p7), 0, %v458_v8 }
  0x15   : > { %s1096_s5 = scalar_select %p335_p9, %s991_s18, 1  ;;  %v499_v45 = vld [vmem:[#allocation3] sm:$0xff]  ;;  %v500_v48 = vld [vmem:[#allocation3 + $0x8] sm:$0xff] }
  0x16   : > { %s352_s6 = scalar_select %p351_p10, %s987_s17, 3  ;;  %v464_v19 = vld [vmem:[#allocation2] sm:$0xff]  ;;  %v465_v22 = vld [vmem:[#allocation2 + $0x8] sm:$0xff] }
  0x17   : > { %s833_s7 = sshll.u32 %s1096_s5, 3  ;;  %s830_s14 = sshll.u32 %s1096_s5, 2 }
  0x18   : > { %s832_s8 = sshll.u32 %s352_s6, 1 }
  0x19   : > { %s358_s9 = sadd.s32 %s833_s7, %s832_s8 }
  0x1a   : > { %s834_s10 = sshll.u32 %s358_s9, 2  ;;  %s383_s9 = scalar_lea.vmem %s1170_s3, %s1096_s5 }
  0x1b   : > { %s360_s13 = scalar_lea.vmem %s1168_s1, %s834_s10  ;;  %v454_v3 = vld [vmem:[%s383_s9] sm:$0x1]  ;;  %s331_s5 = sand.u32 1, %s979_s15  }
  0x1c   : > { %v934_v1 = vld [vmem:[%s360_s13] sm:$0xff]   ;;  %s338_s24 = scalar_select %p337_p11, %s987_s17, 1  ;;  %vm455_vm1 = vcmp.gt.f32.partialorder %v454_v3, 0.0 }
  0x1d   : > { %861 = vmatpush3.bf16.xpose.msra.mxu0 %v934_v1  ;;  %v456_v5 = vsel %vm455_vm1, 1, %v1007_v4 }
  0x1e   : > { %s829_s25 = sshll.u32 %s338_s24, 1  ;;  %v460_v10 = vrot.slane %v456_v5, %v459_v9 }
  0x1f   : > { %s344_s27 = sadd.s32 %s830_s14, %s829_s25  ;;  %s845_s25 = sshll.u32 (%p1080_p5), %s991_s18, 2 }
  0x20   : > { %s831_s28 = sshll.u32 %s344_s27, 2  ;;  %vm461_vm3 = vcmp.eq.s32.totalorder %v460_v10, 1  ;;  %s633_s27 = sadd.s32 (%p1080_p5), %s987_s17, %s845_s25 }
  0x21   : > { %s346_s22 = scalar_lea.vmem %s1167_s0, %s831_s28  ;;  %s846_s15 = sshll.u32 (%p1080_p5), %s633_s27, 2 }
  0x22   : > { %v935_v2 = vld [vmem:[%s346_s22] sm:$0xff]   ;;  %s362_s22 = sadd.s32 2, %s987_s17  ;;  %s635_s6 = scalar_lea.vmem (%p1080_p5), %s1171_s4, %s846_s15 }
  0x23   : > { %p366_p12 = scmp.lt.s32.totalorder %s362_s22, 3 }
  0x24   : > { %863 = vmatmul.mubr.bf16.vlgmr.msra.gmra.mrb[0].mxu0 %v935_v2 }
  0x25   : > { %s1192_s22 = smov (!%p366_p12, %s362_s22), 3 }
  0x26   : > { %s835_s23 = sshll.u32 %s1192_s22, 1 }
  0x27   : > { %s373_s10 = sadd.s32 %s835_s23, %s833_s7  ;;  %s828_s7 = sshll.u32 %s331_s5, 3 }
  0x28   : > { %s837_s11 = sshll.u32 %s373_s10, 2  ;;  %s333_s24 = scalar_lea.vmem [#allocation5], %s828_s7 }
  0x29   : > { %s375_s14 = scalar_lea.vmem %s1169_s2, %s837_s11 }
  0x2a   : > { %v936_v27 = vld [vmem:[%s375_s14] sm:$0xff]  }
  0x2b   : > { %867 = vmatpush3.bf16.msra.mxu1 %v936_v27 }
  0xf7   : > { %v447_v11 = vpop.f32.mrb[0].mxu0 }
  0xf8   : > { %v462_v12 = vsel %vm461_vm3, %v447_v11, -1e+30  ;;  %v864_v13 = vpop.f32.mrb[1].mxu0 }
  0xf9   : > { %v450_v14 = vpop.f32.mrb[2].mxu0  ;;  %v467_v15 = vsel %vm466_vm4, %v462_v12, -inf }
  0xfa   : > { %v463_v16 = vsel %vm461_vm3, %v450_v14, -1e+30  ;;  %468 = vmax.xlane.f32.xlu0 %v467_v15  ;;  %v865_v17 = vpop.f32.mrb[3].mxu0 }
  0xfb   : > { %v470_v18 = vsel %vm466_vm4, %v463_v16, -inf }
  0xfe   : > { %471 = vmax.xlane.f32.xlu0 %v470_v18 }
 0x187   : > { %v469_v20 = vpop.xlane.xlu0 %468 }
 0x188   : > { %v473_v21 = vmax.f32 %v464_v19, %v469_v20 }
 0x18a   : > { %v475_v23 = vsub.f32 %v464_v19, %v473_v21  ;;  %585 = vst.msk [vmem:[#allocation2] sm:$0xff] %vm390_vm2, %v473_v21  ;;  %483 = vperm.xlu1 %932, %v473_v21  }
 0x18b   : > { %v472_v24 = vpop.xlane.xlu0 %471 }
 0x18c   : > { %v474_v25 = vmax.f32 %v465_v22, %v472_v24  ;;  %v477_v42 = vmul.f32 1.442695, %v475_v23 }
 0x18e   : > { %v476_v26 = vsub.f32 %v465_v22, %v474_v25  ;;  %586 = vst.msk [vmem:[#allocation2 + $0x8] sm:$0xff] %vm390_vm2, %v474_v25  ;;  %488 = vperm.xlu1 %932, %v474_v25  }
 0x190   : > { %v479_v41 = vmul.f32 1.442695, %v476_v26 }
 0x209   : > { %v484_v28 = vpop.permute.xlu1 %483 }
 0x20a   : > { %v491_v29 = vsub.f32 %v462_v12, %v484_v28 }
 0x20c   : > { %v493_v30 = vmul.f32 1.442695, %v491_v29 }
 0x20d   : > { %v489_v31 = vpop.permute.xlu1 %488 }
 0x20e   : > { %937 = vpow2.f32 %v493_v30  ;;  %v492_v32 = vsub.f32 %v463_v16, %v489_v31 }
 0x210   : > { %v495_v33 = vmul.f32 1.442695, %v492_v32 }
 0x212   : > { %939 = vpow2.f32 %v495_v33 }
 0x213   : > { %941 = vpow2.f32 %v479_v41 }
 0x214   : > { %943 = vpow2.f32 %v477_v42 }
 0x218   : > { %v938_v34 = vpop.eup %937 }
 0x219   : > { %v497_v35 = vsel %vm461_vm3, %v938_v34, 0.0 }
 0x21a   : > { %v503_v36 = vsel %vm466_vm4, %v497_v35, 0.0 }
 0x21b   : > { %504 = vadd.xlane.f32.xlu0 %v503_v36 }
 0x21c   : > { %v940_v37 = vpop.eup %939 }
 0x21d   : > { %v498_v38 = vsel %vm461_vm3, %v940_v37, 0.0  ;;  %v942_v43 = vpop.eup %941 }
 0x21e   : > { %v506_v39 = vsel %vm466_vm4, %v498_v38, 0.0  ;;  %v528_v40 = vpack.c.bf16 %v498_v38, %v497_v35  ;;  %v944_v44 = vpop.eup %943  ;;  %v502_v50 = vmul.f32 %v942_v43, %v500_v48 }
 0x21f   : > { %507 = vadd.xlane.f32.xlu1 %v506_v39  ;;  %v501_v46 = vmul.f32 %v944_v44, %v499_v45 }
 0x220   : > { %869 = vmatmul.mubr.msk.bf16.vlgmr.msra.gmra.mrb[0].mxu1 %vm466_vm4, %v528_v40 }
 0x230   : > { %523 = vperm.xlu1 %932, %v942_v43  }
 0x231   : > { %518 = vperm.xlu0 %933, %v944_v44  }
 0x2a8   : > { %v505_v47 = vpop.xlane.xlu0 %504 }
 0x2a9   : > { %v509_v49 = vadd.f32 %v505_v47, %v501_v46 }
 0x2ab   : > { %512 = vst.msk [vmem:[#allocation3] sm:$0xff] %vm390_vm2, %v509_v49 }
 0x2ac   : > { %v508_v51 = vpop.xlane.xlu1 %507 }
 0x2ad   : > { %v510_v52 = vadd.f32 %v508_v51, %v502_v50 }
 0x2af   : > { %513 = vst.msk [vmem:[#allocation3 + $0x8] sm:$0xff] %vm390_vm2, %v510_v52 }
 0x2b0   : > { %v519_v63 = vpop.permute.xlu0 %518  ;;  %v524_v0 = vpop.permute.xlu1 %523 }
 0x2b1   : > { %v527_v2 = vmul.f32 0.0, %v524_v0  ;;  %v526_v3 = vmul.f32 0.0, %v519_v63 }
 0x2b2   : > { %v590_v53 = vld [vmem:[#allocation3] sm:$0xff] }
 0x2b3   : > { %vm592_vm5 = vcmp.gt.f32.partialorder %v590_v53, 0.0 }
 0x2b4   : > { %v594_v54 = vsel %vm592_vm5, %v590_v53, 1.0 }
 0x2b5   : > { %945 = vrcp.f32 %v594_v54 }
 0x2b6   : > { %v591_v55 = vld [vmem:[#allocation3 + $0x8] sm:$0xff] }
 0x2b7   : > { %vm593_vm6 = vcmp.gt.f32.partialorder %v591_v55, 0.0 }
 0x2b8   : > { %v595_v56 = vsel %vm593_vm6, %v591_v55, 1.0 }
 0x2b9   : > { %947 = vrcp.f32 %v595_v56 }
 0x2bf   : > { %v946_v57 = vpop.eup %945 }
 0x2c0   : > { %602 = vperm.xlu0 %933, %v946_v57  }
 0x2c3   : > { %v948_v58 = vpop.eup %947 }
 0x2c4   : > { %607 = vperm.xlu0 %933, %v948_v58  }
 0x2f3   : > { %v574_v59 = vpop.f32.mrb[0].mxu1 }
 0x2f4   : > { %v870_v60 = vpop.f32.mrb[1].mxu1  ;;  %v581_v4 = vadd.f32 %v574_v59, %v526_v3 }
 0x2f5   : > { %v577_v61 = vpop.f32.mrb[2].mxu1 }
 0x2f6   : > { %v871_v62 = vpop.f32.mrb[3].mxu1  ;;  %v582_v5 = vadd.f32 %v577_v61, %v527_v2 }
 0x33f   : > { %v603_v1 = vpop.permute.xlu0 %602 }
 0x340   : > { %v610_v7 = vmul.f32 %v603_v1, %v581_v4 }
 0x342   : > { %628 = sbr.rel (!%p1080_p5) target bundleno = 849 (0x351), region = 48 }
 0x343   : > { %v608_v6 = vpop.permute.xlu0 %607 }
 0x344   : > { %v611_v8 = vmul.f32 %v608_v6, %v582_v5 }
 0x346   : > { %v854_v9 = vpack.c.bf16 %v611_v8, %v610_v7 }
 0x348   : > { %855 = vst [vmem:[%s333_s24] sm:$0xff] %v854_v9  }
 0x34f   : > { %v651_v10 = vld [vmem:[%s333_s24] sm:$0xf]  ;;  %v653_v11 = vld [vmem:[%s333_s24 + $0x4] sm:$0xf] }
 0x350   : > { %652 = vst [vmem:[%s635_s6] sm:$0xf] %v651_v10  ;;  %654 = vst [vmem:[%s635_s6 + $0x8] sm:$0xf] %v653_v11 }
 0x351 PF: > { %s14_s21 = sadd.s32 1, %s1003_s21   ;;  %s1177_s26 = sld [smem:[#allocation6_spill]] }
 0x352   : > { %p11_p13 = scmp.ge.s32.totalorder %s14_s21, 6   ;;  %s1178_s8 = sld [smem:[#allocation7_spill]] }
 0x353   : > { %s1179_s15 = smov %s983_s16  ;;  %s1180_s16 = smov %s1091_s30 }
 0x354   : > { %s1181_s17 = smov %s995_s19  ;;  %s1182_s18 = smov %s999_s20 }
 0x355   :  { %13 = sbr.rel (!%p11_p13) target bundleno = 4 (0x4), region = 124 }
 0x357   : > { %s1183_s19 = smov %s1177_s26 }
 0x358   : > { %s1184_s20 = smov %s1178_s8 }

// kernel: forward_train.45
= control target key start
LH: loop header
LB: loop body
LE: loop exit
PB: predicated region body
PF: predicated region fallthrough
CT: control target
= control target key end

     0   :  { %s947_s18 = smov 0   ;;  %s949_s19 = smov 0   ;;  %s1052_s0 = inlined_call_operand.vmem [shape: bf16[2,16,256], index: 0, kind: input, shape index: {}]   ;;  %s1053_s1 = inlined_call_operand.vmem [shape: bf16[4,256,128], index: 1, kind: input, shape index: {}]   ;;  %s1054_s2 = inlined_call_operand.vmem [shape: f32[4,1,128], index: 2, kind: input, shape index: {}]   ;;  %s1055_s3 = inlined_call_operand.vmem [shape: f32[16,128], index: 3, kind: input, shape index: {}]   ;;  %s1056_s4 = inlined_call_operand.vmem [shape: f32[16,128], index: 4, kind: input, shape index: {}]   ;;  %s1057_s5 = inlined_call_operand.vmem [shape: bf16[2,4,16,128], index: 5, kind: output, shape index: {}]  }
   0x1   :  { %s951_s20 = smov 0   ;;  %s953_s21 = smov 0  }
   0x2   :  { %s955_s22 = smov 0  }
   0x3 LB: > { %s30_s23 = sadd.s32 1, %s906_s20  ;;  %s34_s24 = sadd.s32 1, %s910_s21  ;;  %s914_s22 = sphi %s955_s22, %s15_s22   ;;  %s910_s21 = sphi %s953_s21, %s1061_s21   ;;  %s906_s20 = sphi %s951_s20, %s1060_s20   ;;  %s902_s19 = sphi %s949_s19, %s1059_s19   ;;  %s898_s18 = sphi %s947_s18, %s1058_s18  }
   0x4   : > { %p32_p0 = scmp.ge.s32.totalorder %s30_s23, 2  ;;  %p754_p1 = scmp.ge.s32.totalorder %s914_s22, 1 }
   0x5   : > { %p258_p2 = scmp.lt.s32.totalorder %s914_s22, 9 }
   0x6   : > { %s1063_s23 = smov (%p32_p0, %s30_s23), 0  ;;  %s1065_s24 = smov (!%p32_p0, %s34_s24), %s910_s21 }
   0x7   : > { %p259_p3 = pnand %p754_p1, %p258_p2  ;;  %p36_p4 = scmp.ge.s32.totalorder %s1065_s24, 4 }
   0x8   : > { %p328_p5 = scmp.lt.s32.totalorder (!%p259_p3), %s902_s19, 3  ;;  %p318_p6 = scmp.lt.s32.totalorder (!%p259_p3), %s898_s18, 1  ;;  %v551_v27 = vld [vmem:[%s1056_s4] sm:$0xff] (!%p259_p3)  ;;  %v552_v32 = vld [vmem:[%s1056_s4 + $0x8] sm:$0xff] (!%p259_p3) }
   0x9   : > { %s1067_s24 = smov (%p36_p4, %s1065_s24), 0  ;;  %262 = sbr.rel (%p259_p3) target bundleno = 402 (0x192), region = 40 }
   0xa   : > { %s916_s12 = smov (!%p259_p3), 64   ;;  %p565_p7 = scmp.lt.s32.totalorder (!%p259_p3), %s902_s19, 2  ;;  %v559_v28 = vld [vmem:[%s1055_s3] sm:$0xff] (!%p259_p3)  ;;  %v560_v33 = vld [vmem:[%s1055_s3 + $0x8] sm:$0xff] (!%p259_p3) }
  0x10   : > { %s983_s25 = scalar_select %p328_p5, %s902_s19, 3 }
  0x11   : > { %s1069_s18 = smov (!%p318_p6, %s898_s18), 1 }
  0x12   : > { %s786_s26 = sshll.u32 %s983_s25, 7  ;;  %s785_s30 = sshll.u32 %s1069_s18, 4 }
  0x13   : > { %s989_s29 = scalar_lea.vmem %s1053_s1, %s786_s26  ;;  %s326_s8 = scalar_lea.vmem %s1052_s0, %s785_s30 }
  0x14   : > { %v857_v0 = vld [vmem:[%s989_s29 + $0x40] sm:$0xff]   ;;  %v859_v2 = vld [vmem:[%s989_s29 + $0x48] sm:$0xff]   ;;  %v861_v4 = vld [vmem:[%s989_s29 + $0x50] sm:$0xff]   ;;  %s335_s11 = scalar_lea.vmem %s1054_s2, %s983_s25  ;;  %s759_s19 = sshll.u32 %s983_s25, 1 }
  0x15   : > { %v858_v1 = vld [vmem:[%s989_s29] sm:$0xff]   ;;  %794 = vmatprep.subr.bf16.mxu0 %v857_v0  ;;  %v860_v3 = vld [vmem:[%s989_s29 + $0x8] sm:$0xff]   ;;  %v862_v5 = vld [vmem:[%s989_s29 + $0x10] sm:$0xff]   ;;  %s566_s17 = scalar_select %p565_p7, 1, 0 }
  0x16   : > { %795 = vmatpush3.bf16.msra.mxu0 %v858_v1  ;;  %v863_v6 = vld [vmem:[%s989_s29 + $0x58] sm:$0xff]   ;;  %v865_v8 = vld [vmem:[%s989_s29 + $0x60] sm:$0xff]   ;;  %v867_v10 = vld [vmem:[%s989_s29 + $0x68] sm:$0xff]   ;;  %s760_s6 = sshll.u32 %s1069_s18, 3 }
  0x17   : > { %796 = vmatprep.subr.bf16.mxu0 %v859_v2  ;;  %v864_v7 = vld [vmem:[%s989_s29 + $0x18] sm:$0xff]   ;;  %v866_v9 = vld [vmem:[%s989_s29 + $0x20] sm:$0xff]   ;;  %v868_v12 = vld [vmem:[%s989_s29 + $0x28] sm:$0xff]   ;;  %s567_s26 = scvt.s32.f32 %s566_s17  ;;  %s358_s7 = sadd.s32 %s760_s6, %s759_s19 }
  0x18   : > { %v875_v11 = vld [vmem:[%s326_s8 + $0x4] ss:$8 sps:$4 sm:$0xff]   ;;  %v869_v13 = vld [vmem:[%s989_s29 + $0x70] sm:$0xff]   ;;  %v871_v15 = vld [vmem:[%s989_s29 + $0x78] sm:$0xff]  }
  0x19   : > { %542 = vmatprep.mubr.bf16.mxu0 %v875_v11  ;;  %v870_v14 = vld [vmem:[%s989_s29 + $0x30] sm:$0xff]   ;;  %v872_v16 = vld [vmem:[%s989_s29 + $0x38] sm:$0xff]   ;;  %v873_v17 = vld [vmem:[%s326_s8] ss:$8 sps:$4 sm:$0xff]   ;;  %v570_v39 = vstv %s567_s26  ;;  %s761_s8 = sshll.u32 %s358_s7, 2 }
  0x1a   : > { %797 = vmatpush3.bf16.msra.mxu0 %v860_v3  ;;  %v762_v19 = vld [vmem:[%s335_s11] ss:$0 sm:$0xff]  ;;  %s360_s11 = scalar_lea.vmem %s1057_s5, %s761_s8 }
  0x1b   : > { %798 = vmatprep.subr.bf16.mxu0 %v861_v4 }
  0x1e   : > { %799 = vmatpush3.bf16.msra.mxu0 %v862_v5 }
  0x1f   : > { %800 = vmatprep.subr.bf16.mxu0 %v863_v6 }
  0x22   : > { %801 = vmatpush3.bf16.msra.mxu0 %v864_v7 }
  0x23   : > { %802 = vmatprep.subr.bf16.mxu0 %v865_v8 }
  0x26   : > { %803 = vmatpush3.bf16.msra.mxu0 %v866_v9 }
  0x27   : > { %804 = vmatprep.subr.bf16.mxu0 %v867_v10 }
  0x2a   : > { %805 = vmatpush3.bf16.msra.mxu0 %v868_v12 }
  0x2b   : > { %806 = vmatprep.subr.bf16.mxu0 %v869_v13 }
  0x2e   : > { %807 = vmatpush3.bf16.msra.mxu0 %v870_v14 }
  0x2f   : > { %808 = vmatprep.subr.bf16.mxu0 %v871_v15 }
  0x32   : > { %809 = vmatpush3.bf16.msra.mxu0 %v872_v16 }
  0x35   : > { %543 = vmatmul.mubr.bf16.vlgmr.msra.gmra.mrb[0].mxu0 %v873_v17 }
 0x108   : > { %v810_v18 = vpop.f32.mrb[0].mxu0 }
 0x109   : > { %v811_v20 = vpop.f32.mrb[1].mxu0 }
 0x10a   : > { %v812_v21 = vadd.f32 %v811_v20, %v810_v18  ;;  %v813_v22 = vpop.f32.mrb[2].mxu0 }
 0x10b   : > { %v814_v23 = vpop.f32.mrb[3].mxu0 }
 0x10c   : > { %v545_v24 = vadd.f32 %v812_v21, %v762_v19  ;;  %v815_v25 = vadd.f32 %v814_v23, %v813_v22 }
 0x10e   : > { %555 = vrot.lane.b32.xlu0 %v545_v24, %s916_s12  ;;  %v548_v26 = vadd.f32 %v815_v25, %v762_v19  ;;  %v553_v30 = vmul.f32 %v551_v27, %v545_v24 }
 0x110   : > { %v554_v37 = vmul.f32 %v552_v32, %v548_v26 }
 0x112   : > { %557 = vrot.lane.b32.xlu0 %v548_v26, %s916_s12 }
 0x180   : > { %v556_v29 = vpop.permute.xlu0 %555 }
 0x181   : > { %v561_v31 = vmul.f32 %v559_v28, %v556_v29 }
 0x183   : > { %v563_v34 = vadd.f32 %v561_v31, %v553_v30 }
 0x184   : > { %v558_v35 = vpop.permute.xlu0 %557 }
 0x185   : > { %v568_v36 = vsub.f32 %v563_v34, %v545_v24  ;;  %v562_v38 = vmul.f32 %v560_v33, %v558_v35 }
 0x187   : > { %v564_v40 = vadd.f32 %v562_v38, %v554_v37  ;;  %v571_v41 = vmul.f32 %v570_v39, %v568_v36 }
 0x189   : > { %v569_v42 = vsub.f32 %v564_v40, %v548_v26  ;;  %v573_v44 = vadd.f32 %v571_v41, %v545_v24 }
 0x18b   : > { %v572_v43 = vmul.f32 %v570_v39, %v569_v42 }
 0x18d   : > { %v574_v45 = vadd.f32 %v572_v43, %v548_v26 }
 0x18f   : > { %v792_v46 = vpack.c.bf16 %v574_v45, %v573_v44 }
 0x191   : > { %793 = vst [vmem:[%s360_s11] sm:$0xff] %v792_v46  }
 0x192 PF: > { %s15_s22 = sadd.s32 1, %s914_s22   ;;  %s1058_s18 = smov %s906_s20 }
 0x193   : > { %p12_p8 = scmp.ge.s32.totalorder %s15_s22, 10   ;;  %s1059_s19 = smov %s910_s21 }
 0x194   : > { %s1060_s20 = smov %s1063_s23  ;;  %s1061_s21 = smov %s1067_s24 }
 0x195   :  { %14 = sbr.rel (!%p12_p8) target bundleno = 3 (0x3), region = 82 }

// kernel: forward_train.28
= control target key start
LH: loop header
LB: loop body
LE: loop exit
PB: predicated region body
PF: predicated region fallthrough
CT: control target
= control target key end

     0   :  { %s3693_s1 = inlined_call_operand.vmem [shape: bf16[256,1024], index: 1, kind: input, shape index: {}]   ;;  %s3694_s0 = inlined_call_operand.vmem [shape: bf16[32,256], index: 0, kind: input, shape index: {}]   ;;  %s3695_s3 = inlined_call_operand.vmem [shape: bf16[1024,256], index: 3, kind: input, shape index: {}]   ;;  %s3696_s2 = inlined_call_operand.vmem [shape: f32[1,1024], index: 2, kind: input, shape index: {}]   ;;  %s3697_s4 = inlined_call_operand.vmem [shape: f32[1,256], index: 4, kind: input, shape index: {}]   ;;  %s3698_s5 = inlined_call_operand.vmem [shape: f32[1,256], index: 5, kind: input, shape index: {}]   ;;  %s3699_s6 = inlined_call_operand.vmem [shape: f32[1,256], index: 6, kind: input, shape index: {}]   ;;  %s3700_s7 = inlined_call_operand.vmem [shape: bf16[32,256], index: 7, kind: output, shape index: {}]  }
   0x1   :  { %v30_v0 = vld [vmem:[%s3693_s1] sm:$0xff]  ;;  %v2851_v18 = vld [vmem:[%s3694_s0 + $0x8] sm:$0xff] }
   0x2   :  { %v34_v1 = vld [vmem:[%s3693_s1 + $0x20] sm:$0xff] }
   0x3   :  { %v38_v2 = vld [vmem:[%s3693_s1 + $0x40] sm:$0xff]  ;;  %v2270_v3 = vcombine.high %v30_v0, %v34_v1  ;;  %v2269_v4 = vcombine.low %v30_v0, %v34_v1 }
   0x4   :  { %v42_v5 = vld [vmem:[%s3693_s1 + $0x60] sm:$0xff] }
   0x5   :  { %v2278_v6 = vcombine.high %v38_v2, %v42_v5  ;;  %v46_v7 = vld [vmem:[%s3693_s1 + $0x80] sm:$0xff]  ;;  %860 = vmatprep.subr.bf16.mxu1 %v2270_v3  ;;  %v2277_v9 = vcombine.low %v38_v2, %v42_v5  ;;  %v31_v2 = vld [vmem:[%s3693_s1 + $0x8] sm:$0xff] }
   0x6   :  { %v50_v8 = vld [vmem:[%s3693_s1 + $0xa0] sm:$0xff]  ;;  %861 = vmatpush1.bf16.msra.mxu1 %v2269_v4  ;;  %v35_v3 = vld [vmem:[%s3693_s1 + $0x28] sm:$0xff] }
   0x7   :  { %862 = vmatprep.subr.bf16.mxu1 %v2278_v6  ;;  %v2286_v10 = vcombine.high %v46_v7, %v50_v8  ;;  %v54_v11 = vld [vmem:[%s3693_s1 + $0xc0] sm:$0xff]  ;;  %v2285_v13 = vcombine.low %v46_v7, %v50_v8  ;;  %v2272_v5 = vcombine.high %v31_v2, %v35_v3  ;;  %v28_v6 = vld [vmem:[%s3694_s0 + $0x10] sm:$0xff]  ;;  %v29_v7 = vld [vmem:[%s3694_s0 + $0x18] sm:$0xff] }
   0x8   :  { %v58_v12 = vld [vmem:[%s3693_s1 + $0xe0] sm:$0xff]  ;;  %v39_v8 = vld [vmem:[%s3693_s1 + $0x48] sm:$0xff] }
   0x9   :  { %v2294_v14 = vcombine.high %v54_v11, %v58_v12  ;;  %v62_v15 = vld [vmem:[%s3693_s1 + $0x100] sm:$0xff]  ;;  %v2293_v19 = vcombine.low %v54_v11, %v58_v12  ;;  %v2271_v11 = vcombine.low %v31_v2, %v35_v3  ;;  %v2946_v12 = vcombine.high %v28_v6, %v29_v7  ;;  %v135_v2 = vld [vmem:[%s3693_s1 + $0x348] sm:$0xff] }
   0xa   :  { %863 = vmatpush1.bf16.msra.mxu1 %v2277_v9  ;;  %v66_v16 = vld [vmem:[%s3693_s1 + $0x120] sm:$0xff]  ;;  %v43_v9 = vld [vmem:[%s3693_s1 + $0x68] sm:$0xff] }
   0xb   :  { %864 = vmatprep.subr.bf16.mxu1 %v2286_v10  ;;  %v2846_v17 = vld [vmem:[%s3694_s0] sm:$0xff]  ;;  %v2302_v21 = vcombine.high %v62_v15, %v66_v16  ;;  %v2301_v24 = vcombine.low %v62_v15, %v66_v16  ;;  %v51_v15 = vld [vmem:[%s3693_s1 + $0xa8] sm:$0xff]  ;;  %v2279_v16 = vcombine.low %v39_v8, %v43_v9 }
   0xc   :  { %v2855_v20 = vcombine.high %v2846_v17, %v2851_v18  ;;  %v70_v22 = vld [vmem:[%s3693_s1 + $0x140] sm:$0xff]  ;;  %v2944_v10 = vcombine.low %v2846_v17, %v2851_v18  ;;  %v55_v18 = vld [vmem:[%s3693_s1 + $0xc8] sm:$0xff] }
   0xd   :  { %v74_v23 = vld [vmem:[%s3693_s1 + $0x160] sm:$0xff]  ;;  %v139_v3 = vld [vmem:[%s3693_s1 + $0x368] sm:$0xff] }
   0xe   :  { %865 = vmatpush1.bf16.msra.mxu1 %v2285_v13  ;;  %892 = vmatprep.mubr.bf16.mxu1 %v2855_v20  ;;  %v2310_v25 = vcombine.high %v70_v22, %v74_v23  ;;  %v78_v26 = vld [vmem:[%s3693_s1 + $0x180] sm:$0xff]  ;;  %v2309_v28 = vcombine.low %v70_v22, %v74_v23  ;;  %v2280_v13 = vcombine.high %v39_v8, %v43_v9  ;;  %v143_v8 = vld [vmem:[%s3693_s1 + $0x388] sm:$0xff] }
   0xf   :  { %866 = vmatprep.subr.bf16.mxu1 %v2294_v14  ;;  %v82_v27 = vld [vmem:[%s3693_s1 + $0x1a0] sm:$0xff]  ;;  %v47_v14 = vld [vmem:[%s3693_s1 + $0x88] sm:$0xff] }
  0x10   :  { %v2318_v29 = vcombine.high %v78_v26, %v82_v27  ;;  %v86_v30 = vld [vmem:[%s3693_s1 + $0x1c0] sm:$0xff]  ;;  %v2317_v32 = vcombine.low %v78_v26, %v82_v27  ;;  %v2288_v17 = vcombine.high %v47_v14, %v51_v15  ;;  %v2287_v22 = vcombine.low %v47_v14, %v51_v15  ;;  %v147_v9 = vld [vmem:[%s3693_s1 + $0x3a8] sm:$0xff]  ;;  %v2584_v14 = vld [vmem:[%s3695_s3 + $0x54] ss:$8 sps:$4 sm:$0xff]  }
  0x11   :  { %v90_v31 = vld [vmem:[%s3693_s1 + $0x1e0] sm:$0xff]  ;;  %v2375_v15 = vcombine.low %v135_v2, %v139_v3 }
  0x12   :  { %867 = vmatpush1.bf16.msra.mxu1 %v2293_v19  ;;  %v2326_v33 = vcombine.high %v86_v30, %v90_v31  ;;  %v94_v34 = vld [vmem:[%s3693_s1 + $0x200] sm:$0xff]  ;;  %v2325_v36 = vcombine.low %v86_v30, %v90_v31  ;;  %v59_v19 = vld [vmem:[%s3693_s1 + $0xe8] sm:$0xff] }
  0x13   :  { %868 = vmatprep.subr.bf16.mxu1 %v2302_v21  ;;  %v98_v35 = vld [vmem:[%s3693_s1 + $0x220] sm:$0xff]  ;;  %v2962_v21 = vcombine.low %v28_v6, %v29_v7  ;;  %v2296_v23 = vcombine.high %v55_v18, %v59_v19  ;;  %v2295_v26 = vcombine.low %v55_v18, %v59_v19  ;;  %v2586_v18 = vld [vmem:[%s3695_s3 + $0x50] ss:$8 sps:$4 sm:$0xff]   ;;  %v2384_v19 = vcombine.high %v143_v8, %v147_v9 }
  0x14   :  { %v2334_v37 = vcombine.high %v94_v34, %v98_v35  ;;  %v102_v38 = vld [vmem:[%s3693_s1 + $0x240] sm:$0xff]  ;;  %v2333_v40 = vcombine.low %v94_v34, %v98_v35 }
  0x15   :  { %v106_v39 = vld [vmem:[%s3693_s1 + $0x260] sm:$0xff] }
  0x16   :  { %869 = vmatpush1.bf16.msra.mxu1 %v2301_v24  ;;  %v2342_v41 = vcombine.high %v102_v38, %v106_v39  ;;  %v110_v42 = vld [vmem:[%s3693_s1 + $0x280] sm:$0xff]  ;;  %v2341_v44 = vcombine.low %v102_v38, %v106_v39  ;;  %v63_v24 = vld [vmem:[%s3693_s1 + $0x108] sm:$0xff] }
  0x17   :  { %870 = vmatprep.subr.bf16.mxu1 %v2310_v25  ;;  %v114_v43 = vld [vmem:[%s3693_s1 + $0x2a0] sm:$0xff]  ;;  %v67_v25 = vld [vmem:[%s3693_s1 + $0x128] sm:$0xff] }
  0x18   :  { %v2350_v45 = vcombine.high %v110_v42, %v114_v43  ;;  %v118_v46 = vld [vmem:[%s3693_s1 + $0x2c0] sm:$0xff]  ;;  %v2349_v48 = vcombine.low %v110_v42, %v114_v43  ;;  %v2304_v27 = vcombine.high %v63_v24, %v67_v25  ;;  %v2303_v30 = vcombine.low %v63_v24, %v67_v25  ;;  %v32_v24 = vld [vmem:[%s3693_s1 + $0x10] sm:$0xff] }
  0x19   :  { %v122_v47 = vld [vmem:[%s3693_s1 + $0x2e0] sm:$0xff]  ;;  %v36_v25 = vld [vmem:[%s3693_s1 + $0x30] sm:$0xff] }
  0x1a   :  { %871 = vmatpush1.bf16.msra.mxu1 %v2309_v28  ;;  %v2358_v49 = vcombine.high %v118_v46, %v122_v47  ;;  %v126_v50 = vld [vmem:[%s3693_s1 + $0x300] sm:$0xff]  ;;  %v2357_v52 = vcombine.low %v118_v46, %v122_v47  ;;  %v71_v28 = vld [vmem:[%s3693_s1 + $0x148] sm:$0xff] }
  0x1b   :  { %872 = vmatprep.subr.bf16.mxu1 %v2318_v29  ;;  %v130_v51 = vld [vmem:[%s3693_s1 + $0x320] sm:$0xff]  ;;  %v75_v29 = vld [vmem:[%s3693_s1 + $0x168] sm:$0xff] }
  0x1c   :  { %v2366_v53 = vcombine.high %v126_v50, %v130_v51  ;;  %v134_v54 = vld [vmem:[%s3693_s1 + $0x340] sm:$0xff]  ;;  %v2365_v56 = vcombine.low %v126_v50, %v130_v51  ;;  %v2312_v31 = vcombine.high %v71_v28, %v75_v29  ;;  %v2311_v34 = vcombine.low %v71_v28, %v75_v29  ;;  %v2590_v28 = vld [vmem:[%s3695_s3 + $0x74] ss:$8 sps:$4 sm:$0xff]  }
  0x1d   :  { %v138_v55 = vld [vmem:[%s3693_s1 + $0x360] sm:$0xff] }
  0x1e   :  { %873 = vmatpush1.bf16.msra.mxu1 %v2317_v32  ;;  %v2374_v57 = vcombine.high %v134_v54, %v138_v55  ;;  %v142_v58 = vld [vmem:[%s3693_s1 + $0x380] sm:$0xff]  ;;  %v2373_v60 = vcombine.low %v134_v54, %v138_v55  ;;  %v79_v32 = vld [vmem:[%s3693_s1 + $0x188] sm:$0xff] }
  0x1f   :  { %874 = vmatprep.subr.bf16.mxu1 %v2326_v33  ;;  %v146_v59 = vld [vmem:[%s3693_s1 + $0x3a0] sm:$0xff]  ;;  %v83_v33 = vld [vmem:[%s3693_s1 + $0x1a8] sm:$0xff] }
  0x20   :  { %v2382_v61 = vcombine.high %v142_v58, %v146_v59  ;;  %v150_v62 = vld [vmem:[%s3693_s1 + $0x3c0] sm:$0xff]  ;;  %v2381_v0 = vcombine.low %v142_v58, %v146_v59  ;;  %v2320_v35 = vcombine.high %v79_v32, %v83_v33  ;;  %v2319_v38 = vcombine.low %v79_v32, %v83_v33  ;;  %v119_v54 = vld [vmem:[%s3693_s1 + $0x2c8] sm:$0xff]  ;;  %v2592_v32 = vld [vmem:[%s3695_s3 + $0x70] ss:$8 sps:$4 sm:$0xff]  }
  0x21   :  { %v154_v63 = vld [vmem:[%s3693_s1 + $0x3e0] sm:$0xff]  ;;  %v123_v55 = vld [vmem:[%s3693_s1 + $0x2e8] sm:$0xff]  ;;  %v2274_v33 = vcombine.high %v32_v24, %v36_v25 }
  0x22   :  { %875 = vmatpush1.bf16.msra.mxu1 %v2325_v36  ;;  %v2390_v1 = vcombine.high %v150_v62, %v154_v63  ;;  %v2389_v4 = vcombine.low %v150_v62, %v154_v63  ;;  %v87_v36 = vld [vmem:[%s3693_s1 + $0x1c8] sm:$0xff]  ;;  %v2360_v63 = vcombine.high %v119_v54, %v123_v55 }
  0x23   :  { %876 = vmatprep.subr.bf16.mxu1 %v2334_v37  ;;  %v91_v37 = vld [vmem:[%s3693_s1 + $0x1e8] sm:$0xff] }
  0x24   :  { %v2328_v39 = vcombine.high %v87_v36, %v91_v37  ;;  %v2327_v42 = vcombine.low %v87_v36, %v91_v37  ;;  %v2569_v46 = vld [vmem:[%s3695_s3 + $0x4] ss:$8 sps:$4 sm:$0xff]   ;;  %v2571_v50 = vld [vmem:[%s3695_s3] ss:$8 sps:$4 sm:$0xff]   ;;  %v48_v36 = vld [vmem:[%s3693_s1 + $0x90] sm:$0xff] }
  0x25   :  { %1900 = vmatprep.subr.bf16.mxu0 %v2569_v46  ;;  %v2575_v58 = vld [vmem:[%s3695_s3 + $0x24] ss:$8 sps:$4 sm:$0xff]   ;;  %v2577_v62 = vld [vmem:[%s3695_s3 + $0x20] ss:$8 sps:$4 sm:$0xff]   ;;  %v52_v37 = vld [vmem:[%s3693_s1 + $0xb0] sm:$0xff] }
  0x26   :  { %877 = vmatpush1.bf16.msra.mxu1 %v2333_v40  ;;  %v95_v40 = vld [vmem:[%s3693_s1 + $0x208] sm:$0xff]  ;;  %1901 = vmatpush1.bf16.msra.mxu0 %v2571_v50  ;;  %v68_v50 = vld [vmem:[%s3693_s1 + $0x130] sm:$0xff] }
  0x27   :  { %878 = vmatprep.subr.bf16.mxu1 %v2342_v41  ;;  %v99_v41 = vld [vmem:[%s3693_s1 + $0x228] sm:$0xff] }
  0x28   :  { %v2336_v43 = vcombine.high %v95_v40, %v99_v41  ;;  %v2335_v47 = vcombine.low %v95_v40, %v99_v41  ;;  %v2581_v6 = vld [vmem:[%s3695_s3 + $0x44] ss:$8 sps:$4 sm:$0xff]   ;;  %v2596_v40 = vld [vmem:[%s3695_s3 + $0x94] ss:$8 sps:$4 sm:$0xff]   ;;  %v2598_v41 = vld [vmem:[%s3695_s3 + $0x90] ss:$8 sps:$4 sm:$0xff]  }
  0x29   :  { %v2601_v46 = vld [vmem:[%s3695_s3 + $0xa0] ss:$8 sps:$4 sm:$0xff]  }
  0x2a   :  { %879 = vmatpush1.bf16.msra.mxu1 %v2341_v44  ;;  %v103_v44 = vld [vmem:[%s3693_s1 + $0x248] sm:$0xff] }
  0x2b   :  { %880 = vmatprep.subr.bf16.mxu1 %v2350_v45  ;;  %v107_v45 = vld [vmem:[%s3693_s1 + $0x268] sm:$0xff] }
  0x2c   :  { %v2344_v51 = vcombine.high %v103_v44, %v107_v45 }
  0x2e   :  { %881 = vmatpush1.bf16.msra.mxu1 %v2349_v48  ;;  %v111_v48 = vld [vmem:[%s3693_s1 + $0x288] sm:$0xff] }
  0x2f   :  { %882 = vmatprep.subr.bf16.mxu1 %v2358_v49  ;;  %v115_v49 = vld [vmem:[%s3693_s1 + $0x2a8] sm:$0xff] }
  0x30   :  { %v2351_v59 = vcombine.low %v111_v48, %v115_v49 }
  0x32   :  { %883 = vmatpush1.bf16.msra.mxu1 %v2357_v52  ;;  %v2572_v52 = vld [vmem:[%s3695_s3 + $0x14] ss:$8 sps:$4 sm:$0xff]  }
  0x33   :  { %884 = vmatprep.subr.bf16.mxu1 %v2366_v53  ;;  %v2343_v53 = vcombine.low %v103_v44, %v107_v45  ;;  %1902 = vmatprep.subr.bf16.mxu0 %v2572_v52  ;;  %v56_v44 = vld [vmem:[%s3693_s1 + $0xd0] sm:$0xff] }
  0x34   :  { %v60_v45 = vld [vmem:[%s3693_s1 + $0xf0] sm:$0xff] }
  0x35   :  { %v2602_v52 = vld [vmem:[%s3695_s3 + $0xb4] ss:$8 sps:$4 sm:$0xff]  }
  0x36   :  { %885 = vmatpush1.bf16.msra.mxu1 %v2365_v56  ;;  %v2574_v56 = vld [vmem:[%s3695_s3 + $0x10] ss:$8 sps:$4 sm:$0xff]  }
  0x37   :  { %886 = vmatprep.subr.bf16.mxu1 %v2374_v57  ;;  %v2352_v57 = vcombine.high %v111_v48, %v115_v49  ;;  %1903 = vmatpush1.bf16.msra.mxu0 %v2574_v56  ;;  %v2289_v48 = vcombine.low %v48_v36, %v52_v37  ;;  %v64_v49 = vld [vmem:[%s3693_s1 + $0x110] sm:$0xff] }
  0x38   :  { %1904 = vmatprep.subr.bf16.mxu0 %v2575_v58  ;;  %v72_v56 = vld [vmem:[%s3693_s1 + $0x150] sm:$0xff]  ;;  %v2607_v58 = vld [vmem:[%s3695_s3 + $0xc0] ss:$8 sps:$4 sm:$0xff]  }
  0x3a   :  { %887 = vmatpush1.bf16.msra.mxu1 %v2373_v60  ;;  %v127_v60 = vld [vmem:[%s3693_s1 + $0x308] sm:$0xff] }
  0x3b   :  { %888 = vmatprep.subr.bf16.mxu1 %v2382_v61  ;;  %v131_v61 = vld [vmem:[%s3693_s1 + $0x328] sm:$0xff]  ;;  %1905 = vmatpush1.bf16.msra.mxu0 %v2577_v62  ;;  %v80_v62 = vld [vmem:[%s3693_s1 + $0x190] sm:$0xff] }
  0x3c   :  { %v2367_v7 = vcombine.low %v127_v60, %v131_v61 }
  0x3e   :  { %889 = vmatpush1.bf16.msra.mxu1 %v2381_v0  ;;  %v2578_v0 = vld [vmem:[%s3695_s3 + $0x34] ss:$8 sps:$4 sm:$0xff]  }
  0x3f   :  { %890 = vmatprep.subr.bf16.mxu1 %v2390_v1  ;;  %v2359_v1 = vcombine.low %v119_v54, %v123_v55  ;;  %1906 = vmatprep.subr.bf16.mxu0 %v2578_v0  ;;  %v2605_v54 = vld [vmem:[%s3695_s3 + $0xc4] ss:$8 sps:$4 sm:$0xff]   ;;  %v2297_v55 = vcombine.low %v56_v44, %v60_v45 }
  0x42   :  { %891 = vmatpush1.bf16.msra.mxu1 %v2389_v4  ;;  %v2580_v4 = vld [vmem:[%s3695_s3 + $0x30] ss:$8 sps:$4 sm:$0xff]  }
  0x43   :  { %913 = vmatprep.subr.bf16.mxu1 %v2272_v5  ;;  %v2368_v5 = vcombine.high %v127_v60, %v131_v61  ;;  %1907 = vmatpush1.bf16.msra.mxu0 %v2580_v4  ;;  %v2608_v60 = vld [vmem:[%s3695_s3 + $0xd4] ss:$8 sps:$4 sm:$0xff]   ;;  %v2305_v61 = vcombine.low %v64_v49, %v68_v50  ;;  %v2610_v4 = vld [vmem:[%s3695_s3 + $0xd0] ss:$8 sps:$4 sm:$0xff]  }
  0x44   :  { %1908 = vmatprep.subr.bf16.mxu0 %v2581_v6  ;;  %v2611_v6 = vld [vmem:[%s3695_s3 + $0xe4] ss:$8 sps:$4 sm:$0xff]  }
  0x45   :  { %893 = vmatmul.mubr.bf16.vlgmr.msra.gmra.mrb[0].mxu1 %v2944_v10 }
  0x46   :  { %914 = vmatpush1.bf16.msra.mxu1 %v2271_v11  ;;  %902 = vmatprep.mubr.bf16.mxu1 %v2946_v12  ;;  %v2583_v11 = vld [vmem:[%s3695_s3 + $0x40] ss:$8 sps:$4 sm:$0xff]  }
  0x47   :  { %915 = vmatprep.subr.bf16.mxu1 %v2280_v13  ;;  %v2376_v13 = vcombine.high %v135_v2, %v139_v3  ;;  %1909 = vmatpush1.bf16.msra.mxu0 %v2583_v11  ;;  %v88_v2 = vld [vmem:[%s3693_s1 + $0x1d0] sm:$0xff] }
  0x48   :  { %1910 = vmatprep.subr.bf16.mxu0 %v2584_v14  ;;  %v92_v3 = vld [vmem:[%s3693_s1 + $0x1f0] sm:$0xff] }
  0x49   :  { %v96_v11 = vld [vmem:[%s3693_s1 + $0x210] sm:$0xff] }
  0x4a   :  { %916 = vmatpush1.bf16.msra.mxu1 %v2279_v16  ;;  %v151_v16 = vld [vmem:[%s3693_s1 + $0x3c8] sm:$0xff]  ;;  %v2614_v14 = vld [vmem:[%s3695_s3 + $0xf4] ss:$8 sps:$4 sm:$0xff]  }
  0x4b   :  { %917 = vmatprep.subr.bf16.mxu1 %v2288_v17  ;;  %v155_v17 = vld [vmem:[%s3693_s1 + $0x3e8] sm:$0xff]  ;;  %1911 = vmatpush1.bf16.msra.mxu0 %v2586_v18  ;;  %v104_v18 = vld [vmem:[%s3693_s1 + $0x250] sm:$0xff] }
  0x4c   :  { %v2391_v29 = vcombine.low %v151_v16, %v155_v17 }
  0x4d   :  { %903 = vmatmul.mubr.bf16.gmra.mrb[4].mxu1 %v2962_v21 }
  0x4e   :  { %918 = vmatpush1.bf16.msra.mxu1 %v2287_v22  ;;  %945 = vmatprep.mubr.bf16.mxu1 %v2855_v20  ;;  %v2587_v22 = vld [vmem:[%s3695_s3 + $0x64] ss:$8 sps:$4 sm:$0xff]  }
  0x4f   :  { %919 = vmatprep.subr.bf16.mxu1 %v2296_v23  ;;  %v2383_v23 = vcombine.low %v143_v8, %v147_v9  ;;  %1912 = vmatprep.subr.bf16.mxu0 %v2587_v22  ;;  %v2613_v8 = vld [vmem:[%s3695_s3 + $0xe0] ss:$8 sps:$4 sm:$0xff]   ;;  %v2330_v9 = vcombine.high %v88_v2, %v92_v3  ;;  %v2619_v22 = vld [vmem:[%s3695_s3 + $0x104] ss:$8 sps:$4 sm:$0xff]  }
  0x52   :  { %920 = vmatpush1.bf16.msra.mxu1 %v2295_v26  ;;  %v2589_v26 = vld [vmem:[%s3695_s3 + $0x60] ss:$8 sps:$4 sm:$0xff]  }
  0x53   :  { %921 = vmatprep.subr.bf16.mxu1 %v2304_v27  ;;  %v2392_v27 = vcombine.high %v151_v16, %v155_v17  ;;  %1913 = vmatpush1.bf16.msra.mxu0 %v2589_v26  ;;  %v2616_v16 = vld [vmem:[%s3695_s3 + $0xf0] ss:$8 sps:$4 sm:$0xff]  }
  0x54   :  { %1914 = vmatprep.subr.bf16.mxu0 %v2590_v28  ;;  %v116_v26 = vld [vmem:[%s3693_s1 + $0x2b0] sm:$0xff] }
  0x56   :  { %922 = vmatpush1.bf16.msra.mxu1 %v2303_v30  ;;  %v40_v30 = vld [vmem:[%s3693_s1 + $0x50] sm:$0xff] }
  0x57   :  { %923 = vmatprep.subr.bf16.mxu1 %v2312_v31  ;;  %v44_v31 = vld [vmem:[%s3693_s1 + $0x70] sm:$0xff]  ;;  %1915 = vmatpush1.bf16.msra.mxu0 %v2592_v32 }
  0x5a   :  { %924 = vmatpush1.bf16.msra.mxu1 %v2311_v34  ;;  %v2593_v34 = vld [vmem:[%s3695_s3 + $0x84] ss:$8 sps:$4 sm:$0xff]  }
  0x5b   :  { %925 = vmatprep.subr.bf16.mxu1 %v2320_v35  ;;  %v2273_v35 = vcombine.low %v32_v24, %v36_v25  ;;  %1916 = vmatprep.subr.bf16.mxu0 %v2593_v34  ;;  %v112_v25 = vld [vmem:[%s3693_s1 + $0x290] sm:$0xff] }
  0x5c   :  { %v2354_v28 = vcombine.high %v112_v25, %v116_v26  ;;  %v132_v34 = vld [vmem:[%s3693_s1 + $0x330] sm:$0xff] }
  0x5e   :  { %926 = vmatpush1.bf16.msra.mxu1 %v2319_v38  ;;  %v2595_v38 = vld [vmem:[%s3695_s3 + $0x80] ss:$8 sps:$4 sm:$0xff]  }
  0x5f   :  { %927 = vmatprep.subr.bf16.mxu1 %v2328_v39  ;;  %v2282_v39 = vcombine.high %v40_v30, %v44_v31  ;;  %1917 = vmatpush1.bf16.msra.mxu0 %v2595_v38  ;;  %v140_v38 = vld [vmem:[%s3693_s1 + $0x370] sm:$0xff] }
  0x60   :  { %1918 = vmatprep.subr.bf16.mxu0 %v2596_v40 }
  0x62   :  { %928 = vmatpush1.bf16.msra.mxu1 %v2327_v42  ;;  %v2599_v42 = vld [vmem:[%s3695_s3 + $0xa4] ss:$8 sps:$4 sm:$0xff]  }
  0x63   :  { %929 = vmatprep.subr.bf16.mxu1 %v2336_v43  ;;  %v2281_v43 = vcombine.low %v40_v30, %v44_v31  ;;  %1919 = vmatpush1.bf16.msra.mxu0 %v2598_v41  ;;  %v124_v30 = vld [vmem:[%s3693_s1 + $0x2f0] sm:$0xff]  ;;  %v2353_v31 = vcombine.low %v112_v25, %v116_v26  ;;  %v109_v25 = vld [vmem:[%s3693_s1 + $0x278] sm:$0xff] }
  0x64   :  { %1920 = vmatprep.subr.bf16.mxu0 %v2599_v42  ;;  %v144_v41 = vld [vmem:[%s3693_s1 + $0x390] sm:$0xff] }
  0x65   :  { %v148_v42 = vld [vmem:[%s3693_s1 + $0x3b0] sm:$0xff] }
  0x66   :  { %930 = vmatpush1.bf16.msra.mxu1 %v2335_v47  ;;  %v2290_v47 = vcombine.high %v48_v36, %v52_v37  ;;  %v136_v37 = vld [vmem:[%s3693_s1 + $0x350] sm:$0xff] }
  0x67   :  { %931 = vmatprep.subr.bf16.mxu1 %v2344_v51  ;;  %v2298_v51 = vcombine.high %v56_v44, %v60_v45  ;;  %1921 = vmatpush1.bf16.msra.mxu0 %v2601_v46  ;;  %v2378_v40 = vcombine.high %v136_v37, %v140_v38  ;;  %v2386_v44 = vcombine.high %v144_v41, %v148_v42  ;;  %v152_v45 = vld [vmem:[%s3693_s1 + $0x3d0] sm:$0xff] }
  0x68   :  { %1922 = vmatprep.subr.bf16.mxu0 %v2602_v52  ;;  %v156_v46 = vld [vmem:[%s3693_s1 + $0x3f0] sm:$0xff] }
  0x6a   :  { %932 = vmatpush1.bf16.msra.mxu1 %v2343_v53  ;;  %v2604_v53 = vld [vmem:[%s3695_s3 + $0xb0] ss:$8 sps:$4 sm:$0xff]  }
  0x6b   :  { %933 = vmatprep.subr.bf16.mxu1 %v2352_v57  ;;  %v76_v57 = vld [vmem:[%s3693_s1 + $0x170] sm:$0xff]  ;;  %1923 = vmatpush1.bf16.msra.mxu0 %v2604_v53  ;;  %v41_v53 = vld [vmem:[%s3693_s1 + $0x58] sm:$0xff] }
  0x6c   :  { %1924 = vmatprep.subr.bf16.mxu0 %v2605_v54  ;;  %v2314_v0 = vcombine.high %v72_v56, %v76_v57  ;;  %v45_v54 = vld [vmem:[%s3693_s1 + $0x78] sm:$0xff] }
  0x6e   :  { %934 = vmatpush1.bf16.msra.mxu1 %v2351_v59  ;;  %v2306_v59 = vcombine.high %v64_v49, %v68_v50  ;;  %v33_v49 = vld [vmem:[%s3693_s1 + $0x18] sm:$0xff] }
  0x6f   :  { %935 = vmatprep.subr.bf16.mxu1 %v2360_v63  ;;  %v84_v63 = vld [vmem:[%s3693_s1 + $0x1b0] sm:$0xff]  ;;  %1925 = vmatpush1.bf16.msra.mxu0 %v2607_v58  ;;  %v37_v50 = vld [vmem:[%s3693_s1 + $0x38] sm:$0xff] }
  0x70   :  { %1926 = vmatprep.subr.bf16.mxu0 %v2608_v60  ;;  %v2276_v52 = vcombine.high %v33_v49, %v37_v50  ;;  %v53_v58 = vld [vmem:[%s3693_s1 + $0xb8] sm:$0xff] }
  0x72   :  { %936 = vmatpush1.bf16.msra.mxu1 %v2359_v1  ;;  %v2313_v1 = vcombine.low %v72_v56, %v76_v57  ;;  %v2284_v56 = vcombine.high %v41_v53, %v45_v54  ;;  %v49_v57 = vld [vmem:[%s3693_s1 + $0x98] sm:$0xff] }
  0x73   :  { %937 = vmatprep.subr.bf16.mxu1 %v2368_v5  ;;  %v2322_v5 = vcombine.high %v80_v62, %v84_v63  ;;  %1927 = vmatpush1.bf16.msra.mxu0 %v2610_v4  ;;  %v2292_v60 = vcombine.high %v49_v57, %v53_v58 }
  0x74   :  { %1928 = vmatprep.subr.bf16.mxu0 %v2611_v6  ;;  %v77_v6 = vld [vmem:[%s3693_s1 + $0x178] sm:$0xff] }
  0x76   :  { %938 = vmatpush1.bf16.msra.mxu1 %v2367_v7  ;;  %v2321_v7 = vcombine.low %v80_v62, %v84_v63  ;;  %v61_v62 = vld [vmem:[%s3693_s1 + $0xf8] sm:$0xff]  ;;  %v2291_v63 = vcombine.low %v49_v57, %v53_v58 }
  0x77   :  { %939 = vmatprep.subr.bf16.mxu1 %v2376_v13  ;;  %v100_v13 = vld [vmem:[%s3693_s1 + $0x230] sm:$0xff]  ;;  %1929 = vmatpush1.bf16.msra.mxu0 %v2613_v8 }
  0x78   :  { %v2338_v17 = vcombine.high %v96_v11, %v100_v13  ;;  %1930 = vmatprep.subr.bf16.mxu0 %v2614_v14  ;;  %v89_v14 = vld [vmem:[%s3693_s1 + $0x1d8] sm:$0xff] }
  0x7a   :  { %940 = vmatpush1.bf16.msra.mxu1 %v2375_v15  ;;  %v2329_v15 = vcombine.low %v88_v2, %v92_v3  ;;  %v69_v2 = vld [vmem:[%s3693_s1 + $0x138] sm:$0xff] }
  0x7b   :  { %941 = vmatprep.subr.bf16.mxu1 %v2384_v19  ;;  %v108_v19 = vld [vmem:[%s3693_s1 + $0x270] sm:$0xff]  ;;  %1931 = vmatpush1.bf16.msra.mxu0 %v2616_v16 }
  0x7c   :  { %v2346_v24 = vcombine.high %v104_v18, %v108_v19  ;;  %1953 = vmatprep.subr.bf16.mxu0 %v2619_v22 }
  0x7e   :  { %942 = vmatpush1.bf16.msra.mxu1 %v2383_v23  ;;  %v2337_v23 = vcombine.low %v96_v11, %v100_v13 }
  0x7f   :  { %943 = vmatprep.subr.bf16.mxu1 %v2392_v27  ;;  %v2345_v27 = vcombine.low %v104_v18, %v108_v19  ;;  %v97_v18 = vld [vmem:[%s3693_s1 + $0x218] sm:$0xff] }
  0x80   :  { %v101_v19 = vld [vmem:[%s3693_s1 + $0x238] sm:$0xff] }
  0x81   :  { %v2339_v26 = vcombine.low %v97_v18, %v101_v19 }
  0x82   :  { %944 = vmatpush1.bf16.msra.mxu1 %v2391_v29  ;;  %v120_v29 = vld [vmem:[%s3693_s1 + $0x2d0] sm:$0xff] }
  0x83   :  { %966 = vmatprep.subr.bf16.mxu1 %v2274_v33  ;;  %v2362_v32 = vcombine.high %v120_v29, %v124_v30  ;;  %v128_v33 = vld [vmem:[%s3693_s1 + $0x310] sm:$0xff] }
  0x84   :  { %v2370_v36 = vcombine.high %v128_v33, %v132_v34 }
  0x85   :  { %946 = vmatmul.mubr.bf16.vlgmr.msra.gmra.mrb[8].mxu1 %v2944_v10 }
  0x86   :  { %967 = vmatpush1.bf16.msra.mxu1 %v2273_v35  ;;  %955 = vmatprep.mubr.bf16.mxu1 %v2946_v12  ;;  %v2361_v35 = vcombine.low %v120_v29, %v124_v30  ;;  %v117_v29 = vld [vmem:[%s3693_s1 + $0x2b8] sm:$0xff] }
  0x87   :  { %968 = vmatprep.subr.bf16.mxu1 %v2282_v39  ;;  %v2369_v39 = vcombine.low %v128_v33, %v132_v34  ;;  %v125_v33 = vld [vmem:[%s3693_s1 + $0x2f8] sm:$0xff] }
  0x8a   :  { %969 = vmatpush1.bf16.msra.mxu1 %v2281_v43  ;;  %v2377_v43 = vcombine.low %v136_v37, %v140_v38  ;;  %v133_v37 = vld [vmem:[%s3693_s1 + $0x338] sm:$0xff] }
  0x8b   :  { %970 = vmatprep.subr.bf16.mxu1 %v2290_v47  ;;  %v2385_v47 = vcombine.low %v144_v41, %v148_v42  ;;  %v141_v41 = vld [vmem:[%s3693_s1 + $0x378] sm:$0xff] }
  0x8d   :  { %956 = vmatmul.mubr.bf16.gmra.mrb[12].mxu1 %v2962_v21 }
  0x8e   :  { %971 = vmatpush1.bf16.msra.mxu1 %v2289_v48  ;;  %998 = vmatprep.mubr.bf16.mxu1 %v2855_v20  ;;  %v2394_v48 = vcombine.high %v152_v45, %v156_v46 }
  0x8f   :  { %972 = vmatprep.subr.bf16.mxu1 %v2298_v51  ;;  %v2393_v51 = vcombine.low %v152_v45, %v156_v46  ;;  %v149_v45 = vld [vmem:[%s3693_s1 + $0x3b8] sm:$0xff] }
  0x92   :  { %973 = vmatpush1.bf16.msra.mxu1 %v2297_v55  ;;  %v2275_v55 = vcombine.low %v33_v49, %v37_v50  ;;  %v157_v49 = vld [vmem:[%s3693_s1 + $0x3f8] sm:$0xff] }
  0x93   :  { %974 = vmatprep.subr.bf16.mxu1 %v2306_v59  ;;  %v2283_v59 = vcombine.low %v41_v53, %v45_v54  ;;  %v160_v53 = vlaneseq }
  0x95   :  { %v3340_v54 = vshrl.u32 %v160_v53, 7 }
  0x96   :  { %975 = vmatpush1.bf16.msra.mxu1 %v2305_v61  ;;  %v57_v61 = vld [vmem:[%s3693_s1 + $0xd8] sm:$0xff] }
  0x97   :  { %976 = vmatprep.subr.bf16.mxu1 %v2314_v0  ;;  %v2300_v0 = vcombine.high %v57_v61, %v61_v62  ;;  %v2299_v3 = vcombine.low %v57_v61, %v61_v62  ;;  %v3351_v57 = vsub.s32 1, %v3340_v54 }
  0x9a   :  { %977 = vmatpush1.bf16.msra.mxu1 %v2313_v1  ;;  %v65_v1 = vld [vmem:[%s3693_s1 + $0x118] sm:$0xff] }
  0x9b   :  { %978 = vmatprep.subr.bf16.mxu1 %v2322_v5  ;;  %v2308_v4 = vcombine.high %v65_v1, %v69_v2  ;;  %v73_v5 = vld [vmem:[%s3693_s1 + $0x158] sm:$0xff] }
  0x9c   :  { %v2316_v8 = vcombine.high %v73_v5, %v77_v6  ;;  %v2315_v11 = vcombine.low %v73_v5, %v77_v6 }
  0x9e   :  { %979 = vmatpush1.bf16.msra.mxu1 %v2321_v7  ;;  %v2307_v7 = vcombine.low %v65_v1, %v69_v2 }
  0x9f   :  { %980 = vmatprep.subr.bf16.mxu1 %v2330_v9  ;;  %v81_v9 = vld [vmem:[%s3693_s1 + $0x198] sm:$0xff] }
  0xa2   :  { %981 = vmatpush1.bf16.msra.mxu1 %v2329_v15  ;;  %v93_v15 = vld [vmem:[%s3693_s1 + $0x1f8] sm:$0xff] }
  0xa3   :  { %982 = vmatprep.subr.bf16.mxu1 %v2338_v17  ;;  %v2332_v17 = vcombine.high %v89_v14, %v93_v15  ;;  %v2331_v22 = vcombine.low %v89_v14, %v93_v15 }
  0xa6   :  { %983 = vmatpush1.bf16.msra.mxu1 %v2337_v23  ;;  %v2340_v23 = vcombine.high %v97_v18, %v101_v19  ;;  %v2620_v18 = vld [vmem:[%s3695_s3 + $0x110] ss:$8 sps:$4 sm:$0xff]  }
  0xa7   :  { %984 = vmatprep.subr.bf16.mxu1 %v2346_v24  ;;  %v105_v24 = vld [vmem:[%s3693_s1 + $0x258] sm:$0xff] }
  0xa8   :  { %v2347_v30 = vcombine.low %v105_v24, %v109_v25 }
  0xaa   :  { %985 = vmatpush1.bf16.msra.mxu1 %v2345_v27  ;;  %v2348_v27 = vcombine.high %v105_v24, %v109_v25 }
  0xab   :  { %986 = vmatprep.subr.bf16.mxu1 %v2354_v28  ;;  %v113_v28 = vld [vmem:[%s3693_s1 + $0x298] sm:$0xff] }
  0xac   :  { %v2355_v34 = vcombine.low %v113_v28, %v117_v29 }
  0xae   :  { %987 = vmatpush1.bf16.msra.mxu1 %v2353_v31  ;;  %v2356_v31 = vcombine.high %v113_v28, %v117_v29  ;;  %v2628_v29 = vld [vmem:[%s3695_s3 + $0x134] ss:$8 sps:$4 sm:$0xff]  }
  0xaf   :  { %988 = vmatprep.subr.bf16.mxu1 %v2362_v32  ;;  %v121_v32 = vld [vmem:[%s3693_s1 + $0x2d8] sm:$0xff] }
  0xb0   :  { %v2363_v38 = vcombine.low %v121_v32, %v125_v33 }
  0xb2   :  { %989 = vmatpush1.bf16.msra.mxu1 %v2361_v35  ;;  %v2364_v35 = vcombine.high %v121_v32, %v125_v33  ;;  %v2629_v32 = vld [vmem:[%s3695_s3 + $0x140] ss:$8 sps:$4 sm:$0xff]   ;;  %v2634_v33 = vld [vmem:[%s3695_s3 + $0x154] ss:$8 sps:$4 sm:$0xff]  }
  0xb3   :  { %990 = vmatprep.subr.bf16.mxu1 %v2370_v36  ;;  %v129_v36 = vld [vmem:[%s3693_s1 + $0x318] sm:$0xff] }
  0xb4   :  { %v2371_v42 = vcombine.low %v129_v36, %v133_v37 }
  0xb6   :  { %991 = vmatpush1.bf16.msra.mxu1 %v2369_v39  ;;  %v2372_v39 = vcombine.high %v129_v36, %v133_v37  ;;  %v2635_v36 = vld [vmem:[%s3695_s3 + $0x160] ss:$8 sps:$4 sm:$0xff]   ;;  %v2640_v37 = vld [vmem:[%s3695_s3 + $0x174] ss:$8 sps:$4 sm:$0xff]  }
  0xb7   :  { %992 = vmatprep.subr.bf16.mxu1 %v2378_v40  ;;  %v137_v40 = vld [vmem:[%s3693_s1 + $0x358] sm:$0xff] }
  0xb8   :  { %v2379_v46 = vcombine.low %v137_v40, %v141_v41 }
  0xba   :  { %993 = vmatpush1.bf16.msra.mxu1 %v2377_v43  ;;  %v2380_v43 = vcombine.high %v137_v40, %v141_v41  ;;  %v2641_v40 = vld [vmem:[%s3695_s3 + $0x180] ss:$8 sps:$4 sm:$0xff]   ;;  %v2646_v41 = vld [vmem:[%s3695_s3 + $0x194] ss:$8 sps:$4 sm:$0xff]  }
  0xbb   :  { %994 = vmatprep.subr.bf16.mxu1 %v2386_v44  ;;  %v145_v44 = vld [vmem:[%s3693_s1 + $0x398] sm:$0xff] }
  0xbc   :  { %v2387_v50 = vcombine.low %v145_v44, %v149_v45 }
  0xbe   :  { %995 = vmatpush1.bf16.msra.mxu1 %v2385_v47  ;;  %v2388_v47 = vcombine.high %v145_v44, %v149_v45  ;;  %v2647_v44 = vld [vmem:[%s3695_s3 + $0x1a0] ss:$8 sps:$4 sm:$0xff]   ;;  %v2652_v45 = vld [vmem:[%s3695_s3 + $0x1b4] ss:$8 sps:$4 sm:$0xff]  }
  0xbf   :  { %996 = vmatprep.subr.bf16.mxu1 %v2394_v48  ;;  %v153_v48 = vld [vmem:[%s3693_s1 + $0x3d8] sm:$0xff] }
  0xc2   :  { %997 = vmatpush1.bf16.msra.mxu1 %v2393_v51  ;;  %v2396_v51 = vcombine.high %v153_v48, %v157_v49 }
  0xc3   :  { %1019 = vmatprep.subr.bf16.mxu1 %v2276_v52  ;;  %v2395_v52 = vcombine.low %v153_v48, %v157_v49  ;;  %v2653_v48 = vld [vmem:[%s3695_s3 + $0x1c0] ss:$8 sps:$4 sm:$0xff]   ;;  %v2658_v49 = vld [vmem:[%s3695_s3 + $0x1d4] ss:$8 sps:$4 sm:$0xff]  }
  0xc5   :  { %999 = vmatmul.mubr.bf16.vlgmr.msra.gmra.mrb[16].mxu1 %v2944_v10 }
  0xc6   :  { %1020 = vmatpush1.bf16.msra.mxu1 %v2275_v55  ;;  %1008 = vmatprep.mubr.bf16.mxu1 %v2946_v12  ;;  %v3343_v55 = vsub.s32 0, %v3340_v54 }
  0xc7   :  { %1021 = vmatprep.subr.bf16.mxu1 %v2284_v56  ;;  %v3348_v56 = vld [vmem:[%s3696_s2] sm:$0xff] }
  0xca   :  { %1022 = vmatpush1.bf16.msra.mxu1 %v2283_v59 }
  0xcb   :  { %1023 = vmatprep.subr.bf16.mxu1 %v2292_v60 }
  0xcd   :  { %1009 = vmatmul.mubr.bf16.gmra.mrb[20].mxu1 %v2962_v21 }
  0xce   :  { %1024 = vmatpush1.bf16.msra.mxu1 %v2291_v63  ;;  %1051 = vmatprep.mubr.bf16.mxu1 %v2855_v20  ;;  %v85_v20 = vld [vmem:[%s3693_s1 + $0x1b8] sm:$0xff] }
  0xcf   :  { %1025 = vmatprep.subr.bf16.mxu1 %v2300_v0  ;;  %v2324_v13 = vcombine.high %v81_v9, %v85_v20  ;;  %v2323_v16 = vcombine.low %v81_v9, %v85_v20  ;;  %v2622_v9 = vld [vmem:[%s3695_s3 + $0x114] ss:$8 sps:$4 sm:$0xff]  }
  0xd2   :  { %1026 = vmatpush1.bf16.msra.mxu1 %v2299_v3 }
  0xd3   :  { %1027 = vmatprep.subr.bf16.mxu1 %v2308_v4 }
  0xd6   :  { %1028 = vmatpush1.bf16.msra.mxu1 %v2307_v7  ;;  %v2617_v7 = vld [vmem:[%s3695_s3 + $0x100] ss:$8 sps:$4 sm:$0xff]  }
  0xd7   :  { %1029 = vmatprep.subr.bf16.mxu1 %v2316_v8 }
  0xda   :  { %1030 = vmatpush1.bf16.msra.mxu1 %v2315_v11 }
  0xdb   :  { %1031 = vmatprep.subr.bf16.mxu1 %v2324_v13 }
  0xde   :  { %1032 = vmatpush1.bf16.msra.mxu1 %v2323_v16 }
  0xdf   :  { %1033 = vmatprep.subr.bf16.mxu1 %v2332_v17 }
  0xe2   :  { %1034 = vmatpush1.bf16.msra.mxu1 %v2331_v22 }
  0xe3   :  { %1035 = vmatprep.subr.bf16.mxu1 %v2340_v23  ;;  %v2625_v23 = vld [vmem:[%s3695_s3 + $0x124] ss:$8 sps:$4 sm:$0xff]  }
  0xe6   :  { %1036 = vmatpush1.bf16.msra.mxu1 %v2339_v26 }
  0xe7   :  { %1037 = vmatprep.subr.bf16.mxu1 %v2348_v27  ;;  %v2623_v27 = vld [vmem:[%s3695_s3 + $0x120] ss:$8 sps:$4 sm:$0xff]  }
  0xea   :  { %1038 = vmatpush1.bf16.msra.mxu1 %v2347_v30  ;;  %v2626_v30 = vld [vmem:[%s3695_s3 + $0x130] ss:$8 sps:$4 sm:$0xff]  }
  0xeb   :  { %1039 = vmatprep.subr.bf16.mxu1 %v2356_v31  ;;  %v2631_v31 = vld [vmem:[%s3695_s3 + $0x144] ss:$8 sps:$4 sm:$0xff]  }
  0xee   :  { %1040 = vmatpush1.bf16.msra.mxu1 %v2355_v34  ;;  %v2632_v34 = vld [vmem:[%s3695_s3 + $0x150] ss:$8 sps:$4 sm:$0xff]  }
  0xef   :  { %1041 = vmatprep.subr.bf16.mxu1 %v2364_v35  ;;  %v2637_v35 = vld [vmem:[%s3695_s3 + $0x164] ss:$8 sps:$4 sm:$0xff]  }
  0xf2   :  { %1042 = vmatpush1.bf16.msra.mxu1 %v2363_v38  ;;  %v2638_v38 = vld [vmem:[%s3695_s3 + $0x170] ss:$8 sps:$4 sm:$0xff]  }
  0xf3   :  { %1043 = vmatprep.subr.bf16.mxu1 %v2372_v39  ;;  %v2643_v39 = vld [vmem:[%s3695_s3 + $0x184] ss:$8 sps:$4 sm:$0xff]  }
  0xf6   :  { %1044 = vmatpush1.bf16.msra.mxu1 %v2371_v42  ;;  %v2644_v42 = vld [vmem:[%s3695_s3 + $0x190] ss:$8 sps:$4 sm:$0xff]  }
  0xf7   :  { %1045 = vmatprep.subr.bf16.mxu1 %v2380_v43  ;;  %v2649_v43 = vld [vmem:[%s3695_s3 + $0x1a4] ss:$8 sps:$4 sm:$0xff]  }
  0xfa   :  { %1046 = vmatpush1.bf16.msra.mxu1 %v2379_v46  ;;  %v2650_v46 = vld [vmem:[%s3695_s3 + $0x1b0] ss:$8 sps:$4 sm:$0xff]  }
  0xfb   :  { %1047 = vmatprep.subr.bf16.mxu1 %v2388_v47  ;;  %v2655_v47 = vld [vmem:[%s3695_s3 + $0x1c4] ss:$8 sps:$4 sm:$0xff]  }
  0xfe   :  { %1048 = vmatpush1.bf16.msra.mxu1 %v2387_v50  ;;  %v170_v50 = vsub.s32 2, %v3340_v54 }
  0xff   :  { %1049 = vmatprep.subr.bf16.mxu1 %v2396_v51  ;;  %v174_v51 = vsub.s32 3, %v3340_v54 }
 0x100   :  { %v171_v53 = vrot.slane %v3348_v56, %v170_v50  ;;  %v2698_v50 = vld [vmem:[%s3695_s3 + $0x2b0] ss:$8 sps:$4 sm:$0xff]  }
 0x102   :  { %1050 = vmatpush1.bf16.msra.mxu1 %v2395_v52  ;;  %v2656_v52 = vld [vmem:[%s3695_s3 + $0x1d0] ss:$8 sps:$4 sm:$0xff]  }
 0x105   :  { %1052 = vmatmul.mubr.bf16.vlgmr.msra.gmra.mrb[24].mxu1 %v2944_v10  ;;  %v163_v10 = vrot.slane %v3348_v56, %v3343_v55 }
 0x106   :  { %1061 = vmatprep.mubr.bf16.mxu1 %v2946_v12  ;;  %v167_v12 = vrot.slane %v3348_v56, %v3351_v57 }
 0x10d   :  { %1062 = vmatmul.mubr.bf16.gmra.mrb[28].mxu1 %v2962_v21 }
 0x118   :  { %v894_v21 = vpop.f32.mrb[0].mxu1 }
 0x119   :  { %v895_v58 = vadd.f32 %v894_v21, %v163_v10  ;;  %v896_v59 = vpop.f32.mrb[1].mxu1 }
 0x11a   :  { %v897_v60 = vadd.f32 %v896_v59, %v167_v12  ;;  %v898_v61 = vpop.f32.mrb[2].mxu1 }
 0x11b   :  { %v1072_v62 = vmax.f32 %v895_v58, 0.0  ;;  %v899_v63 = vadd.f32 %v898_v61, %v163_v10  ;;  %v900_v0 = vpop.f32.mrb[3].mxu1  ;;  %v2659_v58 = vld [vmem:[%s3695_s3 + $0x1e0] ss:$8 sps:$4 sm:$0xff]   ;;  %v2664_v61 = vld [vmem:[%s3695_s3 + $0x1f4] ss:$8 sps:$4 sm:$0xff]  }
 0x11c   :  { %v901_v1 = vadd.f32 %v900_v0, %v167_v12  ;;  %v1073_v3 = vmax.f32 %v897_v60, 0.0 }
 0x11d   :  { %v1080_v2 = vmax.f32 %v899_v63, 0.0 }
 0x11e   :  { %v1081_v4 = vmax.f32 %v901_v1, 0.0 }
 0x11f   :  { %v1104_v5 = vpack.c.bf16 %v1080_v2, %v1072_v62 }
 0x120   :  { %v1105_v6 = vpack.c.bf16 %v1081_v4, %v1073_v3  ;;  %v904_v8 = vpop.f32.mrb[4].mxu1  ;;  %v2662_v4 = vld [vmem:[%s3695_s3 + $0x1f0] ss:$8 sps:$4 sm:$0xff]  }
 0x121   :  { %v905_v20 = vadd.f32 %v904_v8, %v163_v10  ;;  %v906_v11 = vpop.f32.mrb[5].mxu1 }
 0x122   :  { %1932 = vmatprep.mubr.bf16.mxu0 %v1105_v6  ;;  %v907_v13 = vadd.f32 %v906_v11, %v167_v12  ;;  %v908_v14 = vpop.f32.mrb[6].mxu1  ;;  %v2667_v6 = vld [vmem:[%s3695_s3 + $0x204] ss:$8 sps:$4 sm:$0xff]   ;;  %v2665_v11 = vld [vmem:[%s3695_s3 + $0x200] ss:$8 sps:$4 sm:$0xff]  }
 0x123   :  { %1933 = vmatmul.mubr.bf16.vlgmr.msra.gmra.mrb[0].mxu0 %v1104_v5  ;;  %v1088_v15 = vmax.f32 %v905_v20, 0.0  ;;  %v909_v16 = vadd.f32 %v908_v14, %v163_v10  ;;  %v910_v17 = vpop.f32.mrb[7].mxu1  ;;  %v2661_v10 = vld [vmem:[%s3695_s3 + $0x1e4] ss:$8 sps:$4 sm:$0xff]   ;;  %v2670_v14 = vld [vmem:[%s3695_s3 + $0x214] ss:$8 sps:$4 sm:$0xff]  }
 0x124   :  { %1954 = vmatpush1.bf16.msra.mxu0 %v2617_v7  ;;  %v1089_v19 = vmax.f32 %v907_v13, 0.0  ;;  %v911_v22 = vadd.f32 %v910_v17, %v167_v12  ;;  %v175_v12 = vrot.slane %v3348_v56, %v174_v51  ;;  %v2703_v51 = vld [vmem:[%s3695_s3 + $0x2c4] ss:$8 sps:$4 sm:$0xff]  }
 0x125   :  { %1955 = vmatprep.subr.bf16.mxu0 %v2622_v9  ;;  %v1096_v24 = vmax.f32 %v909_v16, 0.0 }
 0x126   :  { %v1097_v25 = vmax.f32 %v911_v22, 0.0 }
 0x127   :  { %v1112_v26 = vpack.c.bf16 %v1096_v24, %v1088_v15  ;;  %v2668_v24 = vld [vmem:[%s3695_s3 + $0x210] ss:$8 sps:$4 sm:$0xff]  }
 0x128   :  { %1956 = vmatpush1.bf16.msra.mxu0 %v2620_v18  ;;  %v1113_v28 = vpack.c.bf16 %v1097_v25, %v1089_v19 }
 0x129   :  { %1957 = vmatprep.subr.bf16.mxu0 %v2625_v23 }
 0x12a   :  { %1942 = vmatprep.mubr.bf16.mxu0 %v1113_v28 }
 0x12b   :  { %1943 = vmatmul.mubr.bf16.gmra.mrb[4].mxu0 %v1112_v26 }
 0x12c   :  { %1958 = vmatpush1.bf16.msra.mxu0 %v2623_v27  ;;  %v2673_v27 = vld [vmem:[%s3695_s3 + $0x224] ss:$8 sps:$4 sm:$0xff]  }
 0x12d   :  { %1959 = vmatprep.subr.bf16.mxu0 %v2628_v29 }
 0x130   :  { %1960 = vmatpush1.bf16.msra.mxu0 %v2626_v30 }
 0x131   :  { %1961 = vmatprep.subr.bf16.mxu0 %v2631_v31  ;;  %v2671_v31 = vld [vmem:[%s3695_s3 + $0x220] ss:$8 sps:$4 sm:$0xff]  }
 0x134   :  { %1962 = vmatpush1.bf16.msra.mxu0 %v2629_v32 }
 0x135   :  { %1963 = vmatprep.subr.bf16.mxu0 %v2634_v33  ;;  %v2676_v33 = vld [vmem:[%s3695_s3 + $0x234] ss:$8 sps:$4 sm:$0xff]  }
 0x138   :  { %1964 = vmatpush1.bf16.msra.mxu0 %v2632_v34  ;;  %v2674_v34 = vld [vmem:[%s3695_s3 + $0x230] ss:$8 sps:$4 sm:$0xff]  }
 0x139   :  { %1965 = vmatprep.subr.bf16.mxu0 %v2637_v35  ;;  %v2679_v35 = vld [vmem:[%s3695_s3 + $0x244] ss:$8 sps:$4 sm:$0xff]  }
 0x13c   :  { %1966 = vmatpush1.bf16.msra.mxu0 %v2635_v36  ;;  %v2677_v36 = vld [vmem:[%s3695_s3 + $0x240] ss:$8 sps:$4 sm:$0xff]  }
 0x13d   :  { %1967 = vmatprep.subr.bf16.mxu0 %v2640_v37  ;;  %v2682_v37 = vld [vmem:[%s3695_s3 + $0x254] ss:$8 sps:$4 sm:$0xff]  }
 0x140   :  { %1968 = vmatpush1.bf16.msra.mxu0 %v2638_v38  ;;  %v2680_v38 = vld [vmem:[%s3695_s3 + $0x250] ss:$8 sps:$4 sm:$0xff]  }
 0x141   :  { %1969 = vmatprep.subr.bf16.mxu0 %v2643_v39  ;;  %v2685_v39 = vld [vmem:[%s3695_s3 + $0x264] ss:$8 sps:$4 sm:$0xff]  }
 0x144   :  { %1970 = vmatpush1.bf16.msra.mxu0 %v2641_v40  ;;  %v2683_v40 = vld [vmem:[%s3695_s3 + $0x260] ss:$8 sps:$4 sm:$0xff]  }
 0x145   :  { %1971 = vmatprep.subr.bf16.mxu0 %v2646_v41  ;;  %v2688_v41 = vld [vmem:[%s3695_s3 + $0x274] ss:$8 sps:$4 sm:$0xff]  }
 0x148   :  { %1972 = vmatpush1.bf16.msra.mxu0 %v2644_v42  ;;  %v2686_v42 = vld [vmem:[%s3695_s3 + $0x270] ss:$8 sps:$4 sm:$0xff]  }
 0x149   :  { %1973 = vmatprep.subr.bf16.mxu0 %v2649_v43  ;;  %v2691_v43 = vld [vmem:[%s3695_s3 + $0x284] ss:$8 sps:$4 sm:$0xff]  }
 0x14c   :  { %1974 = vmatpush1.bf16.msra.mxu0 %v2647_v44  ;;  %v2689_v44 = vld [vmem:[%s3695_s3 + $0x280] ss:$8 sps:$4 sm:$0xff]  }
 0x14d   :  { %1975 = vmatprep.subr.bf16.mxu0 %v2652_v45  ;;  %v2694_v45 = vld [vmem:[%s3695_s3 + $0x294] ss:$8 sps:$4 sm:$0xff]  }
 0x150   :  { %1976 = vmatpush1.bf16.msra.mxu0 %v2650_v46  ;;  %v2692_v46 = vld [vmem:[%s3695_s3 + $0x290] ss:$8 sps:$4 sm:$0xff]  }
 0x151   :  { %1977 = vmatprep.subr.bf16.mxu0 %v2655_v47  ;;  %v2697_v47 = vld [vmem:[%s3695_s3 + $0x2a4] ss:$8 sps:$4 sm:$0xff]  }
 0x154   :  { %1978 = vmatpush1.bf16.msra.mxu0 %v2653_v48  ;;  %v2695_v48 = vld [vmem:[%s3695_s3 + $0x2a0] ss:$8 sps:$4 sm:$0xff]  }
 0x155   :  { %1979 = vmatprep.subr.bf16.mxu0 %v2658_v49  ;;  %v2700_v49 = vld [vmem:[%s3695_s3 + $0x2b4] ss:$8 sps:$4 sm:$0xff]  }
 0x158   :  { %v947_v21 = vpop.f32.mrb[8].mxu1  ;;  %1980 = vmatpush1.bf16.msra.mxu0 %v2656_v52  ;;  %v2701_v52 = vld [vmem:[%s3695_s3 + $0x2c0] ss:$8 sps:$4 sm:$0xff]  }
 0x159   :  { %v948_v59 = vadd.f32 %v947_v21, %v171_v53  ;;  %v949_v60 = vpop.f32.mrb[9].mxu1  ;;  %1981 = vmatprep.subr.bf16.mxu0 %v2661_v10  ;;  %v178_v10 = vsub.s32 4, %v3340_v54  ;;  %v2704_v21 = vld [vmem:[%s3695_s3 + $0x2d0] ss:$8 sps:$4 sm:$0xff]  }
 0x15a   :  { %v950_v62 = vadd.f32 %v949_v60, %v175_v12  ;;  %v951_v63 = vpop.f32.mrb[10].mxu1 }
 0x15b   :  { %v1074_v0 = vmax.f32 %v948_v59, 0.0  ;;  %v952_v1 = vadd.f32 %v951_v63, %v171_v53  ;;  %v953_v2 = vpop.f32.mrb[11].mxu1  ;;  %v2709_v59 = vld [vmem:[%s3695_s3 + $0x2e4] ss:$8 sps:$4 sm:$0xff]  }
 0x15c   :  { %v954_v3 = vadd.f32 %v953_v2, %v175_v12  ;;  %1982 = vmatpush1.bf16.msra.mxu0 %v2659_v58  ;;  %v1075_v7 = vmax.f32 %v950_v62, 0.0  ;;  %v179_v58 = vrot.slane %v3348_v56, %v178_v10  ;;  %v2707_v62 = vld [vmem:[%s3695_s3 + $0x2e0] ss:$8 sps:$4 sm:$0xff]   ;;  %v2746_v10 = vld [vmem:[%s3695_s3 + $0x3b0] ss:$8 sps:$4 sm:$0xff]  }
 0x15d   :  { %v1082_v5 = vmax.f32 %v952_v1, 0.0  ;;  %1983 = vmatprep.subr.bf16.mxu0 %v2664_v61  ;;  %v2712_v1 = vld [vmem:[%s3695_s3 + $0x2f4] ss:$8 sps:$4 sm:$0xff]  }
 0x15e   :  { %v1083_v8 = vmax.f32 %v954_v3, 0.0 }
 0x15f   :  { %v1106_v9 = vpack.c.bf16 %v1082_v5, %v1074_v0 }
 0x160   :  { %v1107_v20 = vpack.c.bf16 %v1083_v8, %v1075_v7  ;;  %1984 = vmatpush1.bf16.msra.mxu0 %v2662_v4  ;;  %v957_v13 = vpop.f32.mrb[12].mxu1  ;;  %v2710_v8 = vld [vmem:[%s3695_s3 + $0x2f0] ss:$8 sps:$4 sm:$0xff]  }
 0x161   :  { %2006 = vmatprep.subr.bf16.mxu0 %v2667_v6  ;;  %v958_v15 = vadd.f32 %v957_v13, %v171_v53  ;;  %v959_v16 = vpop.f32.mrb[13].mxu1 }
 0x162   :  { %1985 = vmatprep.mubr.bf16.mxu0 %v1107_v20  ;;  %v960_v17 = vadd.f32 %v959_v16, %v175_v12  ;;  %v961_v18 = vpop.f32.mrb[14].mxu1  ;;  %v2715_v20 = vld [vmem:[%s3695_s3 + $0x304] ss:$8 sps:$4 sm:$0xff]   ;;  %v2713_v16 = vld [vmem:[%s3695_s3 + $0x300] ss:$8 sps:$4 sm:$0xff]  }
 0x163   :  { %1986 = vmatmul.mubr.bf16.vlgmr.msra.gmra.mrb[0].mxu0 %v1106_v9  ;;  %v1090_v19 = vmax.f32 %v958_v15, 0.0  ;;  %v962_v22 = vadd.f32 %v961_v18, %v171_v53  ;;  %v963_v23 = vpop.f32.mrb[15].mxu1  ;;  %v2706_v53 = vld [vmem:[%s3695_s3 + $0x2d4] ss:$8 sps:$4 sm:$0xff]  }
 0x164   :  { %2007 = vmatpush1.bf16.msra.mxu0 %v2665_v11  ;;  %v1091_v25 = vmax.f32 %v960_v17, 0.0  ;;  %v964_v26 = vadd.f32 %v963_v23, %v175_v12  ;;  %v182_v12 = vsub.s32 5, %v3340_v54  ;;  %v2718_v18 = vld [vmem:[%s3695_s3 + $0x314] ss:$8 sps:$4 sm:$0xff]  }
 0x165   :  { %2008 = vmatprep.subr.bf16.mxu0 %v2670_v14  ;;  %v1098_v28 = vmax.f32 %v962_v22, 0.0 }
 0x166   :  { %v1099_v29 = vmax.f32 %v964_v26, 0.0  ;;  %v183_v60 = vrot.slane %v3348_v56, %v182_v12  ;;  %v2751_v12 = vld [vmem:[%s3695_s3 + $0x3c4] ss:$8 sps:$4 sm:$0xff]  }
 0x167   :  { %v1114_v30 = vpack.c.bf16 %v1098_v28, %v1090_v19  ;;  %v2716_v28 = vld [vmem:[%s3695_s3 + $0x310] ss:$8 sps:$4 sm:$0xff]  }
 0x168   :  { %2009 = vmatpush1.bf16.msra.mxu0 %v2668_v24  ;;  %v1115_v32 = vpack.c.bf16 %v1099_v29, %v1091_v25 }
 0x169   :  { %2010 = vmatprep.subr.bf16.mxu0 %v2673_v27 }
 0x16a   :  { %1995 = vmatprep.mubr.bf16.mxu0 %v1115_v32 }
 0x16b   :  { %1996 = vmatmul.mubr.bf16.gmra.mrb[4].mxu0 %v1114_v30 }
 0x16c   :  { %2011 = vmatpush1.bf16.msra.mxu0 %v2671_v31  ;;  %v2721_v31 = vld [vmem:[%s3695_s3 + $0x324] ss:$8 sps:$4 sm:$0xff]  }
 0x16d   :  { %2012 = vmatprep.subr.bf16.mxu0 %v2676_v33 }
 0x170   :  { %2013 = vmatpush1.bf16.msra.mxu0 %v2674_v34 }
 0x171   :  { %2014 = vmatprep.subr.bf16.mxu0 %v2679_v35  ;;  %v2719_v35 = vld [vmem:[%s3695_s3 + $0x320] ss:$8 sps:$4 sm:$0xff]  }
 0x174   :  { %2015 = vmatpush1.bf16.msra.mxu0 %v2677_v36 }
 0x175   :  { %2016 = vmatprep.subr.bf16.mxu0 %v2682_v37  ;;  %v2724_v37 = vld [vmem:[%s3695_s3 + $0x334] ss:$8 sps:$4 sm:$0xff]  }
 0x178   :  { %2017 = vmatpush1.bf16.msra.mxu0 %v2680_v38  ;;  %v2722_v38 = vld [vmem:[%s3695_s3 + $0x330] ss:$8 sps:$4 sm:$0xff]  }
 0x179   :  { %2018 = vmatprep.subr.bf16.mxu0 %v2685_v39  ;;  %v2727_v39 = vld [vmem:[%s3695_s3 + $0x344] ss:$8 sps:$4 sm:$0xff]  }
 0x17c   :  { %2019 = vmatpush1.bf16.msra.mxu0 %v2683_v40  ;;  %v2725_v40 = vld [vmem:[%s3695_s3 + $0x340] ss:$8 sps:$4 sm:$0xff]  }
 0x17d   :  { %2020 = vmatprep.subr.bf16.mxu0 %v2688_v41  ;;  %v2730_v41 = vld [vmem:[%s3695_s3 + $0x354] ss:$8 sps:$4 sm:$0xff]  }
 0x180   :  { %2021 = vmatpush1.bf16.msra.mxu0 %v2686_v42  ;;  %v2728_v42 = vld [vmem:[%s3695_s3 + $0x350] ss:$8 sps:$4 sm:$0xff]  }
 0x181   :  { %2022 = vmatprep.subr.bf16.mxu0 %v2691_v43  ;;  %v2733_v43 = vld [vmem:[%s3695_s3 + $0x364] ss:$8 sps:$4 sm:$0xff]  }
 0x184   :  { %2023 = vmatpush1.bf16.msra.mxu0 %v2689_v44  ;;  %v2731_v44 = vld [vmem:[%s3695_s3 + $0x360] ss:$8 sps:$4 sm:$0xff]  }
 0x185   :  { %2024 = vmatprep.subr.bf16.mxu0 %v2694_v45  ;;  %v2736_v45 = vld [vmem:[%s3695_s3 + $0x374] ss:$8 sps:$4 sm:$0xff]  }
 0x188   :  { %2025 = vmatpush1.bf16.msra.mxu0 %v2692_v46  ;;  %v2734_v46 = vld [vmem:[%s3695_s3 + $0x370] ss:$8 sps:$4 sm:$0xff]  }
 0x189   :  { %2026 = vmatprep.subr.bf16.mxu0 %v2697_v47  ;;  %v2739_v47 = vld [vmem:[%s3695_s3 + $0x384] ss:$8 sps:$4 sm:$0xff]  }
 0x18c   :  { %2027 = vmatpush1.bf16.msra.mxu0 %v2695_v48  ;;  %v2737_v48 = vld [vmem:[%s3695_s3 + $0x380] ss:$8 sps:$4 sm:$0xff]  }
 0x18d   :  { %2028 = vmatprep.subr.bf16.mxu0 %v2700_v49  ;;  %v2742_v49 = vld [vmem:[%s3695_s3 + $0x394] ss:$8 sps:$4 sm:$0xff]  }
 0x190   :  { %2029 = vmatpush1.bf16.msra.mxu0 %v2698_v50  ;;  %v2740_v50 = vld [vmem:[%s3695_s3 + $0x390] ss:$8 sps:$4 sm:$0xff]  }
 0x191   :  { %2030 = vmatprep.subr.bf16.mxu0 %v2703_v51  ;;  %v2745_v51 = vld [vmem:[%s3695_s3 + $0x3a4] ss:$8 sps:$4 sm:$0xff]  }
 0x194   :  { %2031 = vmatpush1.bf16.msra.mxu0 %v2701_v52  ;;  %v2743_v52 = vld [vmem:[%s3695_s3 + $0x3a0] ss:$8 sps:$4 sm:$0xff]  }
 0x195   :  { %2032 = vmatprep.subr.bf16.mxu0 %v2706_v53  ;;  %v2748_v53 = vld [vmem:[%s3695_s3 + $0x3b4] ss:$8 sps:$4 sm:$0xff]  }
 0x198   :  { %v1000_v61 = vpop.f32.mrb[16].mxu1  ;;  %2033 = vmatpush1.bf16.msra.mxu0 %v2704_v21  ;;  %v2749_v21 = vld [vmem:[%s3695_s3 + $0x3c0] ss:$8 sps:$4 sm:$0xff]  }
 0x199   :  { %v1001_v63 = vadd.f32 %v1000_v61, %v179_v58  ;;  %v1002_v0 = vpop.f32.mrb[17].mxu1  ;;  %2034 = vmatprep.subr.bf16.mxu0 %v2709_v59  ;;  %v186_v59 = vsub.s32 6, %v3340_v54  ;;  %v2752_v61 = vld [vmem:[%s3695_s3 + $0x3d0] ss:$8 sps:$4 sm:$0xff]  }
 0x19a   :  { %v1003_v2 = vadd.f32 %v1002_v0, %v183_v60  ;;  %v1004_v3 = vpop.f32.mrb[18].mxu1 }
 0x19b   :  { %v1076_v4 = vmax.f32 %v1001_v63, 0.0  ;;  %v1005_v5 = vadd.f32 %v1004_v3, %v179_v58  ;;  %v1006_v6 = vpop.f32.mrb[19].mxu1  ;;  %v2757_v63 = vld [vmem:[%s3695_s3 + $0x3e4] ss:$8 sps:$4 sm:$0xff]  }
 0x19c   :  { %v1007_v7 = vadd.f32 %v1006_v6, %v183_v60  ;;  %2035 = vmatpush1.bf16.msra.mxu0 %v2707_v62  ;;  %v1077_v11 = vmax.f32 %v1003_v2, 0.0  ;;  %v187_v62 = vrot.slane %v3348_v56, %v186_v59 }
 0x19d   :  { %v1084_v9 = vmax.f32 %v1005_v5, 0.0  ;;  %2036 = vmatprep.subr.bf16.mxu0 %v2712_v1 }
 0x19e   :  { %v1085_v13 = vmax.f32 %v1007_v7, 0.0 }
 0x19f   :  { %v1108_v14 = vpack.c.bf16 %v1084_v9, %v1076_v4  ;;  %v2760_v4 = vld [vmem:[%s3695_s3 + $0x3f4] ss:$8 sps:$4 sm:$0xff]  }
 0x1a0   :  { %v1109_v15 = vpack.c.bf16 %v1085_v13, %v1077_v11  ;;  %2037 = vmatpush1.bf16.msra.mxu0 %v2710_v8  ;;  %v1010_v17 = vpop.f32.mrb[20].mxu1 }
 0x1a1   :  { %2059 = vmatprep.subr.bf16.mxu0 %v2715_v20  ;;  %v1011_v19 = vadd.f32 %v1010_v17, %v179_v58  ;;  %v1012_v22 = vpop.f32.mrb[21].mxu1 }
 0x1a2   :  { %2038 = vmatprep.mubr.bf16.mxu0 %v1109_v15  ;;  %v1013_v23 = vadd.f32 %v1012_v22, %v183_v60  ;;  %v1014_v24 = vpop.f32.mrb[22].mxu1 }
 0x1a3   :  { %2039 = vmatmul.mubr.bf16.vlgmr.msra.gmra.mrb[0].mxu0 %v1108_v14  ;;  %v1092_v25 = vmax.f32 %v1011_v19, 0.0  ;;  %v1015_v26 = vadd.f32 %v1014_v24, %v179_v58  ;;  %v1016_v27 = vpop.f32.mrb[23].mxu1  ;;  %v2754_v58 = vld [vmem:[%s3695_s3 + $0x3d4] ss:$8 sps:$4 sm:$0xff]  }
 0x1a4   :  { %2060 = vmatpush1.bf16.msra.mxu0 %v2713_v16  ;;  %v1093_v29 = vmax.f32 %v1013_v23, 0.0  ;;  %v1017_v30 = vadd.f32 %v1016_v27, %v183_v60  ;;  %v190_v60 = vsub.s32 7, %v3340_v54  ;;  %v2755_v54 = vld [vmem:[%s3695_s3 + $0x3e0] ss:$8 sps:$4 sm:$0xff]  }
 0x1a5   :  { %2061 = vmatprep.subr.bf16.mxu0 %v2718_v18  ;;  %v1100_v32 = vmax.f32 %v1015_v26, 0.0 }
 0x1a6   :  { %v1101_v33 = vmax.f32 %v1017_v30, 0.0  ;;  %v191_v0 = vrot.slane %v3348_v56, %v190_v60  ;;  %v2758_v56 = vld [vmem:[%s3695_s3 + $0x3f0] ss:$8 sps:$4 sm:$0xff]  }
 0x1a7   :  { %v1116_v34 = vpack.c.bf16 %v1100_v32, %v1092_v25 }
 0x1a8   :  { %2062 = vmatpush1.bf16.msra.mxu0 %v2716_v28  ;;  %v1117_v36 = vpack.c.bf16 %v1101_v33, %v1093_v29  ;;  %v1248_v33 = vld [vmem:[%s3697_s4] sm:$0x3] }
 0x1a9   :  { %2063 = vmatprep.subr.bf16.mxu0 %v2721_v31 }
 0x1aa   :  { %2048 = vmatprep.mubr.bf16.mxu0 %v1117_v36  ;;  %v2769_v36 = vld [vmem:[%s3694_s0] sm:$0xff] }
 0x1ab   :  { %2049 = vmatmul.mubr.bf16.gmra.mrb[4].mxu0 %v1116_v34  ;;  %v1253_v34 = vrot.slane %v1248_v33, %v3343_v55 }
 0x1ac   :  { %2064 = vmatpush1.bf16.msra.mxu0 %v2719_v35  ;;  %v1257_v35 = vrot.slane %v1248_v33, %v3351_v57 }
 0x1ad   :  { %2065 = vmatprep.subr.bf16.mxu0 %v2724_v37  ;;  %v2112_v37 = vunpack.c.l.bf16 %v2769_v36 }
 0x1b0   :  { %2066 = vmatpush1.bf16.msra.mxu0 %v2722_v38 }
 0x1b1   :  { %2067 = vmatprep.subr.bf16.mxu0 %v2727_v39  ;;  %v2113_v39 = vunpack.c.h.bf16 %v2769_v36 }
 0x1b4   :  { %2068 = vmatpush1.bf16.msra.mxu0 %v2725_v40 }
 0x1b5   :  { %2069 = vmatprep.subr.bf16.mxu0 %v2730_v41 }
 0x1b8   :  { %2070 = vmatpush1.bf16.msra.mxu0 %v2728_v42 }
 0x1b9   :  { %2071 = vmatprep.subr.bf16.mxu0 %v2733_v43 }
 0x1bc   :  { %2072 = vmatpush1.bf16.msra.mxu0 %v2731_v44  ;;  %v2770_v44 = vld [vmem:[%s3694_s0 + $0x8] sm:$0xff] }
 0x1bd   :  { %2073 = vmatprep.subr.bf16.mxu0 %v2736_v45  ;;  %v2114_v45 = vunpack.c.l.bf16 %v2770_v44 }
 0x1c0   :  { %2074 = vmatpush1.bf16.msra.mxu0 %v2734_v46  ;;  %v2115_v46 = vunpack.c.h.bf16 %v2770_v44 }
 0x1c1   :  { %2075 = vmatprep.subr.bf16.mxu0 %v2739_v47 }
 0x1c4   :  { %2076 = vmatpush1.bf16.msra.mxu0 %v2737_v48 }
 0x1c5   :  { %2077 = vmatprep.subr.bf16.mxu0 %v2742_v49 }
 0x1c8   :  { %2078 = vmatpush1.bf16.msra.mxu0 %v2740_v50 }
 0x1c9   :  { %2079 = vmatprep.subr.bf16.mxu0 %v2745_v51 }
 0x1cc   :  { %2080 = vmatpush1.bf16.msra.mxu0 %v2743_v52 }
 0x1cd   :  { %2081 = vmatprep.subr.bf16.mxu0 %v2748_v53 }
 0x1d0   :  { %2082 = vmatpush1.bf16.msra.mxu0 %v2746_v10 }
 0x1d1   :  { %2083 = vmatprep.subr.bf16.mxu0 %v2751_v12  ;;  %v2771_v12 = vld [vmem:[%s3694_s0 + $0x10] sm:$0xff] }
 0x1d2   :  { %v2117_v59 = vunpack.c.h.bf16 %v2771_v12 }
 0x1d4   :  { %2084 = vmatpush1.bf16.msra.mxu0 %v2749_v21  ;;  %v2116_v21 = vunpack.c.l.bf16 %v2771_v12 }
 0x1d5   :  { %2085 = vmatprep.subr.bf16.mxu0 %v2754_v58 }
 0x1d8   :  { %v1053_v1 = vpop.f32.mrb[24].mxu1  ;;  %2086 = vmatpush1.bf16.msra.mxu0 %v2752_v61 }
 0x1d9   :  { %v1054_v2 = vadd.f32 %v1053_v1, %v187_v62  ;;  %v1055_v3 = vpop.f32.mrb[25].mxu1  ;;  %2087 = vmatprep.subr.bf16.mxu0 %v2757_v63 }
 0x1da   :  { %v1056_v5 = vadd.f32 %v1055_v3, %v191_v0  ;;  %v1057_v6 = vpop.f32.mrb[26].mxu1 }
 0x1db   :  { %v1058_v7 = vadd.f32 %v1057_v6, %v187_v62  ;;  %v1059_v8 = vpop.f32.mrb[27].mxu1  ;;  %v1078_v20 = vmax.f32 %v1054_v2, 0.0 }
 0x1dc   :  { %v1060_v9 = vadd.f32 %v1059_v8, %v191_v0  ;;  %2088 = vmatpush1.bf16.msra.mxu0 %v2755_v54  ;;  %v1079_v13 = vmax.f32 %v1056_v5, 0.0 }
 0x1dd   :  { %v1086_v11 = vmax.f32 %v1058_v7, 0.0  ;;  %2089 = vmatprep.subr.bf16.mxu0 %v2760_v4 }
 0x1de   :  { %v1087_v14 = vmax.f32 %v1060_v9, 0.0 }
 0x1df   :  { %v1110_v15 = vpack.c.bf16 %v1086_v11, %v1078_v20 }
 0x1e0   :  { %v1111_v16 = vpack.c.bf16 %v1087_v14, %v1079_v13  ;;  %v1063_v17 = vpop.f32.mrb[28].mxu1  ;;  %2090 = vmatpush1.bf16.msra.mxu0 %v2758_v56 }
 0x1e1   :  { %v1064_v18 = vadd.f32 %v1063_v17, %v187_v62  ;;  %v1065_v19 = vpop.f32.mrb[29].mxu1 }
 0x1e2   :  { %v1066_v22 = vadd.f32 %v1065_v19, %v191_v0  ;;  %v1067_v23 = vpop.f32.mrb[30].mxu1  ;;  %2091 = vmatprep.mubr.bf16.mxu0 %v1111_v16 }
 0x1e3   :  { %v1068_v24 = vadd.f32 %v1067_v23, %v187_v62  ;;  %v1069_v25 = vpop.f32.mrb[31].mxu1  ;;  %2092 = vmatmul.mubr.bf16.vlgmr.msra.gmra.mrb[0].mxu0 %v1110_v15  ;;  %v1094_v27 = vmax.f32 %v1064_v18, 0.0 }
 0x1e4   :  { %v1070_v26 = vadd.f32 %v1069_v25, %v191_v0  ;;  %v1095_v29 = vmax.f32 %v1066_v22, 0.0  ;;  %v2772_v0 = vld [vmem:[%s3694_s0 + $0x18] sm:$0xff] }
 0x1e5   :  { %v1102_v28 = vmax.f32 %v1068_v24, 0.0  ;;  %v2118_v1 = vunpack.c.l.bf16 %v2772_v0  ;;  %v2119_v54 = vunpack.c.h.bf16 %v2772_v0 }
 0x1e6   :  { %v1103_v30 = vmax.f32 %v1070_v26, 0.0 }
 0x1e7   :  { %v1118_v31 = vpack.c.bf16 %v1102_v28, %v1094_v27 }
 0x1e8   :  { %v1119_v32 = vpack.c.bf16 %v1103_v30, %v1095_v29 }
 0x1ea   :  { %2101 = vmatprep.mubr.bf16.mxu0 %v1119_v32 }
 0x1eb   :  { %2102 = vmatmul.mubr.bf16.gmra.mrb[4].mxu0 %v1118_v31 }
 0x2b6   :  { %v2093_v38 = vpop.f32.mrb[0].mxu0 }
 0x2b7   :  { %v2533_v40 = vadd.f32 %v2093_v38, %v1253_v34  ;;  %v2095_v41 = vpop.f32.mrb[1].mxu0 }
 0x2b8   :  { %v2534_v42 = vadd.f32 %v2095_v41, %v1257_v35  ;;  %v2097_v43 = vpop.f32.mrb[2].mxu0 }
 0x2b9   :  { %v2535_v47 = vadd.f32 %v2097_v43, %v1253_v34  ;;  %v2099_v48 = vpop.f32.mrb[3].mxu0  ;;  %v2120_v49 = vadd.f32 %v2533_v40, %v2112_v37 }
 0x2ba   :  { %v2536_v50 = vadd.f32 %v2099_v48, %v1257_v35  ;;  %v2121_v51 = vadd.f32 %v2534_v42, %v2113_v39 }
 0x2bb   :  { %v2122_v52 = vadd.f32 %v2535_v47, %v2114_v45 }
 0x2bc   :  { %v2123_v53 = vadd.f32 %v2536_v50, %v2115_v46  ;;  %v2128_v10 = vadd.f32 %v2121_v51, %v2120_v49  ;;  %v2193_v50 = vld [vmem:[%s3698_s5] sm:$0x3] }
 0x2bd   :  { %v2198_v12 = vrot.slane %v2193_v50, %v3343_v55 }
 0x2be   :  { %v2103_v58 = vpop.f32.mrb[4].mxu0  ;;  %2129 = vadd.xlane.f32.xlu0 %v2128_v10  ;;  %v2131_v2 = vadd.f32 %v2123_v53, %v2122_v52 }
 0x2bf   :  { %v2537_v60 = vadd.f32 %v2103_v58, %v1253_v34  ;;  %v2105_v61 = vpop.f32.mrb[5].mxu0 }
 0x2c0   :  { %v2538_v62 = vadd.f32 %v2105_v61, %v1257_v35  ;;  %v2107_v63 = vpop.f32.mrb[6].mxu0 }
 0x2c1   :  { %v2539_v3 = vadd.f32 %v2107_v63, %v1253_v34  ;;  %v2109_v4 = vpop.f32.mrb[7].mxu0  ;;  %v2124_v5 = vadd.f32 %v2537_v60, %v2116_v21  ;;  %v2202_v21 = vrot.slane %v2193_v50, %v3351_v57 }
 0x2c2   :  { %v2540_v6 = vadd.f32 %v2109_v4, %v1257_v35  ;;  %2132 = vadd.xlane.f32.xlu0 %v2131_v2  ;;  %v2125_v7 = vadd.f32 %v2538_v62, %v2117_v59 }
 0x2c3   :  { %v2126_v8 = vadd.f32 %v2539_v3, %v2118_v1 }
 0x2c4   :  { %v2127_v9 = vadd.f32 %v2540_v6, %v2119_v54  ;;  %v2134_v56 = vadd.f32 %v2125_v7, %v2124_v5 }
 0x2c6   :  { %2135 = vadd.xlane.f32.xlu1 %v2134_v56  ;;  %v2137_v20 = vadd.f32 %v2127_v9, %v2126_v8 }
 0x2ca   :  { %2138 = vadd.xlane.f32.xlu1 %v2137_v20 }
 0x34b   :  { %v2130_v11 = vpop.xlane.xlu0 %2129 }
 0x34c   :  { %v2141_v13 = vmul.f32 0.00390625, %v2130_v11 }
 0x34e   :  { %v2145_v14 = vsub.f32 %v2120_v49, %v2141_v13  ;;  %v2146_v15 = vsub.f32 %v2121_v51, %v2141_v13 }
 0x34f   :  { %v2133_v16 = vpop.xlane.xlu0 %2132 }
 0x350   :  { %v2142_v17 = vmul.f32 0.00390625, %v2133_v16  ;;  %v2153_v18 = vmul.f32 %v2145_v14, %v2145_v14  ;;  %v2154_v19 = vmul.f32 %v2146_v15, %v2146_v15 }
 0x352   :  { %v2147_v22 = vsub.f32 %v2122_v52, %v2142_v17  ;;  %v2148_v23 = vsub.f32 %v2123_v53, %v2142_v17  ;;  %v2161_v24 = vadd.f32 %v2154_v19, %v2153_v18  ;;  %v2213_v53 = vld [vmem:[%s3699_s6] sm:$0x3] }
 0x353   :  { %v2136_v25 = vpop.xlane.xlu1 %2135  ;;  %v2218_v60 = vrot.slane %v2213_v53, %v3343_v55  ;;  %v2222_v61 = vrot.slane %v2213_v53, %v3351_v57 }
 0x354   :  { %v2143_v26 = vmul.f32 0.00390625, %v2136_v25  ;;  %2162 = vadd.xlane.f32.xlu0 %v2161_v24  ;;  %v2155_v27 = vmul.f32 %v2147_v22, %v2147_v22  ;;  %v2156_v28 = vmul.f32 %v2148_v23, %v2148_v23 }
 0x356   :  { %v2149_v29 = vsub.f32 %v2124_v5, %v2143_v26  ;;  %v2150_v30 = vsub.f32 %v2125_v7, %v2143_v26  ;;  %v2164_v31 = vadd.f32 %v2156_v28, %v2155_v27 }
 0x357   :  { %v2139_v32 = vpop.xlane.xlu1 %2138 }
 0x358   :  { %v2144_v33 = vmul.f32 0.00390625, %v2139_v32  ;;  %2165 = vadd.xlane.f32.xlu1 %v2164_v31  ;;  %v2157_v34 = vmul.f32 %v2149_v29, %v2149_v29  ;;  %v2158_v35 = vmul.f32 %v2150_v30, %v2150_v30 }
 0x35a   :  { %v2151_v36 = vsub.f32 %v2126_v8, %v2144_v33  ;;  %v2152_v37 = vsub.f32 %v2127_v9, %v2144_v33  ;;  %v2167_v38 = vadd.f32 %v2158_v35, %v2157_v34 }
 0x35c   :  { %2168 = vadd.xlane.f32.xlu0 %v2167_v38  ;;  %v2159_v39 = vmul.f32 %v2151_v36, %v2151_v36  ;;  %v2160_v40 = vmul.f32 %v2152_v37, %v2152_v37 }
 0x35e   :  { %v2170_v41 = vadd.f32 %v2160_v40, %v2159_v39 }
 0x360   :  { %2171 = vadd.xlane.f32.xlu1 %v2170_v41 }
 0x3e1   :  { %v2163_v42 = vpop.xlane.xlu0 %2162 }
 0x3e2   :  { %v2173_v43 = vmul.f32 0.00390625, %v2163_v42 }
 0x3e4   :  { %v2177_v44 = vadd.f32 1e-05, %v2173_v43 }
 0x3e5   :  { %v2166_v45 = vpop.xlane.xlu1 %2165 }
 0x3e6   :  { %2761 = vrsqrt.f32 %v2177_v44  ;;  %v2174_v46 = vmul.f32 0.00390625, %v2166_v45 }
 0x3e8   :  { %v2178_v47 = vadd.f32 1e-05, %v2174_v46 }
 0x3e9   :  { %v2169_v48 = vpop.xlane.xlu0 %2168 }
 0x3ea   :  { %2763 = vrsqrt.f32 %v2178_v47  ;;  %v2175_v49 = vmul.f32 0.00390625, %v2169_v48 }
 0x3ec   :  { %v2179_v51 = vadd.f32 1e-05, %v2175_v49 }
 0x3ed   :  { %v2172_v52 = vpop.xlane.xlu1 %2171 }
 0x3ee   :  { %2765 = vrsqrt.f32 %v2179_v51  ;;  %v2176_v10 = vmul.f32 0.00390625, %v2172_v52 }
 0x3f0   :  { %v2762_v58 = vpop.eup %2761  ;;  %v2180_v59 = vadd.f32 1e-05, %v2176_v10 }
 0x3f1   :  { %v2185_v62 = vmul.f32 %v2762_v58, %v2145_v14  ;;  %v2186_v63 = vmul.f32 %v2762_v58, %v2146_v15 }
 0x3f2   :  { %2767 = vrsqrt.f32 %v2180_v59 }
 0x3f3   :  { %v2205_v0 = vmul.f32 %v2198_v12, %v2185_v62  ;;  %v2206_v1 = vmul.f32 %v2202_v21, %v2186_v63 }
 0x3f4   :  { %v2764_v54 = vpop.eup %2763 }
 0x3f5   :  { %v2225_v2 = vadd.f32 %v2218_v60, %v2205_v0  ;;  %v2226_v3 = vadd.f32 %v2222_v61, %v2206_v1  ;;  %v2187_v4 = vmul.f32 %v2764_v54, %v2147_v22  ;;  %v2188_v5 = vmul.f32 %v2764_v54, %v2148_v23 }
 0x3f7   :  { %v2529_v6 = vpack.c.bf16 %v2226_v3, %v2225_v2  ;;  %v2207_v7 = vmul.f32 %v2198_v12, %v2187_v4  ;;  %v2208_v8 = vmul.f32 %v2202_v21, %v2188_v5 }
 0x3f8   :  { %v2766_v9 = vpop.eup %2765 }
 0x3f9   :  { %2257 = vst [vmem:[%s3700_s7] sm:$0xff] %v2529_v6  ;;  %v2227_v55 = vadd.f32 %v2218_v60, %v2207_v7  ;;  %v2228_v57 = vadd.f32 %v2222_v61, %v2208_v8  ;;  %v2189_v56 = vmul.f32 %v2766_v9, %v2149_v29  ;;  %v2190_v20 = vmul.f32 %v2766_v9, %v2150_v30 }
 0x3fb   :  { %v2530_v11 = vpack.c.bf16 %v2228_v57, %v2227_v55  ;;  %v2209_v13 = vmul.f32 %v2198_v12, %v2189_v56  ;;  %v2210_v14 = vmul.f32 %v2202_v21, %v2190_v20 }
 0x3fc   :  { %v2768_v15 = vpop.eup %2767 }
 0x3fd   :  { %2258 = vst [vmem:[%s3700_s7 + $0x8] sm:$0xff] %v2530_v11  ;;  %v2229_v16 = vadd.f32 %v2218_v60, %v2209_v13  ;;  %v2230_v17 = vadd.f32 %v2222_v61, %v2210_v14  ;;  %v2191_v18 = vmul.f32 %v2768_v15, %v2151_v36  ;;  %v2192_v19 = vmul.f32 %v2768_v15, %v2152_v37 }
 0x3ff   :  { %v2531_v22 = vpack.c.bf16 %v2230_v17, %v2229_v16  ;;  %v2211_v23 = vmul.f32 %v2198_v12, %v2191_v18  ;;  %v2212_v24 = vmul.f32 %v2202_v21, %v2192_v19 }
 0x401   :  { %2259 = vst [vmem:[%s3700_s7 + $0x10] sm:$0xff] %v2531_v22  ;;  %v2231_v25 = vadd.f32 %v2218_v60, %v2211_v23  ;;  %v2232_v26 = vadd.f32 %v2222_v61, %v2212_v24 }
 0x403   :  { %v2532_v27 = vpack.c.bf16 %v2232_v26, %v2231_v25 }
 0x405   :  { %2260 = vst [vmem:[%s3700_s7 + $0x18] sm:$0xff] %v2532_v27 }

// kernel: forward_train.49
= control target key start
LH: loop header
LB: loop body
LE: loop exit
PB: predicated region body
PF: predicated region fallthrough
CT: control target
= control target key end

     0   :  { %s385_s0 = inlined_call_operand.vmem [shape: bf16[32,256], index: 0, kind: input, shape index: {}]   ;;  %s386_s1 = inlined_call_operand.vmem [shape: bf16[128,256], index: 1, kind: input, shape index: {}]   ;;  %s387_s2 = inlined_call_operand.hbm [shape: f32[32,128], index: 2, kind: output, shape index: {}]  }
   0x1   :  { %v241_v0 = vld [vmem:[%s386_s1 + $0x4] ss:$8 sps:$4 sm:$0xff]   ;;  %v243_v1 = vld [vmem:[%s386_s1] ss:$8 sps:$4 sm:$0xff]   ;;  %v244_v2 = vld [vmem:[%s386_s1 + $0x14] ss:$8 sps:$4 sm:$0xff]  }
   0x2   :  { %133 = vmatprep.subr.bf16.mxu0 %v241_v0  ;;  %222 = vmatprep.subr.bf16.mxu1 %v241_v0  ;;  %v246_v3 = vld [vmem:[%s386_s1 + $0x10] ss:$8 sps:$4 sm:$0xff]   ;;  %v247_v4 = vld [vmem:[%s386_s1 + $0x24] ss:$8 sps:$4 sm:$0xff]   ;;  %v270_v6 = vld [vmem:[%s385_s0 + $0x14] ss:$8 sps:$4 sm:$0xff]  }
   0x3   :  { %134 = vmatpush1.bf16.xpose.msra.mxu0 %v243_v1  ;;  %230 = vmatpush1.bf16.xpose.msra.mxu1 %v243_v1  ;;  %v267_v5 = vld [vmem:[%s385_s0 + $0x4] ss:$8 sps:$4 sm:$0xff]  }
   0x4   :  { %135 = vmatprep.subr.bf16.mxu0 %v244_v2  ;;  %223 = vmatprep.subr.bf16.mxu1 %v244_v2 }
   0x5   :  { %165 = vmatprep.mubr.bf16.mxu0 %v267_v5 }
   0xb   :  { %136 = vmatpush1.bf16.xpose.msra.mxu0 %v246_v3  ;;  %231 = vmatpush1.bf16.xpose.msra.mxu1 %v246_v3 }
   0xc   :  { %137 = vmatprep.subr.bf16.mxu0 %v247_v4  ;;  %224 = vmatprep.subr.bf16.mxu1 %v247_v4 }
   0xd   :  { %7 = vsyncpa [#allocation3], 0  ;;  %v249_v7 = vld [vmem:[%s386_s1 + $0x20] ss:$8 sps:$4 sm:$0xff]   ;;  %173 = vmatprep.mubr.bf16.mxu1 %v270_v6  ;;  %v250_v8 = vld [vmem:[%s386_s1 + $0x34] ss:$8 sps:$4 sm:$0xff]  }
   0xe   :  { %v252_v9 = vld [vmem:[%s386_s1 + $0x30] ss:$8 sps:$4 sm:$0xff]   ;;  %v253_v10 = vld [vmem:[%s386_s1 + $0x44] ss:$8 sps:$4 sm:$0xff]   ;;  %v255_v11 = vld [vmem:[%s386_s1 + $0x40] ss:$8 sps:$4 sm:$0xff]  }
   0xf   :  { %v256_v12 = vld [vmem:[%s386_s1 + $0x54] ss:$8 sps:$4 sm:$0xff]   ;;  %v258_v13 = vld [vmem:[%s386_s1 + $0x50] ss:$8 sps:$4 sm:$0xff]   ;;  %v259_v14 = vld [vmem:[%s386_s1 + $0x64] ss:$8 sps:$4 sm:$0xff]  }
  0x10   :  { %v261_v15 = vld [vmem:[%s386_s1 + $0x60] ss:$8 sps:$4 sm:$0xff]   ;;  %v262_v16 = vld [vmem:[%s386_s1 + $0x74] ss:$8 sps:$4 sm:$0xff]   ;;  %v264_v17 = vld [vmem:[%s386_s1 + $0x70] ss:$8 sps:$4 sm:$0xff]  }
  0x11   :  { %v265_v18 = vld [vmem:[%s385_s0] ss:$8 sps:$4 sm:$0xff]   ;;  %v268_v19 = vld [vmem:[%s385_s0 + $0x10] ss:$8 sps:$4 sm:$0xff]   ;;  %s295_s21 = smov [#allocation2]  }
  0x12   :  { %s191_s22 = sshll.u32 %s295_s21, 4  ;;  %s192_s22 = int_to_ptr.vmem [resolvable:$true] %s191_s22 }
  0x13   :  { %138 = vmatpush1.bf16.xpose.msra.mxu0 %v249_v7  ;;  %232 = vmatpush1.bf16.xpose.msra.mxu1 %v249_v7  ;;  %s271_s1 = scalar_lea.vmem %s192_s22, 512  ;;  %p276_p1 = scmp.lt.s32.totalorder %s192_s22, %s192_s22 }
  0x14   :  { %139 = vmatprep.subr.bf16.mxu0 %v250_v8  ;;  %225 = vmatprep.subr.bf16.mxu1 %v250_v8  ;;  %p272_p0 = scmp.ne.s32.totalorder %s192_s22, %s271_s1  ;;  %p277_p2 = scmp.lt.s32.totalorder %s271_s1, %s271_s1 }
  0x16   :  { %p278_p3 = por %p277_p2, %p276_p1 }
  0x18   :  { %p279_p4 = pnand %p278_p3, %p272_p0 }
  0x1b   :  { %140 = vmatpush1.bf16.xpose.msra.mxu0 %v252_v9  ;;  %233 = vmatpush1.bf16.xpose.msra.mxu1 %v252_v9 }
  0x1c   :  { %141 = vmatprep.subr.bf16.mxu0 %v253_v10  ;;  %226 = vmatprep.subr.bf16.mxu1 %v253_v10 }
  0x23   :  { %142 = vmatpush1.bf16.xpose.msra.mxu0 %v255_v11  ;;  %234 = vmatpush1.bf16.xpose.msra.mxu1 %v255_v11 }
  0x24   :  { %143 = vmatprep.subr.bf16.mxu0 %v256_v12  ;;  %227 = vmatprep.subr.bf16.mxu1 %v256_v12 }
  0x2b   :  { %144 = vmatpush1.bf16.xpose.msra.mxu0 %v258_v13  ;;  %235 = vmatpush1.bf16.xpose.msra.mxu1 %v258_v13 }
  0x2c   :  { %145 = vmatprep.subr.bf16.mxu0 %v259_v14  ;;  %228 = vmatprep.subr.bf16.mxu1 %v259_v14 }
  0x33   :  { %146 = vmatpush1.bf16.xpose.msra.mxu0 %v261_v15  ;;  %236 = vmatpush1.bf16.xpose.msra.mxu1 %v261_v15 }
  0x34   :  { %147 = vmatprep.subr.bf16.mxu0 %v262_v16  ;;  %229 = vmatprep.subr.bf16.mxu1 %v262_v16 }
  0x3b   :  { %148 = vmatpush1.bf16.xpose.msra.mxu0 %v264_v17  ;;  %237 = vmatpush1.bf16.xpose.msra.mxu1 %v264_v17 }
  0x42   :  { %166 = vmatmul.mubr.bf16.vlgmr.msra.gmra.mrb[0].mxu0 %v265_v18  ;;  %174 = vmatmul.mubr.bf16.vlgmr.msra.gmra.mrb[0].mxu1 %v268_v19 }
 0x115   :  { %v167_v20 = vpop.f32.mrb[0].mxu0  ;;  %v175_v21 = vpop.f32.mrb[0].mxu1 }
 0x116   :  { %182 = vst [vmem:[#allocation2] sm:$0xff] %v167_v20  ;;  %184 = vst [vmem:[#allocation2 + $0x10] sm:$0xff] %v175_v21  ;;  %v169_v22 = vpop.f32.mrb[1].mxu0  ;;  %v177_v23 = vpop.f32.mrb[1].mxu1 }
 0x117   :  { %v170_v24 = vpop.f32.mrb[2].mxu0  ;;  %v178_v25 = vpop.f32.mrb[2].mxu1 }
 0x118   :  { %183 = vst [vmem:[#allocation2 + $0x8] sm:$0xff] %v170_v24  ;;  %185 = vst [vmem:[#allocation2 + $0x18] sm:$0xff] %v178_v25  ;;  %v172_v26 = vpop.f32.mrb[3].mxu0  ;;  %v180_v27 = vpop.f32.mrb[3].mxu1 }
 0x119   :  { %282 = shalt.err (!%p279_p4)
}
 0x11a   :  { %s283_s24 = scalar_lea.hbm %s387_s2, 512 }
 0x11b   :  { %p284_p5 = scmp.ne.s32.totalorder %s387_s2, %s283_s24  ;;  %p287_p6 = scmp.lt.u32.totalorder %s283_s24, %s387_s2 }
 0x11d   :  { %p289_p7 = pnand %p287_p6, %p284_p5 }
 0x11f   :  { %292 = shalt.err (!%p289_p7)
}
 0x120   :  { %s296_s29 = smov 128   ;;  %s297_s30 = smov 8  }
 0x121   :  { %197 = dma.vmem_to_hbm [thread:$0]  %s192_s22, 512, %s387_s2, [#allocation3], %s296_s29, %s296_s29, %s297_s30  }
 0x122   :  { %293 = dma.done.wait [#allocation3], 512  }
 0x123   :  { %294 = vsyncadd [#allocation3], 4294966784 }
 0x124   :  { %201 = vsyncpa [#allocation3], 1 }

</bundles_post_ra>
